<compile_context>
chip_gen: v6e
topology: v6e:2x2x1
jax: 0.10.0
libtpu: 0.0.40
codegen_flags: <defaults>
</compile_context>

<pallas_src>
import functools

import jax
import jax.numpy as jnp
import numpy as np
from jax.experimental import pallas as pl
from jax.experimental.pallas import tpu as pltpu

FILTER_NUM = 100                 # fixed by the PyTorch module
FP = 128                         # filter_num padded to a full lane tile
KSIZES = (3, 4, 5)
KMAX = 5
NGROUPS = 2 * len(KSIZES)        # {k3,k4,k5} x {cnn, noise_cnn}
CW = NGROUPS * FP                # 768: fused conv output width
HP = len(KSIZES) * FP            # 384: padded d_hid


def _vmem():
    return pl.BlockSpec(memory_space=pltpu.MemorySpace.VMEM)


# ----------------------------------------------------------------------------
# The single fused kernel
# ----------------------------------------------------------------------------
def netab_kernel(x_ref, wconv_ref, bconv_ref, wc_ref, bc_ref,
                 wa_ref, ba_ref, wu_ref,
                 noisy_ref, clean_ref, xu_ref, *, batch, seq_len):
    BL, D = x_ref.shape
    L = seq_len

    # ---- build the unfolded conv windows in VMEM (no HBM unfold) -----------
    # xu[r, i*D:(i+1)*D] = x[r + i]; rows past the end stay 0 and only feed
    # pool positions t > L - k which are masked out below.
    xu_ref[...] = jnp.zeros_like(xu_ref)
    for i in range(KMAX):
        xu_ref[pl.ds(0, BL - i), pl.ds(i * D, D)] = x_ref[pl.ds(i, BL - i), :]

    # ---- one matmul for all 3 window sizes x {cnn, noise_cnn} --------------
    y = jnp.dot(xu_ref[...], wconv_ref[...],
                preferred_element_type=jnp.float32)            # [BL, CW]
    y = jnp.maximum(y + bconv_ref[...], 0.0)
    y = y.reshape(batch, L, CW)                                # L % 8 == 0

    # mask pool positions t > L - k (per 2*FP column group), then max over t
    t_idx = jax.lax.broadcasted_iota(jnp.int32, (batch, L, CW), 1)
    col = jax.lax.broadcasted_iota(jnp.int32, (batch, L, CW), 2)
    limit = jnp.where(col < 2 * FP, L - 3,
                      jnp.where(col < 4 * FP, L - 4, L - 5))
    y = jnp.where(t_idx <= limit, y, 0.0)                      # ReLU >= 0
    pooled = jnp.max(y, axis=1)                                # [B, CW]

    # ---- head: clean linear + both transition layers, fused ----------------
    clean = jnp.dot(pooled, wc_ref[...],
                    preferred_element_type=jnp.float32) + bc_ref[...]      # [B, 2]
    z = jnp.tanh(jnp.dot(pooled, wa_ref[...],
                         preferred_element_type=jnp.float32) + ba_ref[...])  # [B, 2*HP]
    logit = jnp.dot(z, wu_ref[...], preferred_element_type=jnp.float32)      # [B, 4]
    e = jnp.exp(logit)
    t1 = e[:, 0:2] / (e[:, 0:1] + e[:, 1:2] + 1e-9)
    t2 = e[:, 2:4] / (e[:, 2:3] + e[:, 3:4] + 1e-9)

    # noisy[b, 0] = sum_j clean[b, j] * t1[b, j];  noisy[b, 1] = ... * t2[b, j]
    n0 = jnp.sum(clean * t1, axis=1, keepdims=True)
    n1 = jnp.sum(clean * t2, axis=1, keepdims=True)
    lane = jax.lax.broadcasted_iota(jnp.int32, (batch, 2), 1)
    noisy_ref[...] = jnp.where(lane == 0, n0, n1)
    clean_ref[...] = clean


def netab_fused(x_flat, pk, *, batch, seq_len):
    BL, D = x_flat.shape
    assert BL == batch * seq_len and seq_len % 8 == 0 and seq_len >= KMAX
    kernel = functools.partial(netab_kernel, batch=batch, seq_len=seq_len)
    return pl.pallas_call(
        kernel,
        out_shape=(jax.ShapeDtypeStruct((batch, 2), jnp.float32),
                   jax.ShapeDtypeStruct((batch, 2), jnp.float32)),
        in_specs=[_vmem()] * 8,
        out_specs=(_vmem(), _vmem()),
        scratch_shapes=[pltpu.VMEM((BL, KMAX * D), jnp.float32)],
    )(x_flat, pk["w_conv"], pk["b_conv"], pk["wc"], pk["bc"],
      pk["wa"], pk["ba"], pk["wu"])


# ----------------------------------------------------------------------------
# Parameters (PyTorch-equivalent layout) and fused/padded packing
# ----------------------------------------------------------------------------
def init_params(key, vocab, word_dim, filter_num=FILTER_NUM):
    d_hid = 3 * filter_num
    keys = jax.random.split(key, 19)
    p = {}
    # TODO(synk): original code loads GloVe from ./data/Embeddings/<domain>.npy;
    # replaced by a deterministic synthetic embedding table.
    p["embedding"] = jax.random.normal(keys[0], (vocab, word_dim), jnp.float32) * 0.1

    for name, base in (("cnn", 1), ("noise_cnn", 7)):
        for i, k in enumerate(KSIZES):
            p[f"{name}_w{k}"] = jax.random.uniform(
                keys[base + 2 * i], (k * word_dim, filter_num), jnp.float32, -0.1, 0.1)
            p[f"{name}_b{k}"] = jax.random.uniform(
                keys[base + 2 * i + 1], (filter_num,), jnp.float32, -0.1, 0.1)

    p["clean_w"] = jax.random.uniform(keys[13], (d_hid, 2), jnp.float32, -0.01, 0.01)
    p["clean_b"] = jax.random.uniform(keys[14], (2,), jnp.float32, -0.01, 0.01)
    for i, t in enumerate(("t1", "t2")):
        p[f"{t}_attn_w"] = jax.random.uniform(
            keys[15 + 2 * i], (d_hid, d_hid), jnp.float32, -0.01, 0.01)
        p[f"{t}_attn_b"] = jnp.zeros((d_hid,), jnp.float32)  # nn.init.uniform_(b, 0, 0)
        p[f"{t}_u_w"] = jax.random.uniform(
            keys[16 + 2 * i], (d_hid, 2), jnp.float32, -0.01, 0.01)
    return p


def pack_params(p, word_dim, filter_num=FILTER_NUM):
    """Pack & zero-pad weights into the fused, lane-aligned kernel layout.

    Fused conv columns (width FP each): [k3_cnn | k3_noise | k4_cnn | k4_noise
    | k5_cnn | k5_noise]; lanes >= filter_num in each group are zero.
    """
    D, F = word_dim, filter_num
    d_hid = 3 * F
    f32 = jnp.float32

    w_conv = jnp.zeros((KMAX * D, CW), f32)
    b_conv = jnp.zeros((1, CW), f32)
    wc = jnp.zeros((CW, 2), f32)
    wa = jnp.zeros((CW, 2 * HP), f32)
    ba = jnp.zeros((1, 2 * HP), f32)
    wu = jnp.zeros((2 * HP, 4), f32)

    for ki, k in enumerate(KSIZES):
        for bi, prefix in enumerate(("cnn", "noise_cnn")):
            c0 = (2 * ki + bi) * FP
            w_conv = w_conv.at[:k * D, c0:c0 + F].set(p[f"{prefix}_w{k}"])
            b_conv = b_conv.at[0, c0:c0 + F].set(p[f"{prefix}_b{k}"])
        # clean linear reads the cnn groups
        wc = wc.at[2 * ki * FP:2 * ki * FP + F, :].set(
            p["clean_w"][ki * F:(ki + 1) * F, :])

    for ti, t in enumerate(("t1", "t2")):
        off = ti * HP
        for ki in range(len(KSIZES)):
            r0 = (2 * ki + 1) * FP                      # noise_cnn groups
            wa = wa.at[r0:r0 + F, off:off + d_hid].set(
                p[f"{t}_attn_w"][ki * F:(ki + 1) * F, :])
        ba = ba.at[0, off:off + d_hid].set(p[f"{t}_attn_b"])
        wu = wu.at[off:off + d_hid, 2 * ti:2 * ti + 2].set(p[f"{t}_u_w"])

    bc = p["clean_b"].reshape(1, 2)
    return dict(w_conv=w_conv, b_conv=b_conv, wc=wc, bc=bc, wa=wa, ba=ba, wu=wu)


# ----------------------------------------------------------------------------
# Forward (glue) and pure-JAX reference
# ----------------------------------------------------------------------------
@jax.jit
def net_ab_forward(embedding, packed, token_ids):
    batch, seq_len = token_ids.shape
    # dropout1 / dropout2: identity at inference
    x_flat = jnp.take(embedding, token_ids.reshape(-1), axis=0)   # [B*L, D]
    return netab_fused(x_flat, packed, batch=batch, seq_len=seq_len)


def unfold(x, k):
    # x: [B, L, D] -> [B, T, k*D] with window [t:t+k] flattened row-major
    _, seq_len, _ = x.shape
    t = seq_len - k + 1
    return jnp.concatenate([x[:, i:i + t, :] for i in range(k)], axis=-1)


def net_ab_reference(params, token_ids):
    x = jnp.take(params["embedding"], token_ids, axis=0)

    def conv_mod(prefix):
        outs = []
        for k in KSIZES:
            xu = unfold(x, k)
            act = jnp.maximum(
                jnp.einsum("btk,kf->btf", xu, params[f"{prefix}_w{k}"])
                + params[f"{prefix}_b{k}"], 0.0)
            outs.append(jnp.max(act, axis=1))
        return jnp.concatenate(outs, axis=1)

    o1 = conv_mod("cnn")
    o2 = conv_mod("noise_cnn")
    clean = o1 @ params["clean_w"] + params["clean_b"]

    def trans(t):
        z = jnp.tanh(o2 @ params[f"{t}_attn_w"] + params[f"{t}_attn_b"])
        e = jnp.exp(z @ params[f"{t}_u_w"])
        return e / (jnp.sum(e, axis=1, keepdims=True) + 1e-9)

    prob = jnp.stack([trans("t1"), trans("t2")], axis=2)  # [B, 2, 2]
    noisy = jnp.einsum("bj,bji->bi", clean, prob)
    return noisy, clean


if __name__ == "__main__":
    batch, max_seq_len, word_dim, vocab = 4, 16, 32, 50

    key = jax.random.PRNGKey(0)
    k_param, k_tok = jax.random.split(key)
    params = init_params(k_param, vocab, word_dim)
    packed = pack_params(params, word_dim)
    token_ids = jax.random.randint(k_tok, (batch, max_seq_len), 0, vocab, jnp.int32)

    noisy, clean = net_ab_forward(params["embedding"], packed, token_ids)
    jax.block_until_ready((noisy, clean))

    ref_noisy, ref_clean = net_ab_reference(params, token_ids)
    np.testing.assert_allclose(np.asarray(clean), np.asarray(ref_clean), atol=2e-4, rtol=2e-4)
    np.testing.assert_allclose(np.asarray(noisy), np.asarray(ref_noisy), atol=2e-4, rtol=2e-4)
    assert noisy.shape == (batch, 2) and clean.shape == (batch, 2)

    print("KERNEL_OK")
</pallas_src>

<mosaic_0001>
module attributes {stable_mosaic.version = 11 : i64} {
  func.func @netab_kernel(%arg0: memref<64x32xf32, #tpu.memory_space<vmem>>, %arg1: memref<160x768xf32, #tpu.memory_space<vmem>>, %arg2: memref<1x768xf32, #tpu.memory_space<vmem>>, %arg3: memref<768x2xf32, #tpu.memory_space<vmem>>, %arg4: memref<1x2xf32, #tpu.memory_space<vmem>>, %arg5: memref<768x768xf32, #tpu.memory_space<vmem>>, %arg6: memref<1x768xf32, #tpu.memory_space<vmem>>, %arg7: memref<768x4xf32, #tpu.memory_space<vmem>>, %arg8: memref<4x2xf32, #tpu.memory_space<vmem>>, %arg9: memref<4x2xf32, #tpu.memory_space<vmem>>, %arg10: memref<64x160xf32, #tpu.memory_space<vmem>>) attributes {dimension_semantics = [], scalar_prefetch = 0 : i64, scratch_operands = 1 : i64, tpu.core_type = #tpu.core_type<tc>} {
    %cst = arith.constant 0.000000e+00 : f32
    %0 = vector.broadcast %cst : f32 to vector<64x160xf32>
    %c0 = arith.constant 0 : index
    %c0_0 = arith.constant 0 : index
    %1 = vector.load %arg10[%c0, %c0_0] : memref<64x160xf32, #tpu.memory_space<vmem>>, vector<64x160xf32>
    tpu.vector_store %arg10[%c0, %c0_0], %0 {strides = array<i32>} : memref<64x160xf32, #tpu.memory_space<vmem>>, vector<64x160xf32>,
    %c0_1 = arith.constant 0 : index
    %c0_2 = arith.constant 0 : index
    %2 = vector.load %arg0[%c0_1, %c0_2] : memref<64x32xf32, #tpu.memory_space<vmem>>, vector<64x32xf32>
    %c0_3 = arith.constant 0 : index
    %c0_4 = arith.constant 0 : index
    %3 = vector.load %arg10[%c0_3, %c0_4] : memref<64x160xf32, #tpu.memory_space<vmem>>, vector<64x32xf32>
    tpu.vector_store %arg10[%c0_3, %c0_4], %2 {strides = array<i32>} : memref<64x160xf32, #tpu.memory_space<vmem>>, vector<64x32xf32>,
    %c1 = arith.constant 1 : index
    %c0_5 = arith.constant 0 : index
    %4 = vector.load %arg0[%c1, %c0_5] : memref<64x32xf32, #tpu.memory_space<vmem>>, vector<63x32xf32>
    %c0_6 = arith.constant 0 : index
    %c32 = arith.constant 32 : index
    %5 = vector.load %arg10[%c0_6, %c32] : memref<64x160xf32, #tpu.memory_space<vmem>>, vector<63x32xf32>
    tpu.vector_store %arg10[%c0_6, %c32], %4 {strides = array<i32>} : memref<64x160xf32, #tpu.memory_space<vmem>>, vector<63x32xf32>,
    %c2 = arith.constant 2 : index
    %c0_7 = arith.constant 0 : index
    %6 = vector.load %arg0[%c2, %c0_7] : memref<64x32xf32, #tpu.memory_space<vmem>>, vector<62x32xf32>
    %c0_8 = arith.constant 0 : index
    %c64 = arith.constant 64 : index
    %7 = vector.load %arg10[%c0_8, %c64] : memref<64x160xf32, #tpu.memory_space<vmem>>, vector<62x32xf32>
    tpu.vector_store %arg10[%c0_8, %c64], %6 {strides = array<i32>} : memref<64x160xf32, #tpu.memory_space<vmem>>, vector<62x32xf32>,
    %c3 = arith.constant 3 : index
    %c0_9 = arith.constant 0 : index
    %8 = vector.load %arg0[%c3, %c0_9] : memref<64x32xf32, #tpu.memory_space<vmem>>, vector<61x32xf32>
    %c0_10 = arith.constant 0 : index
    %c96 = arith.constant 96 : index
    %9 = vector.load %arg10[%c0_10, %c96] : memref<64x160xf32, #tpu.memory_space<vmem>>, vector<61x32xf32>
    tpu.vector_store %arg10[%c0_10, %c96], %8 {strides = array<i32>} : memref<64x160xf32, #tpu.memory_space<vmem>>, vector<61x32xf32>,
    %c4 = arith.constant 4 : index
    %c0_11 = arith.constant 0 : index
    %10 = vector.load %arg0[%c4, %c0_11] : memref<64x32xf32, #tpu.memory_space<vmem>>, vector<60x32xf32>
    %c0_12 = arith.constant 0 : index
    %c128 = arith.constant 128 : index
    %11 = vector.load %arg10[%c0_12, %c128] : memref<64x160xf32, #tpu.memory_space<vmem>>, vector<60x32xf32>
    tpu.vector_store %arg10[%c0_12, %c128], %10 {strides = array<i32>} : memref<64x160xf32, #tpu.memory_space<vmem>>, vector<60x32xf32>,
    %c0_13 = arith.constant 0 : index
    %c0_14 = arith.constant 0 : index
    %12 = vector.load %arg10[%c0_13, %c0_14] : memref<64x160xf32, #tpu.memory_space<vmem>>, vector<64x160xf32>
    %c0_15 = arith.constant 0 : index
    %c0_16 = arith.constant 0 : index
    %13 = vector.load %arg1[%c0_15, %c0_16] : memref<160x768xf32, #tpu.memory_space<vmem>>, vector<160x768xf32>
    %cst_17 = arith.constant dense<0.000000e+00> : vector<64x768xf32>
    %14 = tpu.matmul %12, %13, %cst_17 {dimension_numbers = #tpu.dot_dimension_numbers<[1], [0], [0], [1], [0, 0, 1, 1], [], []>} : vector<64x160xf32>, vector<160x768xf32>, vector<64x768xf32> -> vector<64x768xf32>
    %c0_18 = arith.constant 0 : index
    %c0_19 = arith.constant 0 : index
    %15 = vector.load %arg2[%c0_18, %c0_19] : memref<1x768xf32, #tpu.memory_space<vmem>>, vector<1x768xf32>
    %16 = vector.broadcast %15 : vector<1x768xf32> to vector<64x768xf32>
    %17 = arith.addf %14, %16 : vector<64x768xf32>
    %cst_20 = arith.constant 0.000000e+00 : f32
    %18 = vector.broadcast %cst_20 : f32 to vector<64x768xf32>
    %19 = arith.maximumf %17, %18 : vector<64x768xf32>
    %20 = vector.shape_cast %19 : vector<64x768xf32> to vector<4x16x768xf32>
    %21 = tpu.iota {dimensions = array<i32: 1>} : vector<4x16x768xi32>
    %22 = tpu.iota {dimensions = array<i32: 2>} : vector<4x16x768xi32>
    %c256_i32 = arith.constant 256 : i32
    %23 = vector.broadcast %c256_i32 : i32 to vector<4x16x768xi32>
    %24 = arith.cmpi slt, %22, %23 : vector<4x16x768xi32>
    %c512_i32 = arith.constant 512 : i32
    %25 = vector.broadcast %c512_i32 : i32 to vector<4x16x768xi32>
    %26 = arith.cmpi slt, %22, %25 : vector<4x16x768xi32>
    %c12_i32 = arith.constant 12 : i32
    %c11_i32 = arith.constant 11 : i32
    %27 = vector.broadcast %c12_i32 : i32 to vector<4x16x768xi32>
    %28 = vector.broadcast %c11_i32 : i32 to vector<4x16x768xi32>
    %29 = arith.select %26, %27, %28 : vector<4x16x768xi1>, vector<4x16x768xi32>
    %c13_i32 = arith.constant 13 : i32
    %30 = vector.broadcast %c13_i32 : i32 to vector<4x16x768xi32>
    %31 = arith.select %24, %30, %29 : vector<4x16x768xi1>, vector<4x16x768xi32>
    %32 = arith.cmpi sle, %21, %31 : vector<4x16x768xi32>
    %cst_21 = arith.constant 0.000000e+00 : f32
    %33 = vector.broadcast %cst_21 : f32 to vector<4x16x768xf32>
    %34 = arith.select %32, %20, %33 : vector<4x16x768xi1>, vector<4x16x768xf32>
    %cst_22 = arith.constant dense<0xFF800000> : vector<4x768xf32>
    %35 = vector.multi_reduction <maximumf>, %34, %cst_22 [1] : vector<4x16x768xf32> to vector<4x768xf32>
    %c0_23 = arith.constant 0 : index
    %c0_24 = arith.constant 0 : index
    %36 = vector.load %arg3[%c0_23, %c0_24] : memref<768x2xf32, #tpu.memory_space<vmem>>, vector<768x2xf32>
    %cst_25 = arith.constant dense<0.000000e+00> : vector<4x2xf32>
    %37 = tpu.matmul %35, %36, %cst_25 {dimension_numbers = #tpu.dot_dimension_numbers<[1], [0], [0], [1], [0, 0, 1, 1], [], []>} : vector<4x768xf32>, vector<768x2xf32>, vector<4x2xf32> -> vector<4x2xf32>
    %c0_26 = arith.constant 0 : index
    %c0_27 = arith.constant 0 : index
    %38 = vector.load %arg4[%c0_26, %c0_27] : memref<1x2xf32, #tpu.memory_space<vmem>>, vector<1x2xf32>
    %39 = vector.broadcast %38 : vector<1x2xf32> to vector<4x2xf32>
    %40 = arith.addf %37, %39 : vector<4x2xf32>
    %c0_28 = arith.constant 0 : index
    %c0_29 = arith.constant 0 : index
    %41 = vector.load %arg5[%c0_28, %c0_29] : memref<768x768xf32, #tpu.memory_space<vmem>>, vector<768x768xf32>
    %cst_30 = arith.constant dense<0.000000e+00> : vector<4x768xf32>
    %42 = tpu.matmul %35, %41, %cst_30 {dimension_numbers = #tpu.dot_dimension_numbers<[1], [0], [0], [1], [0, 0, 1, 1], [], []>} : vector<4x768xf32>, vector<768x768xf32>, vector<4x768xf32> -> vector<4x768xf32>
    %c0_31 = arith.constant 0 : index
    %c0_32 = arith.constant 0 : index
    %43 = vector.load %arg6[%c0_31, %c0_32] : memref<1x768xf32, #tpu.memory_space<vmem>>, vector<1x768xf32>
    %44 = vector.broadcast %43 : vector<1x768xf32> to vector<4x768xf32>
    %45 = arith.addf %42, %44 : vector<4x768xf32>
    %46 = math.tanh %45 : vector<4x768xf32>
    %c0_33 = arith.constant 0 : index
    %c0_34 = arith.constant 0 : index
    %47 = vector.load %arg7[%c0_33, %c0_34] : memref<768x4xf32, #tpu.memory_space<vmem>>, vector<768x4xf32>
    %cst_35 = arith.constant dense<0.000000e+00> : vector<4x4xf32>
    %48 = tpu.matmul %46, %47, %cst_35 {dimension_numbers = #tpu.dot_dimension_numbers<[1], [0], [0], [1], [0, 0, 1, 1], [], []>} : vector<4x768xf32>, vector<768x4xf32>, vector<4x4xf32> -> vector<4x4xf32>
    %49 = math.exp %48 : vector<4x4xf32>
    %50 = vector.extract_strided_slice %49 {offsets = [0, 0], sizes = [4, 2], strides = [1, 1]} : vector<4x4xf32> to vector<4x2xf32>
    %51 = vector.extract_strided_slice %49 {offsets = [0, 0], sizes = [4, 1], strides = [1, 1]} : vector<4x4xf32> to vector<4x1xf32>
    %52 = vector.extract_strided_slice %49 {offsets = [0, 1], sizes = [4, 1], strides = [1, 1]} : vector<4x4xf32> to vector<4x1xf32>
    %53 = arith.addf %51, %52 : vector<4x1xf32>
    %cst_36 = arith.constant 9.99999971E-10 : f32
    %54 = vector.broadcast %cst_36 : f32 to vector<4x1xf32>
    %55 = arith.addf %53, %54 : vector<4x1xf32>
    %56 = vector.broadcast %55 : vector<4x1xf32> to vector<4x2xf32>
    %57 = arith.divf %50, %56 : vector<4x2xf32>
    %58 = vector.extract_strided_slice %49 {offsets = [0, 2], sizes = [4, 2], strides = [1, 1]} : vector<4x4xf32> to vector<4x2xf32>
    %59 = vector.extract_strided_slice %49 {offsets = [0, 2], sizes = [4, 1], strides = [1, 1]} : vector<4x4xf32> to vector<4x1xf32>
    %60 = vector.extract_strided_slice %49 {offsets = [0, 3], sizes = [4, 1], strides = [1, 1]} : vector<4x4xf32> to vector<4x1xf32>
    %61 = arith.addf %59, %60 : vector<4x1xf32>
    %cst_37 = arith.constant 9.99999971E-10 : f32
    %62 = vector.broadcast %cst_37 : f32 to vector<4x1xf32>
    %63 = arith.addf %61, %62 : vector<4x1xf32>
    %64 = vector.broadcast %63 : vector<4x1xf32> to vector<4x2xf32>
    %65 = arith.divf %58, %64 : vector<4x2xf32>
    %66 = arith.mulf %40, %57 : vector<4x2xf32>
    %cst_38 = arith.constant dense<0.000000e+00> : vector<4xf32>
    %67 = vector.multi_reduction <add>, %66, %cst_38 [1] : vector<4x2xf32> to vector<4xf32>
    %68 = vector.shape_cast %67 : vector<4xf32> to vector<4x1xf32>
    %69 = arith.mulf %40, %65 : vector<4x2xf32>
    %cst_39 = arith.constant dense<0.000000e+00> : vector<4xf32>
    %70 = vector.multi_reduction <add>, %69, %cst_39 [1] : vector<4x2xf32> to vector<4xf32>
    %71 = vector.shape_cast %70 : vector<4xf32> to vector<4x1xf32>
    %72 = tpu.iota {dimensions = array<i32: 1>} : vector<4x2xi32>
    %c0_i32 = arith.constant 0 : i32
    %73 = vector.broadcast %c0_i32 : i32 to vector<4x2xi32>
    %74 = arith.cmpi eq, %72, %73 : vector<4x2xi32>
    %75 = vector.shape_cast %68 : vector<4x1xf32> to vector<4x1xf32>
    %76 = vector.broadcast %75 : vector<4x1xf32> to vector<4x2xf32>
    %77 = vector.shape_cast %71 : vector<4x1xf32> to vector<4x1xf32>
    %78 = vector.broadcast %77 : vector<4x1xf32> to vector<4x2xf32>
    %79 = arith.select %74, %76, %78 : vector<4x2xi1>, vector<4x2xf32>
    %c0_40 = arith.constant 0 : index
    %c0_41 = arith.constant 0 : index
    %80 = vector.load %arg8[%c0_40, %c0_41] : memref<4x2xf32, #tpu.memory_space<vmem>>, vector<4x2xf32>
    tpu.vector_store %arg8[%c0_40, %c0_41], %79 {strides = array<i32>} : memref<4x2xf32, #tpu.memory_space<vmem>>, vector<4x2xf32>,
    %c0_42 = arith.constant 0 : index
    %c0_43 = arith.constant 0 : index
    %81 = vector.load %arg9[%c0_42, %c0_43] : memref<4x2xf32, #tpu.memory_space<vmem>>, vector<4x2xf32>
    tpu.vector_store %arg9[%c0_42, %c0_43], %40 {strides = array<i32>} : memref<4x2xf32, #tpu.memory_space<vmem>>, vector<4x2xf32>,
    return
  }
}

</mosaic_0001>

<bundles_post_ra>
// kernel: net_ab_forward.1
= control target key start
LH: loop header
LB: loop body
LE: loop exit
PB: predicated region body
PF: predicated region fallthrough
CT: control target
= control target key end

     0   :  { %15 = vsyncpa [#allocation4], 0  ;;  %s4699_s0 = inlined_call_operand.vmem [shape: f32[64,32], index: 0, kind: input, shape index: {}]   ;;  %s4700_s1 = inlined_call_operand.hbm [shape: f32[160,768], index: 1, kind: input, shape index: {}]   ;;  %s4701_s2 = inlined_call_operand.hbm [shape: f32[1,768], index: 2, kind: input, shape index: {}]   ;;  %s4702_s3 = inlined_call_operand.vmem [shape: f32[768,2], index: 3, kind: input, shape index: {}]   ;;  %s4703_s4 = inlined_call_operand.hbm [shape: f32[1,2], index: 4, kind: input, shape index: {}]   ;;  %s4704_s5 = inlined_call_operand.hbm [shape: f32[768,768], index: 5, kind: input, shape index: {}]   ;;  %s4705_s6 = inlined_call_operand.hbm [shape: f32[1,768], index: 6, kind: input, shape index: {}]   ;;  %s4706_s7 = inlined_call_operand.vmem [shape: f32[768,4], index: 7, kind: input, shape index: {}]   ;;  %s4707_s8 = inlined_call_operand.vmem [shape: f32[4,2], index: 8, kind: output, shape index: {0}]   ;;  %s4708_s9 = inlined_call_operand.vmem [shape: f32[4,2], index: 9, kind: output, shape index: {1}]  }
   0x1   :  { %16 = vsyncpa [#allocation6], 0 }
   0x2   :  { %17 = vsyncpa [#allocation9], 0  ;;  %s3483_s30 = smov [#allocation5]  }
   0x3   :  { %s38_s10 = sshll.u32 %s3483_s30, 4  ;;  %s39_s10 = int_to_ptr.vmem [resolvable:$true] %s38_s10 }
   0x4   :  { %s3385_s11 = scalar_lea.vmem %s39_s10, 96  ;;  %p3390_p1 = scmp.lt.s32.totalorder %s39_s10, %s39_s10 }
   0x5   :  { %p3386_p0 = scmp.ne.s32.totalorder %s39_s10, %s3385_s11  ;;  %p3391_p2 = scmp.lt.s32.totalorder %s3385_s11, %s3385_s11 }
   0x7   :  { %p3392_p3 = por %p3391_p2, %p3390_p1 }
   0x9   :  { %p3393_p4 = pnand %p3392_p3, %p3386_p0 }
   0xb   :  { %3396 = shalt.err (!%p3393_p4)
}
   0xc   :  { %41 = dma.hbm_to_vmem [thread:$0]  %s4701_s2, 96, %s39_s10, [#allocation6]  }
   0xd   :  { %s3484_s14 = smov [#allocation8]   ;;  %s3485_s16 = smov [#allocation3]  }
   0xe   :  { %s59_s15 = sshll.u32 %s3484_s14, 4  ;;  %s25_s17 = sshll.u32 %s3485_s16, 4  ;;  %s60_s15 = int_to_ptr.vmem [resolvable:$true] %s59_s15  ;;  %s26_s17 = int_to_ptr.vmem [resolvable:$true] %s25_s17 }
   0xf   :  { %s3405_s18 = scalar_lea.vmem %s60_s15, 73728  ;;  %p3410_p6 = scmp.lt.s32.totalorder %s60_s15, %s60_s15 }
  0x10   :  { %p3406_p5 = scmp.ne.s32.totalorder %s60_s15, %s3405_s18  ;;  %p3411_p7 = scmp.lt.s32.totalorder %s3405_s18, %s3405_s18 }
  0x12   :  { %p3412_p8 = por %p3411_p7, %p3410_p6 }
  0x14   :  { %p3413_p9 = pnand %p3412_p8, %p3406_p5 }
  0x16   :  { %3416 = shalt.err (!%p3413_p9)
}
  0x17   :  { %s3486_s19 = smov 768   ;;  %s3487_s20 = smov 48  }
  0x18   :  { %65 = dma.hbm_to_vmem [thread:$0]  %s4704_s5, 73728, %s60_s15, [#allocation9], %s3486_s19, %s3486_s19, %s3487_s20  }
  0x19   :  { %s3425_s2 = scalar_lea.vmem %s26_s17, 15360  ;;  %p3430_p11 = scmp.lt.s32.totalorder %s26_s17, %s26_s17 }
  0x1a   :  { %p3426_p10 = scmp.ne.s32.totalorder %s26_s17, %s3425_s2  ;;  %p3431_p12 = scmp.lt.s32.totalorder %s3425_s2, %s3425_s2 }
  0x1c   :  { %p3432_p13 = por %p3431_p12, %p3430_p11 }
  0x1e   :  { %p3433_p0 = pnand %p3432_p13, %p3426_p10 }
  0x20   :  { %3436 = shalt.err (!%p3433_p0)
}
  0x21   :  { %31 = dma.hbm_to_vmem [thread:$0]  %s4700_s1, 15360, %s26_s17, [#allocation4], %s3486_s19, %s3486_s19, %s3487_s20  }
  0x22   :  { %s3488_s25 = smov [#allocation7]   ;;  %s3489_s27 = smov [#allocation10]  }
  0x23   :  { %s50_s26 = sshll.u32 %s3488_s25, 4  ;;  %s72_s28 = sshll.u32 %s3489_s27, 4  ;;  %s51_s26 = int_to_ptr.vmem [resolvable:$true] %s50_s26  ;;  %s73_s28 = int_to_ptr.vmem [resolvable:$true] %s72_s28 }
  0x24   :  { %s3445_s29 = scalar_lea.vmem %s51_s26, 16  ;;  %s3449_s5 = scalar_lea.vmem %s51_s26, 32 }
  0x25   :  { %p3446_p1 = scmp.ne.s32.totalorder %s51_s26, %s3445_s29  ;;  %p3450_p2 = scmp.lt.s32.totalorder %s51_s26, %s51_s26 }
  0x26   :  { %p3451_p3 = scmp.lt.s32.totalorder %s3449_s5, %s3445_s29 }
  0x28   :  { %p3452_p4 = por %p3451_p3, %p3450_p2 }
  0x2a   :  { %p3453_p5 = pnand %p3452_p4, %p3446_p1 }
  0x2c   :  { %3456 = shalt.err (!%p3453_p5)
}
  0x2d   :  { %53 = dma.hbm_to_vmem [thread:$0]  %s4703_s4, 16, %s51_s26, [#allocation6]  }
  0x2e   :  { %s3465_s11 = scalar_lea.vmem %s73_s28, 96  ;;  %p3470_p7 = scmp.lt.s32.totalorder %s73_s28, %s73_s28 }
  0x2f   :  { %p3466_p6 = scmp.ne.s32.totalorder %s73_s28, %s3465_s11  ;;  %p3471_p8 = scmp.lt.s32.totalorder %s3465_s11, %s3465_s11 }
  0x31   :  { %p3472_p9 = por %p3471_p8, %p3470_p7 }
  0x33   :  { %p3473_p10 = pnand %p3472_p9, %p3466_p6 }
  0x35   :  { %3476 = shalt.err (!%p3473_p10)
}
  0x36   :  { %75 = dma.hbm_to_vmem [thread:$0]  %s4705_s6, 96, %s73_s28, [#allocation9]  }
  0x37   :  { %3477 = dma.done.wait [#allocation4], 15360  }
  0x38   :  { %3478 = vsyncadd [#allocation4], 4294951936 }
  0x39   :  { %3479 = dma.done.wait [#allocation6], 112  }
  0x3a   :  { %3480 = vsyncadd [#allocation6], 4294967184 }
  0x3b   :  { %3481 = dma.done.wait [#allocation9], 73824  }
  0x3c   :  { %3482 = vsyncadd [#allocation9], 4294893472  ;;  %vm94_vm0 = vcmask 261120   ;;  %v3490_v0 = vmov 0.0   ;;  %v126_v1 = vld [vmem:[%s4699_s0 + $0x1] sm:$0xff]  ;;  %s3491_s15 = smov 32  }
  0x3d   :  { %93 = vst [vmem:[#allocation2] sm:$0xff] %v3490_v0  ;;  %95 = vst.msk [vmem:[#allocation2 + $0x8] sm:$0xff] %vm94_vm0, %v3490_v0  ;;  %v226_v2 = vld [vmem:[%s4699_s0 + $0x3] sm:$0xff]  ;;  %142 = vrot.lane.b32.xlu0 %v126_v1, %s3491_s15  ;;  %s3492_s16 = smov 96   ;;  %v400_v3 = vld [vmem:[#allocation3 + $0x2d8] sm:$0xff]  ;;  %s3493_s21 = smov 64  }
  0x3e   :  { %96 = vst [vmem:[#allocation2 + $0x10] sm:$0xff] %v3490_v0  ;;  %97 = vst.msk [vmem:[#allocation2 + $0x18] sm:$0xff] %vm94_vm0, %v3490_v0  ;;  %242 = vrot.lane.b32.xlu1 %v226_v2, %s3492_s16  ;;  %v176_v4 = vld [vmem:[%s4699_s0 + $0x2] sm:$0xff]  ;;  %485 = vmatprep.subr.mxu0 %v400_v3  ;;  %v177_v7 = vld [vmem:[%s4699_s0 + $0xa] sm:$0xff]  ;;  %vm291_vm1 = vcmask 257024   ;;  %vm166_vm2 = vcmask 523520  }
  0x3f   :  { %98 = vst [vmem:[#allocation2 + $0x20] sm:$0xff] %v3490_v0  ;;  %99 = vst.msk [vmem:[#allocation2 + $0x28] sm:$0xff] %vm94_vm0, %v3490_v0  ;;  %v127_v5 = vld [vmem:[%s4699_s0 + $0x9] sm:$0xff]  ;;  %v128_v9 = vld [vmem:[%s4699_s0 + $0x11] sm:$0xff]  ;;  %vm216_vm3 = vcmask 785920   ;;  %vm266_vm4 = vcmask 1048320  }
  0x40   :  { %100 = vst [vmem:[#allocation2 + $0x30] sm:$0xff] %v3490_v0  ;;  %101 = vst.msk [vmem:[#allocation2 + $0x38] sm:$0xff] %vm94_vm0, %v3490_v0  ;;  %v402_v6 = vld [vmem:[#allocation3 + $0x2e8] sm:$0xff]  ;;  %v399_v10 = vld [vmem:[#allocation3 + $0x2d0] sm:$0xff]  ;;  %vm174_vm5 = vcmask 522496   ;;  %vm224_vm6 = vcmask 783872  }
  0x41   :  { %102 = vst [vmem:[#allocation2 + $0x40] sm:$0xff] %v3490_v0  ;;  %103 = vst.msk [vmem:[#allocation2 + $0x48] sm:$0xff] %vm94_vm0, %v3490_v0  ;;  %192 = vrot.lane.b32.xlu0 %v176_v4, %s3493_s21  ;;  %v227_v8 = vld [vmem:[%s4699_s0 + $0xb] sm:$0xff]  ;;  %598 = vmatprep.subr.mxu1 %v402_v6  ;;  %v401_v11 = vld [vmem:[#allocation3 + $0x2e0] sm:$0xff]  ;;  %vm274_vm7 = vcmask 1045248   ;;  %vm1261_vm10 = vcmask 1041409  }
  0x42   :  { %104 = vst [vmem:[#allocation2 + $0x50] sm:$0xff] %v3490_v0  ;;  %105 = vst.msk [vmem:[#allocation2 + $0x58] sm:$0xff] %vm94_vm0, %v3490_v0  ;;  %144 = vrot.lane.b32.xlu1 %v127_v5, %s3491_s15  ;;  %v394_v12 = vld [vmem:[#allocation3 + $0x2a8] sm:$0xff]  ;;  %v396_v13 = vld [vmem:[#allocation3 + $0x2b8] sm:$0xff]  ;;  %486 = vmatpush1.msra.mxu0 %v399_v10  ;;  %vm1263_vm12 = vcmask 1042434   ;;  %vm1265_vm13 = vcmask 1043459  }
  0x43   :  { %106 = vst [vmem:[#allocation2 + $0x60] sm:$0xff] %v3490_v0  ;;  %107 = vst.msk [vmem:[#allocation2 + $0x68] sm:$0xff] %vm94_vm0, %v3490_v0  ;;  %v178_v14 = vld [vmem:[%s4699_s0 + $0x12] sm:$0xff]  ;;  %599 = vmatpush1.msra.mxu1 %v401_v11  ;;  %v393_v15 = vld [vmem:[#allocation3 + $0x2a0] sm:$0xff]  ;;  %487 = vmatprep.subr.mxu0 %v394_v12  ;;  %vm3079_vm14 = vcmask 11264   ;;  %s3497_s13 = smov 126  }
  0x44   :  { %108 = vst [vmem:[#allocation2 + $0x70] sm:$0xff] %v3490_v0  ;;  %109 = vst.msk [vmem:[#allocation2 + $0x78] sm:$0xff] %vm94_vm0, %v3490_v0  ;;  %v395_v16 = vld [vmem:[#allocation3 + $0x2b0] sm:$0xff]  ;;  %600 = vmatprep.subr.mxu1 %v396_v13  ;;  %v388_v17 = vld [vmem:[#allocation3 + $0x278] sm:$0xff]  ;;  %488 = vmatpush1.msra.mxu0 %v393_v15 }
  0x45   :  { %194 = vrot.lane.b32.xlu0 %v177_v7, %s3493_s21  ;;  %v390_v18 = vld [vmem:[#allocation3 + $0x288] sm:$0xff]  ;;  %601 = vmatpush1.msra.mxu1 %v395_v16  ;;  %v387_v19 = vld [vmem:[#allocation3 + $0x270] sm:$0xff]  ;;  %v389_v20 = vld [vmem:[#allocation3 + $0x280] sm:$0xff] }
  0x46   :  { %244 = vrot.lane.b32.xlu1 %v227_v8, %s3492_s16  ;;  %v382_v21 = vld [vmem:[#allocation3 + $0x248] sm:$0xff]  ;;  %v384_v22 = vld [vmem:[#allocation3 + $0x258] sm:$0xff]  ;;  %489 = vmatprep.subr.mxu0 %v388_v17  ;;  %v381_v25 = vld [vmem:[#allocation3 + $0x240] sm:$0xff] }
  0x47   :  { %v228_v23 = vld [vmem:[%s4699_s0 + $0x13] sm:$0xff]  ;;  %602 = vmatprep.subr.mxu1 %v390_v18  ;;  %490 = vmatpush1.msra.mxu0 %v387_v19  ;;  %v378_v28 = vld [vmem:[#allocation3 + $0x228] sm:$0xff]  ;;  %v377_v30 = vld [vmem:[#allocation3 + $0x220] sm:$0xff] }
  0x48   :  { %v129_v24 = vld [vmem:[%s4699_s0 + $0x19] sm:$0xff]  ;;  %603 = vmatpush1.msra.mxu1 %v389_v20  ;;  %v383_v26 = vld [vmem:[#allocation3 + $0x250] sm:$0xff]  ;;  %491 = vmatprep.subr.mxu0 %v382_v21  ;;  %v370_v33 = vld [vmem:[#allocation3 + $0x1e8] sm:$0xff] }
  0x49   :  { %146 = vrot.lane.b32.xlu0 %v128_v9, %s3491_s15  ;;  %604 = vmatprep.subr.mxu1 %v384_v22  ;;  %v376_v27 = vld [vmem:[#allocation3 + $0x218] sm:$0xff]  ;;  %v375_v29 = vld [vmem:[#allocation3 + $0x210] sm:$0xff]  ;;  %v369_v35 = vld [vmem:[#allocation3 + $0x1e0] sm:$0xff] }
  0x4a   :  { %196 = vrot.lane.b32.xlu1 %v178_v14, %s3493_s21  ;;  %v179_v31 = vld [vmem:[%s4699_s0 + $0x1a] sm:$0xff]  ;;  %492 = vmatpush1.msra.mxu0 %v381_v25  ;;  %v371_v36 = vld [vmem:[#allocation3 + $0x1f0] sm:$0xff]  ;;  %v366_v38 = vld [vmem:[#allocation3 + $0x1c8] sm:$0xff] }
  0x4b   :  { %v229_v32 = vld [vmem:[%s4699_s0 + $0x1b] sm:$0xff]  ;;  %605 = vmatpush1.msra.mxu1 %v383_v26  ;;  %493 = vmatprep.subr.mxu0 %v376_v27  ;;  %v363_v41 = vld [vmem:[#allocation3 + $0x1b0] sm:$0xff]  ;;  %v358_v43 = vld [vmem:[#allocation3 + $0x188] sm:$0xff] }
  0x4c   :  { %606 = vmatprep.subr.mxu1 %v378_v28  ;;  %v372_v34 = vld [vmem:[#allocation3 + $0x1f8] sm:$0xff]  ;;  %494 = vmatpush1.msra.mxu0 %v375_v29  ;;  %v130_v39 = vld [vmem:[%s4699_s0 + $0x21] sm:$0xff]  ;;  %v359_v46 = vld [vmem:[#allocation3 + $0x190] sm:$0xff] }
  0x4d   :  { %246 = vrot.lane.b32.xlu0 %v228_v23, %s3492_s16  ;;  %607 = vmatpush1.msra.mxu1 %v377_v30  ;;  %v364_v37 = vld [vmem:[#allocation3 + $0x1b8] sm:$0xff]  ;;  %v180_v40 = vld [vmem:[%s4699_s0 + $0x22] sm:$0xff]  ;;  %v351_v52 = vld [vmem:[#allocation3 + $0x150] sm:$0xff] }
  0x4e   :  { %148 = vrot.lane.b32.xlu1 %v129_v24, %s3491_s15  ;;  %495 = vmatprep.subr.mxu0 %v370_v33  ;;  %v365_v42 = vld [vmem:[#allocation3 + $0x1c0] sm:$0xff]  ;;  %v360_v44 = vld [vmem:[#allocation3 + $0x198] sm:$0xff]  ;;  %v131_v48 = vld [vmem:[%s4699_s0 + $0x29] sm:$0xff] }
  0x4f   :  { %608 = vmatprep.subr.mxu1 %v372_v34  ;;  %496 = vmatpush1.msra.mxu0 %v369_v35  ;;  %v357_v45 = vld [vmem:[#allocation3 + $0x180] sm:$0xff]  ;;  %v352_v50 = vld [vmem:[#allocation3 + $0x158] sm:$0xff]  ;;  %v354_v51 = vld [vmem:[#allocation3 + $0x168] sm:$0xff] }
  0x50   :  { %609 = vmatpush1.msra.mxu1 %v371_v36  ;;  %497 = vmatprep.subr.mxu0 %v364_v37  ;;  %v230_v47 = vld [vmem:[%s4699_s0 + $0x23] sm:$0xff]  ;;  %v348_v55 = vld [vmem:[#allocation3 + $0x138] sm:$0xff]  ;;  %v231_v58 = vld [vmem:[%s4699_s0 + $0x2b] sm:$0xff] }
  0x51   :  { %198 = vrot.lane.b32.xlu0 %v179_v31, %s3493_s21  ;;  %610 = vmatprep.subr.mxu1 %v366_v38  ;;  %v110_v49 = vld [vmem:[%s4699_s0] sm:$0xff]  ;;  %v346_v54 = vld [vmem:[#allocation3 + $0x128] sm:$0xff]  ;;  %v347_v60 = vld [vmem:[#allocation3 + $0x130] sm:$0xff] }
  0x52   :  { %248 = vrot.lane.b32.xlu1 %v229_v32, %s3492_s16  ;;  %498 = vmatpush1.msra.mxu0 %v363_v41  ;;  %118 = vst.msk [vmem:[#allocation2] sm:$0xff] %vm94_vm0, %v110_v49  ;;  %v353_v53 = vld [vmem:[#allocation3 + $0x160] sm:$0xff]  ;;  %v111_v56 = vld [vmem:[%s4699_s0 + $0x8] sm:$0xff]  ;;  %v340_v61 = vld [vmem:[#allocation3 + $0xf8] sm:$0xff] }
  0x53   :  { %611 = vmatpush1.msra.mxu1 %v365_v42  ;;  %499 = vmatprep.subr.mxu0 %v358_v43  ;;  %v181_v57 = vld [vmem:[%s4699_s0 + $0x2a] sm:$0xff]  ;;  %119 = vst.msk [vmem:[#allocation2 + $0x10] sm:$0xff] %vm94_vm0, %v111_v56  ;;  %v345_v59 = vld [vmem:[#allocation3 + $0x120] sm:$0xff]  ;;  %v182_v2 = vld [vmem:[%s4699_s0 + $0x32] sm:$0xff] }
  0x54   :  { %612 = vmatprep.subr.mxu1 %v360_v44  ;;  %500 = vmatpush1.msra.mxu0 %v357_v45  ;;  %v342_v62 = vld [vmem:[#allocation3 + $0x108] sm:$0xff]  ;;  %v132_v63 = vld [vmem:[%s4699_s0 + $0x31] sm:$0xff]  ;;  %v341_v1 = vld [vmem:[#allocation3 + $0x100] sm:$0xff] }
  0x55   :  { %150 = vrot.lane.b32.xlu0 %v130_v39, %s3491_s15  ;;  %613 = vmatpush1.msra.mxu1 %v359_v46  ;;  %v339_v0 = vld [vmem:[#allocation3 + $0xf0] sm:$0xff]  ;;  %v334_v3 = vld [vmem:[#allocation3 + $0xc8] sm:$0xff]  ;;  %v336_v5 = vld [vmem:[#allocation3 + $0xd8] sm:$0xff] }
  0x56   :  { %200 = vrot.lane.b32.xlu1 %v180_v40, %s3493_s21  ;;  %501 = vmatprep.subr.mxu0 %v352_v50  ;;  %v112_v4 = vld [vmem:[%s4699_s0 + $0x10] sm:$0xff]  ;;  %v333_v6 = vld [vmem:[#allocation3 + $0xc0] sm:$0xff]  ;;  %v113_v9 = vld [vmem:[%s4699_s0 + $0x18] sm:$0xff] }
  0x57   :  { %614 = vmatprep.subr.mxu1 %v354_v51  ;;  %502 = vmatpush1.msra.mxu0 %v351_v52  ;;  %120 = vst.msk [vmem:[#allocation2 + $0x20] sm:$0xff] %vm94_vm0, %v112_v4  ;;  %v276_v7 = vld [vmem:[%s4699_s0 + $0x4] sm:$0xff]  ;;  %v335_v8 = vld [vmem:[#allocation3 + $0xd0] sm:$0xff]  ;;  %v328_v11 = vld [vmem:[#allocation3 + $0x98] sm:$0xff] }
  0x58   :  { %615 = vmatpush1.msra.mxu1 %v353_v53  ;;  %503 = vmatprep.subr.mxu0 %v346_v54  ;;  %284 = vst.msk [vmem:[#allocation2 + $0x8] sm:$0xff] %vm94_vm0, %v276_v7  ;;  %v277_v10 = vld [vmem:[%s4699_s0 + $0xc] sm:$0xff]  ;;  %121 = vst.msk [vmem:[#allocation2 + $0x30] sm:$0xff] %vm94_vm0, %v113_v9  ;;  %v133_v14 = vld [vmem:[%s4699_s0 + $0x39] sm:$0x7f] }
  0x59   :  { %250 = vrot.lane.b32.xlu0 %v230_v47, %s3492_s16  ;;  %616 = vmatprep.subr.mxu1 %v348_v55  ;;  %v330_v12 = vld [vmem:[#allocation3 + $0xa8] sm:$0xff]  ;;  %285 = vst.msk [vmem:[#allocation2 + $0x18] sm:$0xff] %vm94_vm0, %v277_v10  ;;  %v232_v13 = vld [vmem:[%s4699_s0 + $0x33] sm:$0xff]  ;;  %v114_v15 = vld [vmem:[%s4699_s0 + $0x20] sm:$0xff] }
  0x5a   :  { %152 = vrot.lane.b32.xlu1 %v131_v48, %s3491_s15  ;;  %504 = vmatpush1.msra.mxu0 %v345_v59  ;;  %v327_v16 = vld [vmem:[#allocation3 + $0x90] sm:$0xff]  ;;  %v329_v17 = vld [vmem:[#allocation3 + $0xa0] sm:$0xff]  ;;  %122 = vst.msk [vmem:[#allocation2 + $0x40] sm:$0xff] %vm94_vm0, %v114_v15  ;;  %v322_v19 = vld [vmem:[#allocation3 + $0x68] sm:$0xff] }
  0x5b   :  { %617 = vmatpush1.msra.mxu1 %v347_v60  ;;  %505 = vmatprep.subr.mxu0 %v340_v61  ;;  %v278_v18 = vld [vmem:[%s4699_s0 + $0x14] sm:$0xff]  ;;  %v321_v21 = vld [vmem:[#allocation3 + $0x60] sm:$0xff]  ;;  %v115_v23 = vld [vmem:[%s4699_s0 + $0x28] sm:$0xff] }
  0x5c   :  { %618 = vmatprep.subr.mxu1 %v342_v62  ;;  %506 = vmatpush1.msra.mxu0 %v339_v0  ;;  %v324_v20 = vld [vmem:[#allocation3 + $0x78] sm:$0xff]  ;;  %286 = vst.msk [vmem:[#allocation2 + $0x28] sm:$0xff] %vm94_vm0, %v278_v18  ;;  %v323_v22 = vld [vmem:[#allocation3 + $0x70] sm:$0xff]  ;;  %123 = vst.msk [vmem:[#allocation2 + $0x50] sm:$0xff] %vm94_vm0, %v115_v23 }
  0x5d   :  { %202 = vrot.lane.b32.xlu0 %v181_v57, %s3493_s21  ;;  %619 = vmatpush1.msra.mxu1 %v341_v1  ;;  %v279_v24 = vld [vmem:[%s4699_s0 + $0x1c] sm:$0xff]  ;;  %v318_v28 = vld [vmem:[#allocation3 + $0x48] sm:$0xff]  ;;  %v315_v29 = vld [vmem:[#allocation3 + $0x30] sm:$0xff] }
  0x5e   :  { %252 = vrot.lane.b32.xlu1 %v231_v58, %s3492_s16  ;;  %507 = vmatprep.subr.mxu0 %v334_v3  ;;  %v183_v25 = vld [vmem:[%s4699_s0 + $0x3a] sm:$0x3f]  ;;  %287 = vst.msk [vmem:[#allocation2 + $0x38] sm:$0xff] %vm94_vm0, %v279_v24  ;;  %v317_v30 = vld [vmem:[#allocation3 + $0x40] sm:$0xff]  ;;  %v116_v31 = vld [vmem:[%s4699_s0 + $0x30] sm:$0xff] }
  0x5f   :  { %620 = vmatprep.subr.mxu1 %v336_v5  ;;  %508 = vmatpush1.msra.mxu0 %v333_v6  ;;  %v233_v26 = vld [vmem:[%s4699_s0 + $0x3b] sm:$0x1f]  ;;  %v310_v32 = vld [vmem:[#allocation3 + $0x8] sm:$0xff]  ;;  %124 = vst.msk [vmem:[#allocation2 + $0x60] sm:$0xff] %vm94_vm0, %v116_v31  ;;  %v309_v35 = vld [vmem:[#allocation3] sm:$0xff] }
  0x60   :  { %621 = vmatpush1.msra.mxu1 %v335_v8  ;;  %509 = vmatprep.subr.mxu0 %v328_v11  ;;  %v316_v27 = vld [vmem:[#allocation3 + $0x38] sm:$0xff]  ;;  %v280_v34 = vld [vmem:[%s4699_s0 + $0x24] sm:$0xff]  ;;  %v311_v36 = vld [vmem:[#allocation3 + $0x10] sm:$0xff] }
  0x61   :  { %154 = vrot.lane.b32.xlu0 %v132_v63, %s3491_s15  ;;  %622 = vmatprep.subr.mxu1 %v330_v12  ;;  %v312_v33 = vld [vmem:[#allocation3 + $0x18] sm:$0xff]  ;;  %288 = vst.msk [vmem:[#allocation2 + $0x48] sm:$0xff] %vm94_vm0, %v280_v34  ;;  %v426_v38 = vld [vmem:[#allocation3 + $0x3a8] sm:$0xff]  ;;  %v423_v41 = vld [vmem:[#allocation3 + $0x390] sm:$0xff] }
  0x62   :  { %204 = vrot.lane.b32.xlu1 %v182_v2, %s3493_s21  ;;  %510 = vmatpush1.msra.mxu0 %v327_v16  ;;  %v424_v37 = vld [vmem:[#allocation3 + $0x398] sm:$0xff]  ;;  %v281_v40 = vld [vmem:[%s4699_s0 + $0x2c] sm:$0xff]  ;;  %v425_v42 = vld [vmem:[#allocation3 + $0x3a0] sm:$0xff] }
  0x63   :  { %623 = vmatpush1.msra.mxu1 %v329_v17  ;;  %511 = vmatprep.subr.mxu0 %v322_v19  ;;  %v117_v39 = vld [vmem:[%s4699_s0 + $0x38] sm:$0xff]  ;;  %289 = vst.msk [vmem:[#allocation2 + $0x58] sm:$0xff] %vm94_vm0, %v281_v40  ;;  %v418_v43 = vld [vmem:[#allocation3 + $0x368] sm:$0xff]  ;;  %v417_v45 = vld [vmem:[#allocation3 + $0x360] sm:$0xff] }
  0x64   :  { %624 = vmatprep.subr.mxu1 %v324_v20  ;;  %512 = vmatpush1.msra.mxu0 %v321_v21  ;;  %125 = vst.msk [vmem:[#allocation2 + $0x70] sm:$0xff] %vm94_vm0, %v117_v39  ;;  %v420_v44 = vld [vmem:[#allocation3 + $0x378] sm:$0xff]  ;;  %v419_v46 = vld [vmem:[#allocation3 + $0x370] sm:$0xff]  ;;  %v414_v49 = vld [vmem:[#allocation3 + $0x348] sm:$0xff] }
  0x65   :  { %254 = vrot.lane.b32.xlu0 %v232_v13, %s3492_s16  ;;  %625 = vmatpush1.msra.mxu1 %v323_v22  ;;  %v282_v47 = vld [vmem:[%s4699_s0 + $0x34] sm:$0xff]  ;;  %v413_v51 = vld [vmem:[#allocation3 + $0x340] sm:$0xff]  ;;  %v283_v52 = vld [vmem:[%s4699_s0 + $0x3c] sm:$0xf] }
  0x66   :  { %156 = vrot.lane.b32.xlu1 %v133_v14, %s3491_s15  ;;  %513 = vmatprep.subr.mxu0 %v316_v27  ;;  %v412_v48 = vld [vmem:[#allocation3 + $0x338] sm:$0xff]  ;;  %290 = vst.msk [vmem:[#allocation2 + $0x68] sm:$0xff] %vm94_vm0, %v282_v47  ;;  %v411_v50 = vld [vmem:[#allocation3 + $0x330] sm:$0xff]  ;;  %v406_v53 = vld [vmem:[#allocation3 + $0x308] sm:$0xff] }
  0x67   :  { %626 = vmatprep.subr.mxu1 %v318_v28  ;;  %514 = vmatpush1.msra.mxu0 %v315_v29  ;;  %v408_v54 = vld [vmem:[#allocation3 + $0x318] sm:$0xff]  ;;  %292 = vst.msk [vmem:[#allocation2 + $0x78] sm:$0xf] %vm291_vm1, %v283_v52  ;;  %v405_v55 = vld [vmem:[#allocation3 + $0x300] sm:$0xff]  ;;  %v407_v56 = vld [vmem:[#allocation3 + $0x310] sm:$0xff] }
  0x68   :  { %627 = vmatpush1.msra.mxu1 %v317_v30  ;;  %515 = vmatprep.subr.mxu0 %v310_v32  ;;  %v3730_v57 = vld [vmem:[#allocation2 + $0x8] sm:$0xff]  ;;  %v404_v58 = vld [vmem:[#allocation3 + $0x2f8] sm:$0xff]  ;;  %v403_v5 = vld [vmem:[#allocation3 + $0x2f0] sm:$0xff] }
  0x69   :  { %206 = vrot.lane.b32.xlu0 %v183_v25, %s3493_s21  ;;  %628 = vmatprep.subr.mxu1 %v312_v33  ;;  %v3742_v3 = vld [vmem:[#allocation2 + $0x18] sm:$0xff]  ;;  %v398_v6 = vld [vmem:[#allocation3 + $0x2c8] sm:$0xff]  ;;  %v397_v9 = vld [vmem:[#allocation3 + $0x2c0] sm:$0xff] }
  0x6a   :  { %256 = vrot.lane.b32.xlu1 %v233_v26, %s3492_s16  ;;  %516 = vmatpush1.msra.mxu0 %v309_v35  ;;  %v3754_v10 = vld [vmem:[#allocation2 + $0x28] sm:$0xff]  ;;  %v392_v12 = vld [vmem:[#allocation3 + $0x298] sm:$0xff]  ;;  %v391_v13 = vld [vmem:[#allocation3 + $0x290] sm:$0xff] }
  0x6b   :  { %629 = vmatpush1.msra.mxu1 %v311_v36  ;;  %541 = vmatprep.subr.mxu0 %v424_v37  ;;  %v386_v14 = vld [vmem:[#allocation3 + $0x268] sm:$0xff]  ;;  %v385_v17 = vld [vmem:[#allocation3 + $0x260] sm:$0xff]  ;;  %v380_v18 = vld [vmem:[#allocation3 + $0x238] sm:$0xff] }
  0x6c   :  { %654 = vmatprep.subr.mxu1 %v426_v38  ;;  %542 = vmatpush2.msra.mxu0 %v423_v41  ;;  %v379_v19 = vld [vmem:[#allocation3 + $0x230] sm:$0xff]  ;;  %v3768_v20 = vld [vmem:[#allocation2 + $0x38] sm:$0xff]  ;;  %v374_v24 = vld [vmem:[#allocation3 + $0x208] sm:$0xff] }
  0x6d   :  { %655 = vmatpush2.msra.mxu1 %v425_v42  ;;  %543 = vmatprep.subr.mxu0 %v418_v43  ;;  %v373_v25 = vld [vmem:[#allocation3 + $0x200] sm:$0xff]  ;;  %v368_v26 = vld [vmem:[#allocation3 + $0x1d8] sm:$0xff]  ;;  %v367_v29 = vld [vmem:[#allocation3 + $0x1d0] sm:$0xff] }
  0x6e   :  { %656 = vmatprep.subr.mxu1 %v420_v44  ;;  %544 = vmatpush2.msra.mxu0 %v417_v45  ;;  %v3780_v30 = vld [vmem:[#allocation2 + $0x48] sm:$0xff]  ;;  %v361_v33 = vld [vmem:[#allocation3 + $0x1a0] sm:$0xff]  ;;  %v356_v34 = vld [vmem:[#allocation3 + $0x178] sm:$0xff] }
  0x6f   :  { %657 = vmatpush2.msra.mxu1 %v419_v46  ;;  %545 = vmatprep.subr.mxu0 %v412_v48  ;;  %v362_v32 = vld [vmem:[#allocation3 + $0x1a8] sm:$0xff]  ;;  %v355_v37 = vld [vmem:[#allocation3 + $0x170] sm:$0xff]  ;;  %v349_v39 = vld [vmem:[#allocation3 + $0x140] sm:$0xff] }
  0x70   :  { %658 = vmatprep.subr.mxu1 %v414_v49  ;;  %546 = vmatpush2.msra.mxu0 %v411_v50  ;;  %v350_v38 = vld [vmem:[#allocation3 + $0x148] sm:$0xff]  ;;  %v3794_v40 = vld [vmem:[#allocation2 + $0x58] sm:$0xff]  ;;  %v343_v45 = vld [vmem:[#allocation3 + $0x110] sm:$0xff] }
  0x71   :  { %659 = vmatpush2.msra.mxu1 %v413_v51  ;;  %547 = vmatprep.subr.mxu0 %v406_v53  ;;  %v344_v44 = vld [vmem:[#allocation3 + $0x118] sm:$0xff]  ;;  %v338_v46 = vld [vmem:[#allocation3 + $0xe8] sm:$0xff]  ;;  %v337_v47 = vld [vmem:[#allocation3 + $0xe0] sm:$0xff] }
  0x72   :  { %660 = vmatprep.subr.mxu1 %v408_v54  ;;  %548 = vmatpush2.msra.mxu0 %v405_v55  ;;  %v332_v50 = vld [vmem:[#allocation3 + $0xb8] sm:$0xff]  ;;  %v331_v52 = vld [vmem:[#allocation3 + $0xb0] sm:$0xff]  ;;  %v3809_v53 = vld [vmem:[#allocation2 + $0x68] sm:$0xff] }
  0x73   :  { %661 = vmatpush2.msra.mxu1 %v407_v56  ;;  %3106 = vmatprep.mubr.msk.f32.mxu0 %vm94_vm0, %v3730_v57  ;;  %v326_v54 = vld [vmem:[#allocation3 + $0x88] sm:$0xff]  ;;  %v325_v55 = vld [vmem:[#allocation3 + $0x80] sm:$0xff] }
  0x74   :  { %3114 = vmatprep.mubr.msk.f32.mxu1 %vm94_vm0, %v3730_v57  ;;  %711 = vmatprep.subr.mxu0 %v404_v58 }
  0xaf   :  { %v143_v59 = vpop.permute.xlu0 %142 }
  0xb0   :  { %v243_v60 = vpop.permute.xlu1 %242  ;;  %167 = vst.msk [vmem:[#allocation2] sm:$0xff] %vm166_vm2, %v143_v59  ;;  %v320_v59 = vld [vmem:[#allocation3 + $0x58] sm:$0xff] }
  0xb3   :  { %v193_v61 = vpop.permute.xlu0 %192 }
  0xb4   :  { %v145_v62 = vpop.permute.xlu1 %144  ;;  %217 = vst.msk [vmem:[#allocation2] sm:$0xff] %vm216_vm3, %v193_v61  ;;  %v314_v61 = vld [vmem:[#allocation3 + $0x28] sm:$0xff] }
  0xb5   :  { %168 = vst.msk [vmem:[#allocation2 + $0x10] sm:$0xff] %vm166_vm2, %v145_v62  ;;  %v313_v62 = vld [vmem:[#allocation3 + $0x20] sm:$0xff] }
  0xb6   :  { %267 = vst.msk [vmem:[#allocation2] sm:$0xff] %vm266_vm4, %v243_v60  ;;  %v319_v60 = vld [vmem:[#allocation3 + $0x50] sm:$0xff] }
  0xb7   :  { %v195_v63 = vpop.permute.xlu0 %194 }
  0xb8   :  { %v245_v0 = vpop.permute.xlu1 %244  ;;  %218 = vst.msk [vmem:[#allocation2 + $0x10] sm:$0xff] %vm216_vm3, %v195_v63 }
  0xb9   :  { %268 = vst.msk [vmem:[#allocation2 + $0x10] sm:$0xff] %vm266_vm4, %v245_v0  ;;  %v428_v0 = vld [vmem:[#allocation3 + $0x3b8] sm:$0xff] }
  0xbb   :  { %v147_v1 = vpop.permute.xlu0 %146 }
  0xbc   :  { %v197_v2 = vpop.permute.xlu1 %196  ;;  %169 = vst.msk [vmem:[#allocation2 + $0x20] sm:$0xff] %vm166_vm2, %v147_v1  ;;  %v308_v1 = vld [vmem:[#allocation2 + $0x78] sm:$0xff] }
  0xbd   :  { %v3745_v4 = vld [vmem:[#allocation2] sm:$0xff]  ;;  %219 = vst.msk [vmem:[#allocation2 + $0x20] sm:$0xff] %vm216_vm3, %v197_v2  ;;  %v427_v2 = vld [vmem:[#allocation3 + $0x3b0] sm:$0xff] }
  0xbe   :  { %550 = vmatmul.mubr.f32.vlgmr.msra.gmra.mxu0 %v3745_v4  ;;  %663 = vmatmul.mubr.f32.vlgmr.msra.gmra.mxu1 %v3745_v4 }
  0xbf   :  { %3107 = vmatprep.mubr.msk.f32.mxu0 %vm94_vm0, %v3742_v3  ;;  %3115 = vmatprep.mubr.msk.f32.mxu1 %vm94_vm0, %v3742_v3  ;;  %v247_v7 = vpop.permute.xlu0 %246 }
  0xc0   :  { %v149_v8 = vpop.permute.xlu1 %148  ;;  %712 = vmatpush1.msra.mxu0 %v403_v5  ;;  %269 = vst.msk [vmem:[#allocation2 + $0x20] sm:$0xff] %vm266_vm4, %v247_v7  ;;  %v3758_v11 = vld [vmem:[#allocation2 + $0x10] sm:$0xff]  ;;  %v422_v5 = vld [vmem:[#allocation3 + $0x388] sm:$0xff]  ;;  %v416_v7 = vld [vmem:[#allocation3 + $0x358] sm:$0xff] }
  0xc1   :  { %170 = vst.msk [vmem:[#allocation2 + $0x30] sm:$0xff] %vm166_vm2, %v149_v8  ;;  %713 = vmatprep.subr.mxu0 %v398_v6  ;;  %v421_v6 = vld [vmem:[#allocation3 + $0x380] sm:$0xff] }
  0xc2   :  { %556 = vmatmul.mubr.f32.gmra.mxu0 %v3758_v11  ;;  %669 = vmatmul.mubr.f32.gmra.mxu1 %v3758_v11 }
  0xc3   :  { %714 = vmatpush1.msra.mxu0 %v397_v9  ;;  %3108 = vmatprep.mubr.msk.f32.mxu0 %vm94_vm0, %v3754_v10  ;;  %v199_v15 = vpop.permute.xlu0 %198  ;;  %v415_v9 = vld [vmem:[#allocation3 + $0x350] sm:$0xff] }
  0xc4   :  { %v249_v16 = vpop.permute.xlu1 %248  ;;  %715 = vmatprep.subr.mxu0 %v392_v12  ;;  %3116 = vmatprep.mubr.msk.f32.mxu1 %vm94_vm0, %v3754_v10  ;;  %220 = vst.msk [vmem:[#allocation2 + $0x30] sm:$0xff] %vm216_vm3, %v199_v15  ;;  %v410_v12 = vld [vmem:[#allocation3 + $0x328] sm:$0xff]  ;;  %v1162_v15 = vld [vmem:[%s4702_s3 + $0xe0] sm:$0xff] }
  0xc5   :  { %716 = vmatpush1.msra.mxu0 %v391_v13  ;;  %270 = vst.msk [vmem:[#allocation2 + $0x30] sm:$0xff] %vm266_vm4, %v249_v16  ;;  %v409_v13 = vld [vmem:[#allocation3 + $0x320] sm:$0xff] }
  0xc6   :  { %717 = vmatprep.subr.mxu0 %v386_v14  ;;  %v1147_v14 = vld [vmem:[%s4702_s3 + $0x68] sm:$0xff]  ;;  %v1146_v16 = vld [vmem:[%s4702_s3 + $0x60] sm:$0xff] }
  0xc7   :  { %718 = vmatpush1.msra.mxu0 %v385_v17  ;;  %v151_v21 = vpop.permute.xlu0 %150  ;;  %v3770_v23 = vld [vmem:[#allocation2 + $0x20] sm:$0xff]  ;;  %v1161_v17 = vld [vmem:[%s4702_s3 + $0xd8] sm:$0xff] }
  0xc8   :  { %v201_v22 = vpop.permute.xlu1 %200  ;;  %719 = vmatprep.subr.mxu0 %v380_v18  ;;  %171 = vst.msk [vmem:[#allocation2 + $0x40] sm:$0xff] %vm166_vm2, %v151_v21  ;;  %562 = vmatmul.mubr.f32.gmra.mxu0 %v3770_v23  ;;  %v1145_v18 = vld [vmem:[%s4702_s3 + $0x58] sm:$0xff]  ;;  %v1159_v21 = vld [vmem:[%s4702_s3 + $0xc8] sm:$0xff] }
  0xc9   :  { %675 = vmatmul.mubr.f32.gmra.mxu1 %v3770_v23  ;;  %221 = vst.msk [vmem:[#allocation2 + $0x40] sm:$0xff] %vm216_vm3, %v201_v22  ;;  %720 = vmatpush1.msra.mxu0 %v379_v19  ;;  %v1160_v19 = vld [vmem:[%s4702_s3 + $0xd0] sm:$0xff]  ;;  %v1143_v22 = vld [vmem:[%s4702_s3 + $0x48] sm:$0xff] }
  0xca   :  { %3109 = vmatprep.mubr.msk.f32.mxu0 %vm94_vm0, %v3768_v20  ;;  %721 = vmatprep.subr.mxu0 %v374_v24  ;;  %v1142_v24 = vld [vmem:[%s4702_s3 + $0x40] sm:$0xff] }
  0xcb   :  { %3117 = vmatprep.mubr.msk.f32.mxu1 %vm94_vm0, %v3768_v20  ;;  %v251_v27 = vpop.permute.xlu0 %250  ;;  %722 = vmatpush1.msra.mxu0 %v373_v25  ;;  %v1157_v25 = vld [vmem:[%s4702_s3 + $0xb8] sm:$0xff] }
  0xcc   :  { %v153_v28 = vpop.permute.xlu1 %152  ;;  %271 = vst.msk [vmem:[#allocation2 + $0x40] sm:$0xff] %vm266_vm4, %v251_v27  ;;  %v3784_v31 = vld [vmem:[#allocation2 + $0x30] sm:$0xff]  ;;  %723 = vmatprep.subr.mxu0 %v368_v26  ;;  %v1141_v26 = vld [vmem:[%s4702_s3 + $0x38] sm:$0xff] }
  0xcd   :  { %172 = vst.msk [vmem:[#allocation2 + $0x50] sm:$0xff] %vm166_vm2, %v153_v28  ;;  %568 = vmatmul.mubr.f32.gmra.mxu0 %v3784_v31  ;;  %681 = vmatmul.mubr.f32.gmra.mxu1 %v3784_v31  ;;  %v1156_v27 = vld [vmem:[%s4702_s3 + $0xb0] sm:$0xff] }
  0xce   :  { %724 = vmatpush1.msra.mxu0 %v367_v29  ;;  %3110 = vmatprep.mubr.msk.f32.mxu0 %vm94_vm0, %v3780_v30  ;;  %v1140_v28 = vld [vmem:[%s4702_s3 + $0x30] sm:$0xff]  ;;  %v1155_v29 = vld [vmem:[%s4702_s3 + $0xa8] sm:$0xff] }
  0xcf   :  { %v203_v35 = vpop.permute.xlu0 %202  ;;  %725 = vmatprep.subr.mxu0 %v362_v32  ;;  %3118 = vmatprep.mubr.msk.f32.mxu1 %vm94_vm0, %v3780_v30  ;;  %v1138_v32 = vld [vmem:[%s4702_s3 + $0x20] sm:$0xff] }
  0xd0   :  { %v253_v36 = vpop.permute.xlu1 %252  ;;  %222 = vst.msk [vmem:[#allocation2 + $0x50] sm:$0xff] %vm216_vm3, %v203_v35  ;;  %726 = vmatpush1.msra.mxu0 %v361_v33  ;;  %v1153_v33 = vld [vmem:[%s4702_s3 + $0x98] sm:$0xff]  ;;  %v1152_v35 = vld [vmem:[%s4702_s3 + $0x90] sm:$0xff] }
  0xd1   :  { %272 = vst.msk [vmem:[#allocation2 + $0x50] sm:$0xff] %vm266_vm4, %v253_v36  ;;  %727 = vmatprep.subr.mxu0 %v356_v34  ;;  %v1137_v34 = vld [vmem:[%s4702_s3 + $0x18] sm:$0xff]  ;;  %v1136_v36 = vld [vmem:[%s4702_s3 + $0x10] sm:$0xff] }
  0xd2   :  { %728 = vmatpush1.msra.mxu0 %v355_v37  ;;  %v1151_v37 = vld [vmem:[%s4702_s3 + $0x88] sm:$0xff] }
  0xd3   :  { %v155_v41 = vpop.permute.xlu0 %154  ;;  %729 = vmatprep.subr.mxu0 %v350_v38  ;;  %v3796_v43 = vld [vmem:[#allocation2 + $0x40] sm:$0xff]  ;;  %v1135_v38 = vld [vmem:[%s4702_s3 + $0x8] sm:$0xff] }
  0xd4   :  { %v205_v42 = vpop.permute.xlu1 %204  ;;  %173 = vst.msk [vmem:[#allocation2 + $0x60] sm:$0xff] %vm166_vm2, %v155_v41  ;;  %574 = vmatmul.mubr.f32.gmra.mxu0 %v3796_v43  ;;  %687 = vmatmul.mubr.f32.gmra.mxu1 %v3796_v43  ;;  %v1197_v41 = vld [vmem:[%s4702_s3 + $0x1f8] sm:$0xff] }
  0xd5   :  { %223 = vst.msk [vmem:[#allocation2 + $0x60] sm:$0xff] %vm216_vm3, %v205_v42  ;;  %730 = vmatpush1.msra.mxu0 %v349_v39  ;;  %3111 = vmatprep.mubr.msk.f32.mxu0 %vm94_vm0, %v3794_v40  ;;  %v1150_v39 = vld [vmem:[%s4702_s3 + $0x80] sm:$0xff]  ;;  %v1229_v42 = vld [vmem:[%s4702_s3 + $0x2f8] sm:$0xff] }
  0xd6   :  { %731 = vmatprep.subr.mxu0 %v344_v44  ;;  %3119 = vmatprep.mubr.msk.f32.mxu1 %vm94_vm0, %v3794_v40  ;;  %v1228_v44 = vld [vmem:[%s4702_s3 + $0x2f0] sm:$0xff] }
  0xd7   :  { %732 = vmatpush1.msra.mxu0 %v343_v45  ;;  %v255_v48 = vpop.permute.xlu0 %254  ;;  %v1212_v45 = vld [vmem:[%s4702_s3 + $0x270] sm:$0xff] }
  0xd8   :  { %v157_v49 = vpop.permute.xlu1 %156  ;;  %273 = vst.msk [vmem:[#allocation2 + $0x60] sm:$0xff] %vm266_vm4, %v255_v48  ;;  %733 = vmatprep.subr.mxu0 %v338_v46  ;;  %v3807_v51 = vld [vmem:[#allocation2 + $0x50] sm:$0xff]  ;;  %v1227_v46 = vld [vmem:[%s4702_s3 + $0x2e8] sm:$0xff]  ;;  %v1226_v48 = vld [vmem:[%s4702_s3 + $0x2e0] sm:$0xff] }
  0xd9   :  { %175 = vst.msk [vmem:[#allocation2 + $0x70] sm:$0x7f] %vm174_vm5, %v157_v49  ;;  %734 = vmatpush1.msra.mxu0 %v337_v47  ;;  %693 = vmatmul.mubr.f32.gmra.mxu1 %v3807_v51  ;;  %v1211_v47 = vld [vmem:[%s4702_s3 + $0x268] sm:$0xff]  ;;  %v1210_v49 = vld [vmem:[%s4702_s3 + $0x260] sm:$0xff] }
  0xda   :  { %580 = vmatmul.mubr.f32.gmra.mxu0 %v3807_v51  ;;  %735 = vmatprep.subr.mxu0 %v332_v50  ;;  %v1225_v50 = vld [vmem:[%s4702_s3 + $0x2d8] sm:$0xff] }
  0xdb   :  { %736 = vmatpush1.msra.mxu0 %v331_v52  ;;  %v207_v56 = vpop.permute.xlu0 %206  ;;  %3112 = vmatprep.mubr.msk.f32.mxu0 %vm94_vm0, %v3809_v53  ;;  %v1224_v52 = vld [vmem:[%s4702_s3 + $0x2d0] sm:$0xff] }
  0xdc   :  { %v257_v58 = vpop.permute.xlu1 %256  ;;  %225 = vst.msk [vmem:[#allocation2 + $0x70] sm:$0x3f] %vm224_vm6, %v207_v56  ;;  %737 = vmatprep.subr.mxu0 %v326_v54  ;;  %3120 = vmatprep.mubr.msk.f32.mxu1 %vm94_vm0, %v3809_v53  ;;  %v1223_v54 = vld [vmem:[%s4702_s3 + $0x2c8] sm:$0xff]  ;;  %v1222_v56 = vld [vmem:[%s4702_s3 + $0x2c0] sm:$0xff] }
  0xdd   :  { %275 = vst.msk [vmem:[#allocation2 + $0x70] sm:$0x1f] %vm274_vm7, %v257_v58  ;;  %738 = vmatpush1.msra.mxu0 %v325_v55  ;;  %v1207_v55 = vld [vmem:[%s4702_s3 + $0x248] sm:$0xff]  ;;  %v1206_v58 = vld [vmem:[%s4702_s3 + $0x240] sm:$0xff] }
  0xde   :  { %739 = vmatprep.subr.mxu0 %v320_v59  ;;  %v1221_v59 = vld [vmem:[%s4702_s3 + $0x2b8] sm:$0xff] }
  0xdf   :  { %740 = vmatpush1.msra.mxu0 %v319_v60  ;;  %v305_v63 = vld [vmem:[#allocation2 + $0x60] sm:$0xff]  ;;  %v1205_v60 = vld [vmem:[%s4702_s3 + $0x238] sm:$0xff] }
  0xe0   :  { %741 = vmatprep.subr.mxu0 %v314_v61  ;;  %586 = vmatmul.mubr.f32.gmra.mxu0 %v305_v63  ;;  %v1220_v61 = vld [vmem:[%s4702_s3 + $0x2b0] sm:$0xff] }
  0xe1   :  { %699 = vmatmul.mubr.f32.gmra.mxu1 %v305_v63  ;;  %742 = vmatpush1.msra.mxu0 %v313_v62  ;;  %v1204_v62 = vld [vmem:[%s4702_s3 + $0x230] sm:$0xff] }
  0xe2   :  { %767 = vmatprep.subr.mxu0 %v428_v0  ;;  %3113 = vmatprep.mubr.msk.f32.mxu0 %vm94_vm0, %v308_v1  ;;  %v1203_v0 = vld [vmem:[%s4702_s3 + $0x228] sm:$0xff] }
  0xe3   :  { %768 = vmatpush2.msra.mxu0 %v427_v2  ;;  %3121 = vmatprep.mubr.msk.f32.mxu1 %vm94_vm0, %v308_v1  ;;  %v1202_v2 = vld [vmem:[%s4702_s3 + $0x220] sm:$0xff] }
  0xe4   :  { %769 = vmatprep.subr.mxu0 %v422_v5  ;;  %v307_v8 = vld [vmem:[#allocation2 + $0x70] sm:$0xff]  ;;  %v1217_v5 = vld [vmem:[%s4702_s3 + $0x298] sm:$0xff] }
  0xe5   :  { %770 = vmatpush2.msra.mxu0 %v421_v6  ;;  %705 = vmatmul.mubr.f32.gmra.mxu1 %v307_v8  ;;  %v1201_v6 = vld [vmem:[%s4702_s3 + $0x218] sm:$0xff] }
  0xe6   :  { %592 = vmatmul.mubr.f32.gmra.mxu0 %v307_v8  ;;  %771 = vmatprep.subr.mxu0 %v416_v7  ;;  %v1216_v7 = vld [vmem:[%s4702_s3 + $0x290] sm:$0xff] }
  0xe7   :  { %772 = vmatpush2.msra.mxu0 %v415_v9  ;;  %3122 = vmatprep.mubr.msk.f32.mxu0 %vm94_vm0, %v3730_v57  ;;  %v1165_v57 = vld [vmem:[%s4702_s3 + $0xf8] sm:$0xff]  ;;  %v1215_v9 = vld [vmem:[%s4702_s3 + $0x288] sm:$0xff] }
  0xe8   :  { %773 = vmatprep.subr.mxu0 %v410_v12  ;;  %3131 = vmatprep.subr.mxu1 %v1165_v57  ;;  %v1199_v12 = vld [vmem:[%s4702_s3 + $0x208] sm:$0xff]  ;;  %v1198_v57 = vld [vmem:[%s4702_s3 + $0x200] sm:$0xff] }
  0xe9   :  { %774 = vmatpush2.msra.mxu0 %v409_v13  ;;  %v1214_v13 = vld [vmem:[%s4702_s3 + $0x280] sm:$0xff] }
  0xea   :  { %776 = vmatmul.mubr.f32.vlgmr.msra.gmra.mxu0 %v3745_v4  ;;  %v1164_v4 = vld [vmem:[%s4702_s3 + $0xf0] sm:$0xff]  ;;  %3201 = vmatprep.subr.mxu0 %v1229_v42 }
  0xeb   :  { %3123 = vmatprep.mubr.msk.f32.mxu0 %vm94_vm0, %v3742_v3  ;;  %v1149_v3 = vld [vmem:[%s4702_s3 + $0x78] sm:$0xff] }
  0xec   :  { %3132 = vmatpush3.msra.mxu1 %v1149_v3  ;;  %v1781_v3 = vld [vmem:[#allocation8 + $0x8d8] sm:$0xff] }
  0xed   :  { %3133 = vmatprep.subr.mxu1 %v1164_v4  ;;  %v431_v4 = vlaneseq }
  0xee   :  { %782 = vmatmul.mubr.f32.gmra.mxu0 %v3758_v11  ;;  %v1163_v11 = vld [vmem:[%s4702_s3 + $0xe8] sm:$0xff] }
  0xef   :  { %3124 = vmatprep.mubr.msk.f32.mxu0 %vm94_vm0, %v3754_v10  ;;  %v1148_v10 = vld [vmem:[%s4702_s3 + $0x70] sm:$0xff] }
  0xf0   :  { %3134 = vmatpush3.msra.mxu1 %v1148_v10  ;;  %v4036_v10 = vshrl.u32 %v431_v4, 7 }
  0xf1   :  { %3135 = vmatprep.subr.mxu1 %v1163_v11 }
  0xf2   :  { %788 = vmatmul.mubr.f32.gmra.mxu0 %v3770_v23  ;;  %3136 = vmatpush3.msra.mxu1 %v1147_v14  ;;  %v1158_v23 = vld [vmem:[%s4702_s3 + $0xc0] sm:$0xff]  ;;  %v433_v11 = vsub.s32 0, %v4036_v10 }
  0xf3   :  { %3125 = vmatprep.mubr.msk.f32.mxu0 %vm94_vm0, %v3768_v20  ;;  %3137 = vmatprep.subr.mxu1 %v1162_v15  ;;  %v1144_v20 = vld [vmem:[%s4702_s3 + $0x50] sm:$0xff]  ;;  %v4039_v14 = vld [vmem:[#allocation5] sm:$0x3f] }
  0xf4   :  { %3138 = vmatpush3.msra.mxu1 %v1146_v16 }
  0xf5   :  { %3139 = vmatprep.subr.mxu1 %v1161_v17  ;;  %v437_v17 = vsub.s32 1, %v4036_v10 }
  0xf6   :  { %794 = vmatmul.mubr.f32.gmra.mxu0 %v3784_v31  ;;  %3140 = vmatpush3.msra.mxu1 %v1145_v18  ;;  %v1154_v31 = vld [vmem:[%s4702_s3 + $0xa0] sm:$0xff]  ;;  %v445_v18 = vsub.s32 3, %v4036_v10 }
  0xf7   :  { %3126 = vmatprep.mubr.msk.f32.mxu0 %vm94_vm0, %v3780_v30  ;;  %3141 = vmatprep.subr.mxu1 %v1160_v19  ;;  %v1139_v30 = vld [vmem:[%s4702_s3 + $0x28] sm:$0xff] }
  0xf8   :  { %3142 = vmatpush3.msra.mxu1 %v1144_v20 }
  0xf9   :  { %3143 = vmatprep.subr.mxu1 %v1159_v21  ;;  %v4048_v21 = vrot.slane %v4039_v14, %v433_v11 }
  0xfa   :  { %800 = vmatmul.mubr.f32.gmra.mxu0 %v3796_v43  ;;  %3144 = vmatpush3.msra.mxu1 %v1143_v22  ;;  %v1213_v43 = vld [vmem:[%s4702_s3 + $0x278] sm:$0xff] }
  0xfb   :  { %3127 = vmatprep.mubr.msk.f32.mxu0 %vm94_vm0, %v3794_v40  ;;  %3145 = vmatprep.subr.mxu1 %v1158_v23  ;;  %v1134_v40 = vld [vmem:[%s4702_s3] sm:$0xff]  ;;  %v4051_v23 = vadd.s32 8, %v4036_v10 }
  0xfc   :  { %3146 = vmatpush3.msra.mxu1 %v1142_v24  ;;  %3202 = vmatpush3.msra.mxu0 %v1213_v43 }
  0xfd   :  { %3147 = vmatprep.subr.mxu1 %v1157_v25  ;;  %3203 = vmatprep.subr.mxu0 %v1228_v44  ;;  %v4056_v25 = vrot.slane %v4039_v14, %v437_v17  ;;  %vm912_vm8 = vcmp.le.s32.totalorder %v4051_v23, 13  ;;  %vm914_vm9 = vcmp.le.s32.totalorder %v4051_v23, 12  ;;  %vm916_vm11 = vcmp.le.s32.totalorder %v4051_v23, 11 }
  0xfe   :  { %806 = vmatmul.mubr.f32.gmra.mxu0 %v3807_v51  ;;  %3148 = vmatpush3.msra.mxu1 %v1141_v26  ;;  %v1209_v51 = vld [vmem:[%s4702_s3 + $0x258] sm:$0xff]  ;;  %v4061_v26 = vrot.slane %v4039_v14, %v445_v18 }
  0xff   :  { %3128 = vmatprep.mubr.msk.f32.mxu0 %vm94_vm0, %v3809_v53  ;;  %3149 = vmatprep.subr.mxu1 %v1156_v27  ;;  %v1208_v53 = vld [vmem:[%s4702_s3 + $0x250] sm:$0xff] }
 0x100   :  { %3150 = vmatpush3.msra.mxu1 %v1140_v28  ;;  %3204 = vmatpush3.msra.mxu0 %v1212_v45 }
 0x101   :  { %3151 = vmatprep.subr.mxu1 %v1155_v29  ;;  %3205 = vmatprep.subr.mxu0 %v1227_v46 }
 0x102   :  { %812 = vmatmul.mubr.f32.gmra.mxu0 %v305_v63  ;;  %3152 = vmatpush3.msra.mxu1 %v1139_v30  ;;  %v1219_v63 = vld [vmem:[%s4702_s3 + $0x2a8] sm:$0xff] }
 0x103   :  { %3129 = vmatprep.mubr.msk.f32.mxu0 %vm94_vm0, %v308_v1  ;;  %3153 = vmatprep.subr.mxu1 %v1154_v31  ;;  %v1218_v1 = vld [vmem:[%s4702_s3 + $0x2a0] sm:$0xff] }
 0x104   :  { %3154 = vmatpush3.msra.mxu1 %v1138_v32  ;;  %3206 = vmatpush3.msra.mxu0 %v1211_v47 }
 0x105   :  { %3155 = vmatprep.subr.mxu1 %v1153_v33  ;;  %3207 = vmatprep.subr.mxu0 %v1226_v48 }
 0x106   :  { %818 = vmatmul.mubr.f32.gmra.mxu0 %v307_v8  ;;  %3156 = vmatpush3.msra.mxu1 %v1137_v34  ;;  %v1200_v8 = vld [vmem:[%s4702_s3 + $0x210] sm:$0xff] }
 0x107   :  { %3157 = vmatprep.subr.mxu1 %v1152_v35  ;;  %3208 = vmatpush3.msra.mxu0 %v1210_v49 }
 0x108   :  { %3158 = vmatpush3.msra.mxu1 %v1136_v36  ;;  %3209 = vmatprep.subr.mxu0 %v1225_v50  ;;  %v441_v50 = vsub.s32 2, %v4036_v10 }
 0x109   :  { %3159 = vmatprep.subr.mxu1 %v1151_v37  ;;  %3210 = vmatpush3.msra.mxu0 %v1209_v51 }
 0x10a   :  { %3160 = vmatpush3.msra.mxu1 %v1135_v38  ;;  %3211 = vmatprep.subr.mxu0 %v1224_v52 }
 0x10b   :  { %3161 = vmatprep.subr.mxu1 %v1150_v39  ;;  %3212 = vmatpush3.msra.mxu0 %v1208_v53 }
 0x10c   :  { %3162 = vmatpush3.msra.mxu1 %v1134_v40  ;;  %3213 = vmatprep.subr.mxu0 %v1223_v54 }
 0x10d   :  { %3166 = vmatprep.subr.mxu1 %v1197_v41  ;;  %3214 = vmatpush3.msra.mxu0 %v1207_v55 }
 0x10e   :  { %3215 = vmatprep.subr.mxu0 %v1222_v56 }
 0x10f   :  { %3216 = vmatpush3.msra.mxu0 %v1206_v58 }
 0x110   :  { %3217 = vmatprep.subr.mxu0 %v1221_v59 }
 0x111   :  { %3218 = vmatpush3.msra.mxu0 %v1205_v60 }
 0x112   :  { %3219 = vmatprep.subr.mxu0 %v1220_v61 }
 0x113   :  { %3220 = vmatpush3.msra.mxu0 %v1204_v62 }
 0x114   :  { %3221 = vmatprep.subr.mxu0 %v1219_v63  ;;  %v4086_v63 = vrot.slane %v4039_v14, %v441_v50 }
 0x115   :  { %3222 = vmatpush3.msra.mxu0 %v1203_v0 }
 0x116   :  { %3223 = vmatprep.subr.mxu0 %v1218_v1 }
 0x117   :  { %3224 = vmatpush3.msra.mxu0 %v1202_v2 }
 0x118   :  { %3225 = vmatprep.subr.mxu0 %v1217_v5 }
 0x119   :  { %3226 = vmatpush3.msra.mxu0 %v1201_v6 }
 0x11a   :  { %3227 = vmatprep.subr.mxu0 %v1216_v7 }
 0x11b   :  { %3228 = vmatpush3.msra.mxu0 %v1200_v8 }
 0x11c   :  { %3229 = vmatprep.subr.mxu0 %v1215_v9 }
 0x11d   :  { %3230 = vmatpush3.msra.mxu0 %v1199_v12 }
 0x11e   :  { %3231 = vmatprep.subr.mxu0 %v1214_v13 }
 0x11f   :  { %3232 = vmatpush3.msra.mxu0 %v1198_v57 }
 0x120   :  { %2177 = vmatprep.subr.mxu0 %v1781_v3 }
 0x17e   :  { %v551_v15 = vpop.f32.mrf.mxu0  ;;  %v4041_v16 = vpop.f32.mrf.mxu1 }
 0x17f   :  { %v552_v33 = vadd.f32 %v551_v15, %v4048_v21 }
 0x180   :  { %v553_v19 = vpop.f32.mrf.mxu0  ;;  %v666_v20 = vpop.f32.mrf.mxu1 }
 0x181   :  { %v554_v34 = vadd.f32 %v553_v19, %v4056_v25  ;;  %v667_v37 = vadd.f32 %v666_v20, %v4061_v26  ;;  %v824_v41 = vmax.f32 %v552_v33, 0.0  ;;  %v449_v19 = vsub.s32 4, %v4036_v10 }
 0x182   :  { %v557_v22 = vpop.f32.mrf.mxu0  ;;  %v670_v24 = vpop.f32.mrf.mxu1  ;;  %v453_v20 = vsub.s32 5, %v4036_v10 }
 0x183   :  { %v558_v27 = vadd.f32 %v557_v22, %v4048_v21  ;;  %v825_v43 = vmax.f32 %v554_v34, 0.0  ;;  %v827_v48 = vmax.f32 %v667_v37, 0.0  ;;  %v671_v5 = vadd.f32 %v670_v24, %v4086_v63 }
 0x184   :  { %v559_v28 = vpop.f32.mrf.mxu0  ;;  %v672_v29 = vpop.f32.mrf.mxu1  ;;  %v665_v22 = vadd.f32 %v4041_v16, %v4086_v63  ;;  %v4107_v16 = vrot.slane %v4039_v14, %v449_v19 }
 0x185   :  { %v830_v30 = vmax.f32 %v558_v27, 0.0  ;;  %v560_v31 = vadd.f32 %v559_v28, %v4056_v25  ;;  %v673_v32 = vadd.f32 %v672_v29, %v4061_v26 }
 0x187   :  { %v831_v35 = vmax.f32 %v560_v31, 0.0  ;;  %v833_v36 = vmax.f32 %v673_v32, 0.0  ;;  %v924_v38 = vsel %vm912_vm8, %v830_v30, 0.0  ;;  %v832_v30 = vmax.f32 %v671_v5, 0.0 }
 0x188   :  { %v563_v39 = vpop.f32.mrf.mxu0  ;;  %v966_v46 = vmax.f32 %v824_v41, %v924_v38  ;;  %v826_v41 = vmax.f32 %v665_v22, 0.0 }
 0x189   :  { %v4072_v40 = vpop.f32.mrf.mxu1  ;;  %v925_v42 = vsel %vm912_vm8, %v831_v35, 0.0  ;;  %v927_v47 = vsel %vm914_vm9, %v833_v36, 0.0  ;;  %v564_v0 = vadd.f32 %v563_v39, %v4048_v21  ;;  %v4112_v39 = vrot.slane %v4039_v14, %v453_v20 }
 0x18a   :  { %v565_v44 = vpop.f32.mrf.mxu0  ;;  %v973_v49 = vmax.f32 %v825_v43, %v925_v42  ;;  %v987_v53 = vmax.f32 %v827_v48, %v927_v47  ;;  %v967_v55 = vrot.slane %v966_v46, 4 }
 0x18b   :  { %v678_v45 = vpop.f32.mrf.mxu1  ;;  %v566_v6 = vadd.f32 %v565_v44, %v4056_v25  ;;  %v836_v15 = vmax.f32 %v564_v0, 0.0 }
 0x18c   :  { %v974_v59 = vrot.slane %v973_v49, 4  ;;  %v988_v1 = vrot.slane %v987_v53, 4  ;;  %v968_v8 = vmax.f32 %v966_v46, %v967_v55  ;;  %v679_v12 = vadd.f32 %v678_v45, %v4061_v26 }
 0x18d   :  { %v569_v51 = vpop.f32.mrf.mxu0  ;;  %v682_v52 = vpop.f32.mrf.mxu1  ;;  %v837_v31 = vmax.f32 %v566_v6, 0.0  ;;  %v926_v46 = vsel %vm914_vm9, %v832_v30, 0.0 }
 0x18e   :  { %v570_v54 = vadd.f32 %v569_v51, %v4048_v21  ;;  %v975_v9 = vmax.f32 %v973_v49, %v974_v59  ;;  %v989_v24 = vmax.f32 %v987_v53, %v988_v1  ;;  %v969_v34 = vrot.slane %v968_v8, 2 }
 0x18f   :  { %v571_v56 = vpop.f32.mrf.mxu0  ;;  %v684_v58 = vpop.f32.mrf.mxu1  ;;  %v839_v36 = vmax.f32 %v679_v12, 0.0  ;;  %v683_v48 = vadd.f32 %v682_v52, %v4086_v63 }
 0x190   :  { %v842_v60 = vmax.f32 %v570_v54, 0.0  ;;  %v572_v61 = vadd.f32 %v571_v56, %v4056_v25  ;;  %v685_v62 = vadd.f32 %v684_v58, %v4061_v26  ;;  %v976_v35 = vrot.slane %v975_v9, 2 }
 0x191   :  { %v990_v42 = vrot.slane %v989_v24, 2  ;;  %v970_v53 = vmax.f32 %v968_v8, %v969_v34  ;;  %v844_v6 = vmax.f32 %v683_v48, 0.0 }
 0x192   :  { %v843_v2 = vmax.f32 %v572_v61, 0.0  ;;  %v845_v7 = vmax.f32 %v685_v62, 0.0  ;;  %v936_v13 = vsel %vm912_vm8, %v842_v60, 0.0  ;;  %v977_v54 = vmax.f32 %v975_v9, %v976_v35 }
 0x193   :  { %v1008_v32 = vmax.f32 %v836_v15, %v936_v13  ;;  %v991_v62 = vmax.f32 %v989_v24, %v990_v42  ;;  %v971_v8 = vrot.slane %v970_v53, 1 }
 0x194   :  { %v575_v57 = vpop.f32.mrf.mxu0  ;;  %v4094_v3 = vpop.f32.mrf.mxu1  ;;  %v937_v27 = vsel %vm912_vm8, %v843_v2, 0.0  ;;  %v939_v33 = vsel %vm914_vm9, %v845_v7, 0.0  ;;  %v4125_v2 = vadd.f32 %v4072_v40, %v4086_v63  ;;  %v978_v15 = vrot.slane %v977_v54, 1 }
 0x195   :  { %v1015_v37 = vmax.f32 %v837_v31, %v937_v27  ;;  %v1029_v43 = vmax.f32 %v839_v36, %v939_v33  ;;  %v576_v44 = vadd.f32 %v575_v57, %v4048_v21  ;;  %v1009_v47 = vrot.slane %v1008_v32, 4 }
 0x196   :  { %v577_v28 = vpop.f32.mrf.mxu0  ;;  %v690_v29 = vpop.f32.mrf.mxu1  ;;  %v992_v40 = vrot.slane %v991_v62, 1  ;;  %v4135_v33 = vmax.f32 %v826_v41, %v926_v46  ;;  %v4148_v48 = vmax.f32 %v977_v54, %v978_v15 }
 0x197   :  { %v691_v14 = vadd.f32 %v690_v29, %v4061_v26  ;;  %v1016_v58 = vrot.slane %v1015_v37, 4  ;;  %v578_v59 = vadd.f32 %v577_v28, %v4056_v25  ;;  %v1030_v0 = vrot.slane %v1029_v43, 4 }
 0x198   :  { %v848_v1 = vmax.f32 %v576_v44, 0.0  ;;  %v1010_v5 = vmax.f32 %v1008_v32, %v1009_v47  ;;  %v4140_v44 = vsel %vm914_vm9, %v844_v6, 0.0  ;;  %v4146_v47 = vmax.f32 %v970_v53, %v971_v8 }
 0x199   :  { %v694_v38 = vpop.f32.mrf.mxu1  ;;  %v851_v9 = vmax.f32 %v691_v14, 0.0  ;;  %v1017_v22 = vmax.f32 %v1015_v37, %v1016_v58  ;;  %v849_v24 = vmax.f32 %v578_v59, 0.0  ;;  %v1031_v29 = vmax.f32 %v1029_v43, %v1030_v0 }
 0x19a   :  { %v581_v45 = vpop.f32.mrf.mxu0  ;;  %v1011_v34 = vrot.slane %v1010_v5, 2  ;;  %v838_v37 = vmax.f32 %v4125_v2, 0.0  ;;  %v4144_v43 = vadd.f32 %v4094_v3, %v4086_v63 }
 0x19b   :  { %v582_v49 = vadd.f32 %v581_v45, %v4048_v21  ;;  %v696_v51 = vpop.f32.mrf.mxu1  ;;  %v1018_v41 = vrot.slane %v1017_v22, 2  ;;  %v1032_v14 = vrot.slane %v1031_v29, 2 }
 0x19c   :  { %v583_v55 = vpop.f32.mrf.mxu0  ;;  %v697_v56 = vadd.f32 %v696_v51, %v4061_v26  ;;  %v4150_v51 = vmax.f32 %v991_v62, %v992_v40  ;;  %v1012_v59 = vmax.f32 %v1010_v5, %v1011_v34  ;;  %v850_v54 = vmax.f32 %v4144_v43, 0.0 }
 0x19d   :  { %v854_v60 = vmax.f32 %v582_v49, 0.0  ;;  %v584_v61 = vadd.f32 %v583_v55, %v4056_v25  ;;  %v695_v55 = vadd.f32 %v694_v38, %v4086_v63  ;;  %v1019_v6 = vmax.f32 %v1017_v22, %v1018_v41 }
 0x19e   :  { %v857_v52 = vmax.f32 %v697_v56, 0.0  ;;  %v1033_v15 = vmax.f32 %v1031_v29, %v1032_v14 }
 0x19f   :  { %v948_v7 = vsel %vm912_vm8, %v854_v60, 0.0  ;;  %v855_v13 = vmax.f32 %v584_v61, 0.0  ;;  %v856_v5 = vmax.f32 %v695_v55, 0.0 }
 0x1a0   :  { %v1050_v12 = vmax.f32 %v848_v1, %v948_v7  ;;  %v587_v57 = vpop.f32.mrf.mxu0  ;;  %v951_v27 = vsel %vm914_vm9, %v857_v52, 0.0 }
 0x1a1   :  { %v4131_v28 = vpop.f32.mrf.mxu1  ;;  %v949_v30 = vsel %vm912_vm8, %v855_v13, 0.0  ;;  %v1071_v31 = vmax.f32 %v851_v9, %v951_v27  ;;  %v588_v56 = vadd.f32 %v587_v57, %v4048_v21  ;;  %v1013_v57 = vrot.slane %v1012_v59, 1 }
 0x1a2   :  { %v589_v32 = vpop.f32.mrf.mxu0  ;;  %v1051_v35 = vrot.slane %v1050_v12, 4  ;;  %v1057_v36 = vmax.f32 %v849_v24, %v949_v30  ;;  %v4169_v14 = vsel %vm914_vm9, %v856_v5, 0.0  ;;  %v4173_v55 = vadd.f32 %v4131_v28, %v4086_v63 }
 0x1a3   :  { %v702_v42 = vpop.f32.mrf.mxu1  ;;  %v1072_v45 = vrot.slane %v1071_v31, 4  ;;  %v590_v38 = vadd.f32 %v589_v32, %v4056_v25  ;;  %v1020_v32 = vrot.slane %v1019_v6, 1 }
 0x1a4   :  { %v1058_v46 = vrot.slane %v1057_v36, 4  ;;  %v1052_v60 = vmax.f32 %v1050_v12, %v1051_v35  ;;  %v703_v1 = vadd.f32 %v702_v42, %v4061_v26  ;;  %v860_v12 = vmax.f32 %v588_v56, 0.0 }
 0x1a5   :  { %v706_v49 = vpop.f32.mrf.mxu1  ;;  %v1073_v0 = vmax.f32 %v1071_v31, %v1072_v45  ;;  %v861_v34 = vmax.f32 %v590_v38, 0.0 }
 0x1a6   :  { %v593_v58 = vpop.f32.mrf.mxu0  ;;  %v1059_v3 = vmax.f32 %v1057_v36, %v1058_v46  ;;  %v1053_v24 = vrot.slane %v1052_v60, 2  ;;  %v863_v30 = vmax.f32 %v703_v1, 0.0  ;;  %v1034_v46 = vrot.slane %v1033_v15, 1 }
 0x1a7   :  { %v594_v61 = vadd.f32 %v593_v58, %v4048_v21  ;;  %v708_v53 = vpop.f32.mrf.mxu1  ;;  %v1074_v40 = vrot.slane %v1073_v0, 2  ;;  %v1014_v1 = vmax.f32 %v1012_v59, %v1013_v57 }
 0x1a8   :  { %v595_v52 = vpop.f32.mrf.mxu0  ;;  %v709_v62 = vadd.f32 %v708_v53, %v4061_v26  ;;  %v1060_v9 = vrot.slane %v1059_v3, 2  ;;  %v1054_v56 = vmax.f32 %v1052_v60, %v1053_v24  ;;  %v1035_v28 = vmax.f32 %v1033_v15, %v1034_v46 }
 0x1a9   :  { %v866_v7 = vmax.f32 %v594_v61, 0.0  ;;  %v596_v8 = vadd.f32 %v595_v52, %v4056_v25  ;;  %v707_v25 = vadd.f32 %v706_v49, %v4086_v63  ;;  %v1075_v58 = vmax.f32 %v1073_v0, %v1074_v40 }
 0x1aa   :  { %v869_v13 = vmax.f32 %v709_v62, 0.0  ;;  %v777_v21 = vpop.f32.mrf.mxu0  ;;  %v1061_v36 = vmax.f32 %v1059_v3, %v1060_v9  ;;  %v1021_v52 = vmax.f32 %v1019_v6, %v1020_v32  ;;  %v862_v60 = vmax.f32 %v4173_v55, 0.0  ;;  %v1179_v55 = vld [vmem:[%s4702_s3 + $0x168] sm:$0xff] }
 0x1ab   :  { %v960_v27 = vsel %vm912_vm8, %v866_v7, 0.0  ;;  %v867_v22 = vmax.f32 %v596_v8, 0.0  ;;  %v868_v62 = vmax.f32 %v707_v25, 0.0  ;;  %v1076_v24 = vrot.slane %v1075_v58, 1 }
 0x1ac   :  { %v1092_v26 = vmax.f32 %v860_v12, %v960_v27  ;;  %v779_v31 = vpop.f32.mrf.mxu0  ;;  %v963_v35 = vsel %vm914_vm9, %v869_v13, 0.0  ;;  %v1062_v7 = vrot.slane %v1061_v36, 1  ;;  %v1055_v13 = vrot.slane %v1054_v56, 1 }
 0x1ad   :  { %v961_v29 = vsel %vm912_vm8, %v867_v22, 0.0  ;;  %v1113_v45 = vmax.f32 %v863_v30, %v963_v35  ;;  %v962_v57 = vsel %vm914_vm9, %v868_v62, 0.0  ;;  %v778_v30 = vadd.f32 %v777_v21, %v4107_v16 }
 0x1ae   :  { %v1093_v42 = vrot.slane %v1092_v26, 4  ;;  %v783_v41 = vpop.f32.mrf.mxu0  ;;  %v1099_v49 = vmax.f32 %v861_v34, %v961_v29  ;;  %v1267_v15 = vsel %vm1261_vm10, %v1021_v52, %v4148_v48  ;;  %v780_v32 = vadd.f32 %v779_v31, %v4112_v39 }
 0x1af   :  { %v1114_v3 = vrot.slane %v1113_v45, 4  ;;  %v784_v12 = vadd.f32 %v783_v41, %v4107_v16  ;;  %v1056_v41 = vmax.f32 %v1054_v56, %v1055_v13  ;;  %v1077_v46 = vmax.f32 %v1075_v58, %v1076_v24 }
 0x1b0   :  { %v1094_v61 = vmax.f32 %v1092_v26, %v1093_v42  ;;  %v785_v53 = vpop.f32.mrf.mxu0  ;;  %v1100_v38 = vrot.slane %v1099_v49, 4  ;;  %v1063_v26 = vmax.f32 %v1061_v36, %v1062_v7  ;;  %v828_v31 = vmax.f32 %v778_v30, 0.0 }
 0x1b1   :  { %v1115_v5 = vmax.f32 %v1113_v45, %v1114_v3  ;;  %v786_v9 = vadd.f32 %v785_v53, %v4112_v39  ;;  %v834_v29 = vmax.f32 %v784_v12, 0.0  ;;  %v829_v52 = vmax.f32 %v780_v32, 0.0 }
 0x1b2   :  { %v1095_v8 = vrot.slane %v1094_v61, 2  ;;  %v789_v63 = vpop.f32.mrf.mxu0  ;;  %v1101_v0 = vmax.f32 %v1099_v49, %v1100_v38  ;;  %v1268_v7 = vsel %vm1263_vm12, %v1063_v26, %v1267_v15  ;;  %v1273_v26 = vsel %vm1261_vm10, %v1035_v28, %v4150_v51 }
 0x1b3   :  { %v1116_v59 = vrot.slane %v1115_v5, 2  ;;  %v835_v34 = vmax.f32 %v786_v9, 0.0  ;;  %v790_v3 = vadd.f32 %v789_v63, %v4107_v16  ;;  %v928_v58 = vsel %vm916_vm11, %v834_v29, 0.0 }
 0x1b4   :  { %v1096_v27 = vmax.f32 %v1094_v61, %v1095_v8  ;;  %v791_v6 = vpop.f32.mrf.mxu0  ;;  %v1102_v40 = vrot.slane %v1101_v0, 2  ;;  %v1064_v51 = vmax.f32 %v850_v54, %v4169_v14  ;;  %v1106_v2 = vmax.f32 %v862_v60, %v962_v57  ;;  %v1195_v54 = vld [vmem:[%s4702_s3 + $0x1e8] sm:$0xff] }
 0x1b5   :  { %v1117_v22 = vmax.f32 %v1115_v5, %v1116_v59  ;;  %v792_v49 = vadd.f32 %v791_v6, %v4112_v39  ;;  %v929_v62 = vsel %vm916_vm11, %v835_v34, 0.0  ;;  %v1262_v5 = vsel %vm1261_vm10, %v1014_v1, %v4146_v47  ;;  %v1181_v1 = vld [vmem:[%s4702_s3 + $0x178] sm:$0xff] }
 0x1b6   :  { %v795_v25 = vpop.f32.mrf.mxu0  ;;  %v1097_v35 = vrot.slane %v1096_v27, 1  ;;  %v1103_v42 = vmax.f32 %v1101_v0, %v1102_v40  ;;  %v1001_v24 = vmax.f32 %v829_v52, %v929_v62  ;;  %v840_v59 = vmax.f32 %v790_v3, 0.0  ;;  %v1178_v62 = vld [vmem:[%s4702_s3 + $0x160] sm:$0xff] }
 0x1b7   :  { %v796_v45 = vadd.f32 %v795_v25, %v4107_v16  ;;  %v1118_v21 = vrot.slane %v1117_v22, 1  ;;  %v841_v9 = vmax.f32 %v792_v49, 0.0  ;;  %v1196_v25 = vld [vmem:[%s4702_s3 + $0x1f0] sm:$0xff]  ;;  %v981_v14 = vrot.slane %v4135_v33, 4 }
 0x1b8   :  { %v797_v61 = vpop.f32.mrf.mxu0  ;;  %v1104_v53 = vrot.slane %v1103_v42, 1  ;;  %v1098_v56 = vmax.f32 %v1096_v27, %v1097_v35  ;;  %v1264_v27 = vsel %vm1263_vm12, %v1056_v41, %v1262_v5  ;;  %v1274_v35 = vsel %vm1263_vm12, %v1077_v46, %v1273_v26  ;;  %v1180_v41 = vld [vmem:[%s4702_s3 + $0x170] sm:$0xff] }
 0x1b9   :  { %v846_v48 = vmax.f32 %v796_v45, 0.0  ;;  %v798_v36 = vadd.f32 %v797_v61, %v4112_v39  ;;  %v1119_v13 = vmax.f32 %v1117_v22, %v1118_v21  ;;  %v1002_v60 = vrot.slane %v1001_v24, 4 }
 0x1ba   :  { %v801_v38 = vpop.f32.mrf.mxu0  ;;  %v1105_v12 = vmax.f32 %v1103_v42, %v1104_v53  ;;  %v4213_v34 = vsel %vm1265_vm13, %v1098_v56, %v1264_v27  ;;  %v1022_v42 = vmax.f32 %v838_v37, %v4140_v44  ;;  %v994_v37 = vmax.f32 %v828_v31, %v928_v58 }
 0x1bb   :  { %v847_v8 = vmax.f32 %v798_v36, 0.0  ;;  %v940_v63 = vsel %vm916_vm11, %v846_v48, 0.0  ;;  %v802_v30 = vadd.f32 %v801_v38, %v4107_v16  ;;  %v4228_v29 = vsel %vm1265_vm13, %v1119_v13, %v1274_v35  ;;  %v1194_v48 = vld [vmem:[%s4702_s3 + $0x1e0] sm:$0xff]  ;;  %v1177_v13 = vld [vmem:[%s4702_s3 + $0x158] sm:$0xff] }
 0x1bc   :  { %v803_v0 = vpop.f32.mrf.mxu0  ;;  %v4203_v15 = vsel %vm1265_vm13, %v1105_v12, %v1268_v7  ;;  %v1036_v22 = vmax.f32 %v840_v59, %v940_v63  ;;  %v1023_v36 = vrot.slane %v1022_v42, 4  ;;  %v1065_v38 = vrot.slane %v1064_v51, 4 }
 0x1bd   :  { %v941_v6 = vsel %vm916_vm11, %v847_v8, 0.0  ;;  %1352 = vmatprep.mubr.f32.mxu1 %v4203_v15  ;;  %v804_v28 = vadd.f32 %v803_v0, %v4112_v39  ;;  %v852_v49 = vmax.f32 %v802_v30, 0.0  ;;  %v1107_v7 = vrot.slane %v1106_v2, 4  ;;  %v1193_v8 = vld [vmem:[%s4702_s3 + $0x1d8] sm:$0xff] }
 0x1be   :  { %v1043_v40 = vmax.f32 %v841_v9, %v941_v6  ;;  %v807_v47 = vpop.f32.mrf.mxu0  ;;  %1353 = vmatmul.mubr.f32.vlgmr.msra.gmra.mxu1 %v4213_v34  ;;  %v1037_v57 = vrot.slane %v1036_v22, 4  ;;  %v995_v56 = vrot.slane %v994_v37, 4  ;;  %v4262_v59 = vmax.f32 %v4135_v33, %v981_v14  ;;  %v1176_v33 = vld [vmem:[%s4702_s3 + $0x150] sm:$0xff] }
 0x1bf   :  { %v808_v32 = vadd.f32 %v807_v47, %v4107_v16  ;;  %3167 = vmatpush3.msra.mxu1 %v1181_v1  ;;  %1422 = vmatprep.mubr.f32.mxu1 %v4228_v29  ;;  %v853_v53 = vmax.f32 %v804_v28, 0.0  ;;  %v1003_v6 = vmax.f32 %v1001_v24, %v1002_v60  ;;  %v1024_v47 = vmax.f32 %v1022_v42, %v1023_v36  ;;  %v1191_v42 = vld [vmem:[%s4702_s3 + $0x1c8] sm:$0xff] }
 0x1c0   :  { %v809_v45 = vpop.f32.mrf.mxu0  ;;  %v1044_v46 = vrot.slane %v1043_v40, 4  ;;  %3168 = vmatprep.subr.mxu1 %v1196_v25  ;;  %v1038_v27 = vmax.f32 %v1036_v22, %v1037_v57  ;;  %v1066_v24 = vmax.f32 %v1064_v51, %v1065_v38  ;;  %v996_v22 = vmax.f32 %v994_v37, %v995_v56  ;;  %v1188_v56 = vld [vmem:[%s4702_s3 + $0x1b0] sm:$0xff] }
 0x1c1   :  { %v858_v44 = vmax.f32 %v808_v32, 0.0  ;;  %v810_v43 = vadd.f32 %v809_v45, %v4112_v39  ;;  %3169 = vmatpush3.msra.mxu1 %v1180_v41  ;;  %v1108_v28 = vmax.f32 %v1106_v2, %v1107_v7  ;;  %v1025_v60 = vrot.slane %v1024_v47, 2 }
 0x1c2   :  { %v813_v61 = vpop.f32.mrf.mxu0  ;;  %3170 = vmatprep.subr.mxu1 %v1195_v54  ;;  %v1045_v5 = vmax.f32 %v1043_v40, %v1044_v46  ;;  %v1192_v40 = vld [vmem:[%s4702_s3 + $0x1d0] sm:$0xff]  ;;  %v1004_v54 = vrot.slane %v1003_v6, 2  ;;  %v1039_v51 = vrot.slane %v1038_v27, 2  ;;  %v997_v57 = vrot.slane %v996_v22, 2 }
 0x1c3   :  { %v952_v21 = vsel %vm916_vm11, %v858_v44, 0.0  ;;  %v859_v3 = vmax.f32 %v810_v43, 0.0  ;;  %3171 = vmatpush3.msra.mxu1 %v1179_v55  ;;  %v814_v0 = vadd.f32 %v813_v61, %v4107_v16  ;;  %v1175_v43 = vld [vmem:[%s4702_s3 + $0x148] sm:$0xff]  ;;  %v1174_v55 = vld [vmem:[%s4702_s3 + $0x140] sm:$0xff]  ;;  %v1109_v38 = vrot.slane %v1108_v28, 2 }
 0x1c4   :  { %v1078_v31 = vmax.f32 %v852_v49, %v952_v21  ;;  %v815_v52 = vpop.f32.mrf.mxu0  ;;  %3172 = vmatprep.subr.mxu1 %v1194_v48  ;;  %v1046_v45 = vrot.slane %v1045_v5, 2  ;;  %v1067_v48 = vrot.slane %v1066_v24, 2  ;;  %v1040_v7 = vmax.f32 %v1038_v27, %v1039_v51  ;;  %v1169_v51 = vld [vmem:[%s4702_s3 + $0x118] sm:$0xff] }
 0x1c5   :  { %v953_v58 = vsel %vm916_vm11, %v859_v3, 0.0  ;;  %3173 = vmatpush3.msra.mxu1 %v1178_v62  ;;  %v816_v32 = vadd.f32 %v815_v52, %v4112_v39  ;;  %v864_v44 = vmax.f32 %v814_v0, 0.0  ;;  %v1189_v3 = vld [vmem:[%s4702_s3 + $0x1b8] sm:$0xff]  ;;  %v983_v62 = vrot.slane %v4262_v59, 2 }
 0x1c6   :  { %v1079_v9 = vrot.slane %v1078_v31, 4  ;;  %v1085_v63 = vmax.f32 %v853_v53, %v953_v58  ;;  %v819_v12 = vpop.f32.mrf.mxu0  ;;  %3174 = vmatprep.subr.mxu1 %v1193_v8  ;;  %v1047_v36 = vmax.f32 %v1045_v5, %v1046_v45  ;;  %v1173_v52 = vld [vmem:[%s4702_s3 + $0x138] sm:$0xff]  ;;  %v1005_v58 = vmax.f32 %v1003_v6, %v1004_v54  ;;  %v1171_v6 = vld [vmem:[%s4702_s3 + $0x128] sm:$0xff] }
 0x1c7   :  { %v820_v30 = vadd.f32 %v819_v12, %v4107_v16  ;;  %3175 = vmatpush3.msra.mxu1 %v1177_v13  ;;  %v865_v49 = vmax.f32 %v816_v32, 0.0  ;;  %v1026_v0 = vmax.f32 %v1024_v47, %v1025_v60  ;;  %v998_v12 = vmax.f32 %v996_v22, %v997_v57  ;;  %v1187_v13 = vld [vmem:[%s4702_s3 + $0x1a8] sm:$0xff] }
 0x1c8   :  { %v1080_v1 = vmax.f32 %v1078_v31, %v1079_v9  ;;  %v1086_v26 = vrot.slane %v1085_v63, 4  ;;  %v821_v25 = vpop.f32.mrf.mxu0  ;;  %3176 = vmatprep.subr.mxu1 %v1192_v40  ;;  %v1068_v27 = vmax.f32 %v1066_v24, %v1067_v48  ;;  %v1110_v32 = vmax.f32 %v1108_v28, %v1109_v38  ;;  %v1183_v48 = vld [vmem:[%s4702_s3 + $0x188] sm:$0xff]  ;;  %v1182_v38 = vld [vmem:[%s4702_s3 + $0x180] sm:$0xff] }
 0x1c9   :  { %v870_v35 = vmax.f32 %v820_v30, 0.0  ;;  %v822_v16 = vadd.f32 %v821_v25, %v4112_v39  ;;  %3177 = vmatpush3.msra.mxu1 %v1176_v33  ;;  %v1190_v39 = vld [vmem:[%s4702_s3 + $0x1c0] sm:$0xff]  ;;  %v1048_v30 = vrot.slane %v1047_v36, 1  ;;  %v1041_v25 = vrot.slane %v1040_v7, 1 }
 0x1ca   :  { %v1087_v41 = vmax.f32 %v1085_v63, %v1086_v26  ;;  %v1081_v2 = vrot.slane %v1080_v1, 2  ;;  %3178 = vmatprep.subr.mxu1 %v1191_v42  ;;  %v1172_v63 = vld [vmem:[%s4702_s3 + $0x130] sm:$0xff]  ;;  %v1186_v33 = vld [vmem:[%s4702_s3 + $0x1a0] sm:$0xff]  ;;  %v1006_v22 = vrot.slane %v1005_v58, 1  ;;  %v1027_v45 = vrot.slane %v1026_v0, 1 }
 0x1cb   :  { %v964_v37 = vsel %vm916_vm11, %v870_v35, 0.0  ;;  %v871_v14 = vmax.f32 %v822_v16, 0.0  ;;  %3179 = vmatpush3.msra.mxu1 %v1175_v43  ;;  %v1170_v42 = vld [vmem:[%s4702_s3 + $0x120] sm:$0xff]  ;;  %v1069_v28 = vrot.slane %v1068_v27, 1 }
 0x1cc   :  { %v1088_v46 = vrot.slane %v1087_v41, 2  ;;  %v1120_v61 = vmax.f32 %v864_v44, %v964_v37  ;;  %3180 = vmatprep.subr.mxu1 %v1190_v39  ;;  %v1082_v8 = vmax.f32 %v1080_v1, %v1081_v2  ;;  %v984_v1 = vmax.f32 %v4262_v59, %v983_v62  ;;  %v1185_v59 = vld [vmem:[%s4702_s3 + $0x198] sm:$0xff]  ;;  %v1184_v2 = vld [vmem:[%s4702_s3 + $0x190] sm:$0xff] }
 0x1cd   :  { %v965_v21 = vsel %vm916_vm11, %v871_v14, 0.0  ;;  %3181 = vmatpush3.msra.mxu1 %v1174_v55  ;;  %v1049_v44 = vmax.f32 %v1047_v36, %v1048_v30  ;;  %v1042_v14 = vmax.f32 %v1040_v7, %v1041_v25  ;;  %v1168_v55 = vld [vmem:[%s4702_s3 + $0x110] sm:$0xff]  ;;  %v1028_v57 = vmax.f32 %v1026_v0, %v1027_v45  ;;  %v1589_v0 = vld [vmem:[#allocation8 + $0x2d8] sm:$0xff] }
 0x1ce   :  { %v1121_v53 = vrot.slane %v1120_v61, 4  ;;  %v1127_v31 = vmax.f32 %v865_v49, %v965_v21  ;;  %v1089_v23 = vmax.f32 %v1087_v41, %v1088_v46  ;;  %3182 = vmatprep.subr.mxu1 %v1189_v3  ;;  %v1083_v24 = vrot.slane %v1082_v8, 1  ;;  %v1769_v25 = vld [vmem:[#allocation8 + $0x878] sm:$0xff] }
 0x1cf   :  { %3183 = vmatpush3.msra.mxu1 %v1173_v52  ;;  %v999_v41 = vrot.slane %v998_v12, 1  ;;  %v985_v37 = vrot.slane %v984_v1, 1  ;;  %v1111_v46 = vrot.slane %v1110_v32, 1  ;;  %v1007_v49 = vmax.f32 %v1005_v58, %v1006_v22  ;;  %v1166_v58 = vld [vmem:[%s4702_s3 + $0x100] sm:$0xff]  ;;  %v1571_v22 = vld [vmem:[#allocation8 + $0x248] sm:$0xff] }
 0x1d0   :  { %v1122_v5 = vmax.f32 %v1120_v61, %v1121_v53  ;;  %v1128_v9 = vrot.slane %v1127_v31, 4  ;;  %3184 = vmatprep.subr.mxu1 %v1188_v56  ;;  %v1090_v47 = vrot.slane %v1089_v23, 1  ;;  %v1084_v61 = vmax.f32 %v1082_v8, %v1083_v24  ;;  %v1167_v53 = vld [vmem:[%s4702_s3 + $0x108] sm:$0xff]  ;;  %v1763_v24 = vld [vmem:[#allocation8 + $0x848] sm:$0xff]  ;;  %v1757_v45 = vld [vmem:[#allocation8 + $0x818] sm:$0xff] }
 0x1d1   :  { %3185 = vmatpush3.msra.mxu1 %v1172_v63  ;;  %v1000_v21 = vmax.f32 %v998_v12, %v999_v41  ;;  %v1070_v36 = vmax.f32 %v1068_v27, %v1069_v28  ;;  %v1279_v52 = vsel %vm1261_vm10, %v1049_v44, %v1007_v49  ;;  %v986_v62 = vmax.f32 %v984_v1, %v985_v37  ;;  %v1588_v27 = vld [vmem:[#allocation8 + $0x2d0] sm:$0xff]  ;;  %v1774_v1 = vld [vmem:[#allocation8 + $0x8a0] sm:$0xff]  ;;  %v1559_v28 = vld [vmem:[#allocation8 + $0x1e8] sm:$0xff] }
 0x1d2   :  { %v1123_v40 = vrot.slane %v1122_v5, 2  ;;  %v1129_v26 = vmax.f32 %v1127_v31, %v1128_v9  ;;  %3186 = vmatprep.subr.mxu1 %v1187_v13  ;;  %v1091_v39 = vmax.f32 %v1089_v23, %v1090_v47  ;;  %v1112_v7 = vmax.f32 %v1110_v32, %v1111_v46  ;;  %v1780_v9 = vld [vmem:[#allocation8 + $0x8d0] sm:$0xff]  ;;  %v1577_v32 = vld [vmem:[#allocation8 + $0x278] sm:$0xff]  ;;  %v1751_v44 = vld [vmem:[#allocation8 + $0x7e8] sm:$0xff] }
 0x1d3   :  { %3187 = vmatpush3.msra.mxu1 %v1171_v6  ;;  %v1276_v56 = vsel %vm1261_vm10, %v1042_v14, %v1000_v21  ;;  %v1270_v63 = vsel %vm1261_vm10, %v1028_v57, %v986_v62  ;;  %v1582_v6 = vld [vmem:[#allocation8 + $0x2a0] sm:$0xff]  ;;  %v1576_v47 = vld [vmem:[#allocation8 + $0x270] sm:$0xff]  ;;  %v1745_v37 = vld [vmem:[#allocation8 + $0x7b8] sm:$0xff] }
 0x1d4   :  { %v1124_v35 = vmax.f32 %v1122_v5, %v1123_v40  ;;  %v1130_v16 = vrot.slane %v1129_v26, 2  ;;  %3188 = vmatprep.subr.mxu1 %v1186_v33  ;;  %v1280_v23 = vsel %vm1263_vm12, %v1091_v39, %v1279_v52  ;;  %v1277_v5 = vsel %vm1263_vm12, %v1084_v61, %v1276_v56  ;;  %v1583_v40 = vld [vmem:[#allocation8 + $0x2a8] sm:$0xff]  ;;  %v1768_v33 = vld [vmem:[#allocation8 + $0x870] sm:$0xff]  ;;  %v1546_v49 = vld [vmem:[#allocation8 + $0x180] sm:$0xff] }
 0x1d5   :  { %3189 = vmatpush3.msra.mxu1 %v1170_v42  ;;  %v1271_v13 = vsel %vm1263_vm12, %v1070_v36, %v1270_v63  ;;  %v1565_v42 = vld [vmem:[#allocation8 + $0x218] sm:$0xff]  ;;  %v1564_v41 = vld [vmem:[#allocation8 + $0x210] sm:$0xff]  ;;  %v1739_v46 = vld [vmem:[#allocation8 + $0x788] sm:$0xff] }
 0x1d6   :  { %v1125_v43 = vrot.slane %v1124_v35, 1  ;;  %v1131_v54 = vmax.f32 %v1129_v26, %v1130_v16  ;;  %3190 = vmatprep.subr.mxu1 %v1185_v59  ;;  %v4354_v30 = vsel %vm1265_vm13, %v1112_v7, %v1271_v13  ;;  %v1775_v26 = vld [vmem:[#allocation8 + $0x8a8] sm:$0xff]  ;;  %v1762_v16 = vld [vmem:[#allocation8 + $0x840] sm:$0xff]  ;;  %v1756_v59 = vld [vmem:[#allocation8 + $0x810] sm:$0xff] }
 0x1d7   :  { %3191 = vmatpush3.msra.mxu1 %v1169_v51  ;;  %v1553_v51 = vld [vmem:[#allocation8 + $0x1b8] sm:$0xff]  ;;  %v1552_v14 = vld [vmem:[#allocation8 + $0x1b0] sm:$0xff]  ;;  %v1738_v61 = vld [vmem:[#allocation8 + $0x780] sm:$0xff] }
 0x1d8   :  { %v1132_v60 = vrot.slane %v1131_v54, 1  ;;  %v1126_v3 = vmax.f32 %v1124_v35, %v1125_v43  ;;  %3192 = vmatprep.subr.mxu1 %v1184_v2  ;;  %v1570_v35 = vld [vmem:[#allocation8 + $0x240] sm:$0xff]  ;;  %v1744_v39 = vld [vmem:[#allocation8 + $0x7b0] sm:$0xff]  ;;  %v1547_v2 = vld [vmem:[#allocation8 + $0x188] sm:$0xff] }
 0x1d9   :  { %3193 = vmatpush3.msra.mxu1 %v1168_v55  ;;  %v1558_v43 = vld [vmem:[#allocation8 + $0x1e0] sm:$0xff]  ;;  %v1541_v55 = vld [vmem:[#allocation8 + $0x158] sm:$0xff]  ;;  %v1540_v57 = vld [vmem:[#allocation8 + $0x150] sm:$0xff] }
 0x1da   :  { %v1133_v31 = vmax.f32 %v1131_v54, %v1132_v60  ;;  %3194 = vmatprep.subr.mxu1 %v1183_v48  ;;  %v4349_v12 = vsel %vm1265_vm13, %v1126_v3, %v1277_v5  ;;  %v1750_v54 = vld [vmem:[#allocation8 + $0x7e0] sm:$0xff]  ;;  %v1733_v60 = vld [vmem:[#allocation8 + $0x758] sm:$0xff]  ;;  %v1732_v21 = vld [vmem:[#allocation8 + $0x750] sm:$0xff] }
 0x1db   :  { %3195 = vmatpush3.msra.mxu1 %v1167_v53  ;;  %v1535_v3 = vld [vmem:[#allocation8 + $0x128] sm:$0xff]  ;;  %v1534_v36 = vld [vmem:[#allocation8 + $0x120] sm:$0xff]  ;;  %v1721_v52 = vld [vmem:[#allocation8 + $0x6f8] sm:$0xff] }
 0x1dc   :  { %v4343_v8 = vsel %vm1265_vm13, %v1133_v31, %v1280_v23  ;;  %3196 = vmatprep.subr.mxu1 %v1182_v38  ;;  %v1727_v48 = vld [vmem:[#allocation8 + $0x728] sm:$0xff]  ;;  %v1726_v53 = vld [vmem:[#allocation8 + $0x720] sm:$0xff]  ;;  %v1529_v31 = vld [vmem:[#allocation8 + $0xf8] sm:$0xff] }
 0x1dd   :  { %1492 = vmatprep.mubr.f32.mxu0 %v4343_v8  ;;  %3197 = vmatpush3.msra.mxu1 %v1166_v58  ;;  %v1528_v62 = vld [vmem:[#allocation8 + $0xf0] sm:$0xff]  ;;  %v1523_v7 = vld [vmem:[#allocation8 + $0xc8] sm:$0xff]  ;;  %v1522_v56 = vld [vmem:[#allocation8 + $0xc0] sm:$0xff] }
 0x1de   :  { %1493 = vmatmul.mubr.f32.vlgmr.msra.gmra.mxu0 %v4349_v12  ;;  %1423 = vmatmul.mubr.f32.vlgmr.msra.gmra.mxu1 %v4354_v30  ;;  %v1720_v38 = vld [vmem:[#allocation8 + $0x6f0] sm:$0xff]  ;;  %v1715_v23 = vld [vmem:[#allocation8 + $0x6c8] sm:$0xff]  ;;  %v1714_v58 = vld [vmem:[#allocation8 + $0x6c0] sm:$0xff] }
 0x1df   :  { %2178 = vmatpush1.msra.mxu0 %v1780_v9  ;;  %2106 = vmatprep.subr.mxu1 %v1589_v0  ;;  %v1517_v5 = vld [vmem:[#allocation8 + $0x98] sm:$0xff]  ;;  %v1516_v63 = vld [vmem:[#allocation8 + $0x90] sm:$0xff]  ;;  %v1511_v13 = vld [vmem:[#allocation8 + $0x68] sm:$0xff] }
 0x1e0   :  { %2107 = vmatpush1.msra.mxu1 %v1588_v27  ;;  %2170 = vmatprep.mubr.f32.mxu1 %v4203_v15  ;;  %v1709_v9 = vld [vmem:[#allocation8 + $0x698] sm:$0xff]  ;;  %v1708_v0 = vld [vmem:[#allocation8 + $0x690] sm:$0xff]  ;;  %v1703_v27 = vld [vmem:[#allocation8 + $0x668] sm:$0xff] }
 0x1e1   :  { %2108 = vmatprep.subr.mxu1 %v1583_v40  ;;  %2179 = vmatprep.subr.mxu0 %v1775_v26  ;;  %v1510_v40 = vld [vmem:[#allocation8 + $0x60] sm:$0xff] }
 0x1e2   :  { %2241 = vmatprep.mubr.f32.mxu0 %v4228_v29  ;;  %2109 = vmatpush1.msra.mxu1 %v1582_v6  ;;  %v1702_v26 = vld [vmem:[#allocation8 + $0x660] sm:$0xff]  ;;  %v1505_v6 = vld [vmem:[#allocation8 + $0x38] sm:$0xff] }
 0x1e3   :  { %2180 = vmatpush1.msra.mxu0 %v1774_v1  ;;  %2110 = vmatprep.subr.mxu1 %v1577_v32  ;;  %v1697_v1 = vld [vmem:[#allocation8 + $0x638] sm:$0xff]  ;;  %v1504_v32 = vld [vmem:[#allocation8 + $0x30] sm:$0xff] }
 0x1e4   :  { %2181 = vmatprep.subr.mxu0 %v1769_v25  ;;  %2111 = vmatpush1.msra.mxu1 %v1576_v47  ;;  %v1696_v25 = vld [vmem:[#allocation8 + $0x630] sm:$0xff]  ;;  %v1499_v47 = vld [vmem:[#allocation8 + $0x8] sm:$0xff] }
 0x1e5   :  { %2182 = vmatpush1.msra.mxu0 %v1768_v33  ;;  %2112 = vmatprep.subr.mxu1 %v1571_v22  ;;  %v1691_v33 = vld [vmem:[#allocation8 + $0x608] sm:$0xff]  ;;  %v1498_v22 = vld [vmem:[#allocation8] sm:$0xff] }
 0x1e6   :  { %2183 = vmatprep.subr.mxu0 %v1763_v24  ;;  %2113 = vmatpush1.msra.mxu1 %v1570_v35  ;;  %v1690_v24 = vld [vmem:[#allocation8 + $0x600] sm:$0xff]  ;;  %v1685_v35 = vld [vmem:[#allocation8 + $0x5d8] sm:$0xff] }
 0x1e7   :  { %2184 = vmatpush1.msra.mxu0 %v1762_v16  ;;  %2114 = vmatprep.subr.mxu1 %v1565_v42  ;;  %v1877_v16 = vld [vmem:[#allocation8 + $0xbd8] sm:$0xff]  ;;  %v1684_v42 = vld [vmem:[#allocation8 + $0x5d0] sm:$0xff] }
 0x1e8   :  { %2185 = vmatprep.subr.mxu0 %v1757_v45  ;;  %2115 = vmatpush1.msra.mxu1 %v1564_v41  ;;  %v1876_v45 = vld [vmem:[#allocation8 + $0xbd0] sm:$0xff]  ;;  %v1679_v41 = vld [vmem:[#allocation8 + $0x5a8] sm:$0xff] }
 0x1e9   :  { %2186 = vmatpush1.msra.mxu0 %v1756_v59  ;;  %2116 = vmatprep.subr.mxu1 %v1559_v28  ;;  %v1871_v59 = vld [vmem:[#allocation8 + $0xba8] sm:$0xff]  ;;  %v1678_v28 = vld [vmem:[#allocation8 + $0x5a0] sm:$0xff] }
 0x1ea   :  { %2187 = vmatprep.subr.mxu0 %v1751_v44  ;;  %2117 = vmatpush1.msra.mxu1 %v1558_v43  ;;  %v1870_v44 = vld [vmem:[#allocation8 + $0xba0] sm:$0xff]  ;;  %v1673_v43 = vld [vmem:[#allocation8 + $0x578] sm:$0xff] }
 0x1eb   :  { %2188 = vmatpush1.msra.mxu0 %v1750_v54  ;;  %2118 = vmatprep.subr.mxu1 %v1553_v51  ;;  %v1865_v54 = vld [vmem:[#allocation8 + $0xb78] sm:$0xff]  ;;  %v1672_v51 = vld [vmem:[#allocation8 + $0x570] sm:$0xff] }
 0x1ec   :  { %2189 = vmatprep.subr.mxu0 %v1745_v37  ;;  %2119 = vmatpush1.msra.mxu1 %v1552_v14  ;;  %v1864_v37 = vld [vmem:[#allocation8 + $0xb70] sm:$0xff]  ;;  %v1667_v14 = vld [vmem:[#allocation8 + $0x548] sm:$0xff] }
 0x1ed   :  { %2190 = vmatpush1.msra.mxu0 %v1744_v39  ;;  %2120 = vmatprep.subr.mxu1 %v1547_v2  ;;  %v1859_v39 = vld [vmem:[#allocation8 + $0xb48] sm:$0xff]  ;;  %v1666_v2 = vld [vmem:[#allocation8 + $0x540] sm:$0xff] }
 0x1ee   :  { %2191 = vmatprep.subr.mxu0 %v1739_v46  ;;  %2121 = vmatpush1.msra.mxu1 %v1546_v49  ;;  %v1858_v46 = vld [vmem:[#allocation8 + $0xb40] sm:$0xff]  ;;  %v1661_v49 = vld [vmem:[#allocation8 + $0x518] sm:$0xff] }
 0x1ef   :  { %2192 = vmatpush1.msra.mxu0 %v1738_v61  ;;  %2122 = vmatprep.subr.mxu1 %v1541_v55  ;;  %v1853_v61 = vld [vmem:[#allocation8 + $0xb18] sm:$0xff]  ;;  %v1660_v55 = vld [vmem:[#allocation8 + $0x510] sm:$0xff] }
 0x1f0   :  { %2193 = vmatprep.subr.mxu0 %v1733_v60  ;;  %2123 = vmatpush1.msra.mxu1 %v1540_v57  ;;  %v1852_v60 = vld [vmem:[#allocation8 + $0xb10] sm:$0xff]  ;;  %v1655_v57 = vld [vmem:[#allocation8 + $0x4e8] sm:$0xff] }
 0x1f1   :  { %2194 = vmatpush1.msra.mxu0 %v1732_v21  ;;  %2124 = vmatprep.subr.mxu1 %v1535_v3  ;;  %v1847_v21 = vld [vmem:[#allocation8 + $0xae8] sm:$0xff]  ;;  %v1654_v3 = vld [vmem:[#allocation8 + $0x4e0] sm:$0xff] }
 0x1f2   :  { %2195 = vmatprep.subr.mxu0 %v1727_v48  ;;  %2125 = vmatpush1.msra.mxu1 %v1534_v36  ;;  %v1846_v48 = vld [vmem:[#allocation8 + $0xae0] sm:$0xff]  ;;  %v1649_v36 = vld [vmem:[#allocation8 + $0x4b8] sm:$0xff] }
 0x1f3   :  { %2196 = vmatpush1.msra.mxu0 %v1726_v53  ;;  %2126 = vmatprep.subr.mxu1 %v1529_v31  ;;  %v1841_v53 = vld [vmem:[#allocation8 + $0xab8] sm:$0xff]  ;;  %v1648_v31 = vld [vmem:[#allocation8 + $0x4b0] sm:$0xff] }
 0x1f4   :  { %2197 = vmatprep.subr.mxu0 %v1721_v52  ;;  %2127 = vmatpush1.msra.mxu1 %v1528_v62  ;;  %v1840_v52 = vld [vmem:[#allocation8 + $0xab0] sm:$0xff]  ;;  %v1643_v62 = vld [vmem:[#allocation8 + $0x488] sm:$0xff] }
 0x1f5   :  { %2198 = vmatpush1.msra.mxu0 %v1720_v38  ;;  %2128 = vmatprep.subr.mxu1 %v1523_v7  ;;  %v1835_v38 = vld [vmem:[#allocation8 + $0xa88] sm:$0xff]  ;;  %v1642_v7 = vld [vmem:[#allocation8 + $0x480] sm:$0xff] }
 0x1f6   :  { %2199 = vmatprep.subr.mxu0 %v1715_v23  ;;  %2129 = vmatpush1.msra.mxu1 %v1522_v56  ;;  %v1834_v23 = vld [vmem:[#allocation8 + $0xa80] sm:$0xff]  ;;  %v1637_v56 = vld [vmem:[#allocation8 + $0x458] sm:$0xff] }
 0x1f7   :  { %2200 = vmatpush1.msra.mxu0 %v1714_v58  ;;  %2130 = vmatprep.subr.mxu1 %v1517_v5  ;;  %v1829_v58 = vld [vmem:[#allocation8 + $0xa58] sm:$0xff]  ;;  %v1636_v5 = vld [vmem:[#allocation8 + $0x450] sm:$0xff] }
 0x1f8   :  { %2201 = vmatprep.subr.mxu0 %v1709_v9  ;;  %2131 = vmatpush1.msra.mxu1 %v1516_v63  ;;  %v1828_v9 = vld [vmem:[#allocation8 + $0xa50] sm:$0xff]  ;;  %v1631_v63 = vld [vmem:[#allocation8 + $0x428] sm:$0xff] }
 0x1f9   :  { %2202 = vmatpush1.msra.mxu0 %v1708_v0  ;;  %2132 = vmatprep.subr.mxu1 %v1511_v13  ;;  %v1823_v0 = vld [vmem:[#allocation8 + $0xa28] sm:$0xff]  ;;  %v1630_v13 = vld [vmem:[#allocation8 + $0x420] sm:$0xff] }
 0x1fa   :  { %2203 = vmatprep.subr.mxu0 %v1703_v27  ;;  %2133 = vmatpush1.msra.mxu1 %v1510_v40  ;;  %v1822_v27 = vld [vmem:[#allocation8 + $0xa20] sm:$0xff]  ;;  %v1625_v40 = vld [vmem:[#allocation8 + $0x3f8] sm:$0xff] }
 0x1fb   :  { %2204 = vmatpush1.msra.mxu0 %v1702_v26  ;;  %2134 = vmatprep.subr.mxu1 %v1505_v6  ;;  %v1817_v26 = vld [vmem:[#allocation8 + $0x9f8] sm:$0xff]  ;;  %v1624_v6 = vld [vmem:[#allocation8 + $0x3f0] sm:$0xff] }
 0x1fc   :  { %2205 = vmatprep.subr.mxu0 %v1697_v1  ;;  %2135 = vmatpush1.msra.mxu1 %v1504_v32  ;;  %v1816_v1 = vld [vmem:[#allocation8 + $0x9f0] sm:$0xff]  ;;  %v1619_v32 = vld [vmem:[#allocation8 + $0x3c8] sm:$0xff] }
 0x1fd   :  { %2206 = vmatpush1.msra.mxu0 %v1696_v25  ;;  %2136 = vmatprep.subr.mxu1 %v1499_v47  ;;  %v1811_v25 = vld [vmem:[#allocation8 + $0x9c8] sm:$0xff]  ;;  %v1618_v47 = vld [vmem:[#allocation8 + $0x3c0] sm:$0xff] }
 0x1fe   :  { %2207 = vmatprep.subr.mxu0 %v1691_v33  ;;  %2137 = vmatpush1.msra.mxu1 %v1498_v22  ;;  %v1810_v33 = vld [vmem:[#allocation8 + $0x9c0] sm:$0xff]  ;;  %v1613_v22 = vld [vmem:[#allocation8 + $0x398] sm:$0xff] }
 0x1ff   :  { %2208 = vmatpush1.msra.mxu0 %v1690_v24  ;;  %2138 = vmatprep.subr.mxu1 %v1685_v35  ;;  %v1805_v24 = vld [vmem:[#allocation8 + $0x998] sm:$0xff]  ;;  %v1612_v35 = vld [vmem:[#allocation8 + $0x390] sm:$0xff] }
 0x200   :  { %2209 = vmatprep.subr.mxu0 %v1877_v16  ;;  %2139 = vmatpush2.msra.mxu1 %v1684_v42  ;;  %v1804_v16 = vld [vmem:[#allocation8 + $0x990] sm:$0xff]  ;;  %v1607_v42 = vld [vmem:[#allocation8 + $0x368] sm:$0xff] }
 0x201   :  { %2210 = vmatpush2.msra.mxu0 %v1876_v45  ;;  %2140 = vmatprep.subr.mxu1 %v1679_v41  ;;  %v1799_v45 = vld [vmem:[#allocation8 + $0x968] sm:$0xff]  ;;  %v1606_v41 = vld [vmem:[#allocation8 + $0x360] sm:$0xff] }
 0x202   :  { %2211 = vmatprep.subr.mxu0 %v1871_v59  ;;  %2141 = vmatpush2.msra.mxu1 %v1678_v28  ;;  %v1798_v59 = vld [vmem:[#allocation8 + $0x960] sm:$0xff]  ;;  %v1601_v28 = vld [vmem:[#allocation8 + $0x338] sm:$0xff] }
 0x203   :  { %2212 = vmatpush2.msra.mxu0 %v1870_v44  ;;  %2142 = vmatprep.subr.mxu1 %v1673_v43  ;;  %v1793_v44 = vld [vmem:[#allocation8 + $0x938] sm:$0xff]  ;;  %v1600_v43 = vld [vmem:[#allocation8 + $0x330] sm:$0xff] }
 0x204   :  { %2213 = vmatprep.subr.mxu0 %v1865_v54  ;;  %2143 = vmatpush2.msra.mxu1 %v1672_v51  ;;  %v1792_v54 = vld [vmem:[#allocation8 + $0x930] sm:$0xff]  ;;  %v1595_v51 = vld [vmem:[#allocation8 + $0x308] sm:$0xff] }
 0x205   :  { %2214 = vmatpush2.msra.mxu0 %v1864_v37  ;;  %2144 = vmatprep.subr.mxu1 %v1667_v14  ;;  %v1787_v37 = vld [vmem:[#allocation8 + $0x908] sm:$0xff]  ;;  %v1594_v14 = vld [vmem:[#allocation8 + $0x300] sm:$0xff] }
 0x206   :  { %2215 = vmatprep.subr.mxu0 %v1859_v39  ;;  %2145 = vmatpush2.msra.mxu1 %v1666_v2  ;;  %v1786_v39 = vld [vmem:[#allocation8 + $0x900] sm:$0xff]  ;;  %v1973_v2 = vld [vmem:[#allocation8 + $0xed8] sm:$0xff] }
 0x207   :  { %2216 = vmatpush2.msra.mxu0 %v1858_v46  ;;  %2146 = vmatprep.subr.mxu1 %v1661_v49  ;;  %v1591_v46 = vld [vmem:[#allocation8 + $0x2e8] sm:$0xff]  ;;  %v1972_v49 = vld [vmem:[#allocation8 + $0xed0] sm:$0xff] }
 0x208   :  { %2217 = vmatprep.subr.mxu0 %v1853_v61  ;;  %2147 = vmatpush2.msra.mxu1 %v1660_v55  ;;  %v1590_v61 = vld [vmem:[#allocation8 + $0x2e0] sm:$0xff]  ;;  %v1967_v55 = vld [vmem:[#allocation8 + $0xea8] sm:$0xff] }
 0x209   :  { %2218 = vmatpush2.msra.mxu0 %v1852_v60  ;;  %2148 = vmatprep.subr.mxu1 %v1655_v57  ;;  %v1585_v60 = vld [vmem:[#allocation8 + $0x2b8] sm:$0xff]  ;;  %v1966_v57 = vld [vmem:[#allocation8 + $0xea0] sm:$0xff] }
 0x20a   :  { %2219 = vmatprep.subr.mxu0 %v1847_v21  ;;  %2149 = vmatpush2.msra.mxu1 %v1654_v3  ;;  %v1584_v21 = vld [vmem:[#allocation8 + $0x2b0] sm:$0xff]  ;;  %v1961_v3 = vld [vmem:[#allocation8 + $0xe78] sm:$0xff] }
 0x20b   :  { %2220 = vmatpush2.msra.mxu0 %v1846_v48  ;;  %2150 = vmatprep.subr.mxu1 %v1649_v36  ;;  %v1579_v48 = vld [vmem:[#allocation8 + $0x288] sm:$0xff]  ;;  %v1960_v36 = vld [vmem:[#allocation8 + $0xe70] sm:$0xff] }
 0x20c   :  { %2221 = vmatprep.subr.mxu0 %v1841_v53  ;;  %2151 = vmatpush2.msra.mxu1 %v1648_v31  ;;  %v1578_v53 = vld [vmem:[#allocation8 + $0x280] sm:$0xff]  ;;  %v1955_v31 = vld [vmem:[#allocation8 + $0xe48] sm:$0xff] }
 0x20d   :  { %2222 = vmatpush2.msra.mxu0 %v1840_v52  ;;  %2152 = vmatprep.subr.mxu1 %v1643_v62  ;;  %v1573_v52 = vld [vmem:[#allocation8 + $0x258] sm:$0xff]  ;;  %v1954_v62 = vld [vmem:[#allocation8 + $0xe40] sm:$0xff] }
 0x20e   :  { %2223 = vmatprep.subr.mxu0 %v1835_v38  ;;  %2153 = vmatpush2.msra.mxu1 %v1642_v7  ;;  %v1572_v38 = vld [vmem:[#allocation8 + $0x250] sm:$0xff]  ;;  %v1949_v7 = vld [vmem:[#allocation8 + $0xe18] sm:$0xff] }
 0x20f   :  { %2224 = vmatpush2.msra.mxu0 %v1834_v23  ;;  %2154 = vmatprep.subr.mxu1 %v1637_v56  ;;  %v1567_v23 = vld [vmem:[#allocation8 + $0x228] sm:$0xff]  ;;  %v1948_v56 = vld [vmem:[#allocation8 + $0xe10] sm:$0xff] }
 0x210   :  { %2225 = vmatprep.subr.mxu0 %v1829_v58  ;;  %2155 = vmatpush2.msra.mxu1 %v1636_v5  ;;  %v1566_v58 = vld [vmem:[#allocation8 + $0x220] sm:$0xff]  ;;  %v1943_v5 = vld [vmem:[#allocation8 + $0xde8] sm:$0xff] }
 0x211   :  { %2226 = vmatpush2.msra.mxu0 %v1828_v9  ;;  %2156 = vmatprep.subr.mxu1 %v1631_v63  ;;  %v1561_v9 = vld [vmem:[#allocation8 + $0x1f8] sm:$0xff]  ;;  %v1942_v63 = vld [vmem:[#allocation8 + $0xde0] sm:$0xff] }
 0x212   :  { %2227 = vmatprep.subr.mxu0 %v1823_v0  ;;  %2157 = vmatpush2.msra.mxu1 %v1630_v13  ;;  %v1560_v0 = vld [vmem:[#allocation8 + $0x1f0] sm:$0xff]  ;;  %v1937_v13 = vld [vmem:[#allocation8 + $0xdb8] sm:$0xff] }
 0x213   :  { %2228 = vmatpush2.msra.mxu0 %v1822_v27  ;;  %2158 = vmatprep.subr.mxu1 %v1625_v40  ;;  %v1555_v27 = vld [vmem:[#allocation8 + $0x1c8] sm:$0xff]  ;;  %v1936_v40 = vld [vmem:[#allocation8 + $0xdb0] sm:$0xff] }
 0x214   :  { %2229 = vmatprep.subr.mxu0 %v1817_v26  ;;  %2159 = vmatpush2.msra.mxu1 %v1624_v6  ;;  %v1554_v26 = vld [vmem:[#allocation8 + $0x1c0] sm:$0xff]  ;;  %v1931_v6 = vld [vmem:[#allocation8 + $0xd88] sm:$0xff] }
 0x215   :  { %2230 = vmatpush2.msra.mxu0 %v1816_v1  ;;  %2160 = vmatprep.subr.mxu1 %v1619_v32  ;;  %v1549_v1 = vld [vmem:[#allocation8 + $0x198] sm:$0xff]  ;;  %v1930_v32 = vld [vmem:[#allocation8 + $0xd80] sm:$0xff] }
 0x216   :  { %2231 = vmatprep.subr.mxu0 %v1811_v25  ;;  %2161 = vmatpush2.msra.mxu1 %v1618_v47  ;;  %v1548_v25 = vld [vmem:[#allocation8 + $0x190] sm:$0xff]  ;;  %v1925_v47 = vld [vmem:[#allocation8 + $0xd58] sm:$0xff] }
 0x217   :  { %2232 = vmatpush2.msra.mxu0 %v1810_v33  ;;  %2162 = vmatprep.subr.mxu1 %v1613_v22  ;;  %v1543_v33 = vld [vmem:[#allocation8 + $0x168] sm:$0xff]  ;;  %v1924_v22 = vld [vmem:[#allocation8 + $0xd50] sm:$0xff] }
 0x218   :  { %2233 = vmatprep.subr.mxu0 %v1805_v24  ;;  %2163 = vmatpush2.msra.mxu1 %v1612_v35  ;;  %v1542_v24 = vld [vmem:[#allocation8 + $0x160] sm:$0xff]  ;;  %v1919_v35 = vld [vmem:[#allocation8 + $0xd28] sm:$0xff] }
 0x219   :  { %2234 = vmatpush2.msra.mxu0 %v1804_v16  ;;  %2164 = vmatprep.subr.mxu1 %v1607_v42  ;;  %v1537_v16 = vld [vmem:[#allocation8 + $0x138] sm:$0xff]  ;;  %v1918_v42 = vld [vmem:[#allocation8 + $0xd20] sm:$0xff] }
 0x21a   :  { %2235 = vmatprep.subr.mxu0 %v1799_v45  ;;  %2165 = vmatpush2.msra.mxu1 %v1606_v41  ;;  %v1536_v45 = vld [vmem:[#allocation8 + $0x130] sm:$0xff]  ;;  %v1913_v41 = vld [vmem:[#allocation8 + $0xcf8] sm:$0xff] }
 0x21b   :  { %2236 = vmatpush2.msra.mxu0 %v1798_v59  ;;  %2166 = vmatprep.subr.mxu1 %v1601_v28  ;;  %v1531_v59 = vld [vmem:[#allocation8 + $0x108] sm:$0xff]  ;;  %v1912_v28 = vld [vmem:[#allocation8 + $0xcf0] sm:$0xff] }
 0x21c   :  { %2237 = vmatprep.subr.mxu0 %v1793_v44  ;;  %2167 = vmatpush2.msra.mxu1 %v1600_v43  ;;  %v1530_v44 = vld [vmem:[#allocation8 + $0x100] sm:$0xff]  ;;  %v1907_v43 = vld [vmem:[#allocation8 + $0xcc8] sm:$0xff] }
 0x21d   :  { %2238 = vmatpush2.msra.mxu0 %v1792_v54  ;;  %2168 = vmatprep.subr.mxu1 %v1595_v51  ;;  %v1525_v54 = vld [vmem:[#allocation8 + $0xd8] sm:$0xff]  ;;  %v1906_v51 = vld [vmem:[#allocation8 + $0xcc0] sm:$0xff] }
 0x21e   :  { %2239 = vmatprep.subr.mxu0 %v1787_v37  ;;  %2169 = vmatpush2.msra.mxu1 %v1594_v14  ;;  %v1524_v37 = vld [vmem:[#allocation8 + $0xd0] sm:$0xff]  ;;  %v1901_v14 = vld [vmem:[#allocation8 + $0xc98] sm:$0xff] }
 0x21f   :  { %2240 = vmatpush2.msra.mxu0 %v1786_v39  ;;  %2171 = vmatmul.mubr.f32.vlgmr.msra.gmra.mxu1 %v4213_v34  ;;  %v1519_v39 = vld [vmem:[#allocation8 + $0xa8] sm:$0xff] }
 0x220   :  { %2242 = vmatmul.mubr.f32.vlgmr.msra.gmra.mxu0 %v4354_v30  ;;  %2248 = vmatprep.subr.mxu1 %v1973_v2  ;;  %v1900_v2 = vld [vmem:[#allocation8 + $0xc90] sm:$0xff] }
 0x221   :  { %2319 = vmatprep.subr.mxu0 %v1591_v46  ;;  %2249 = vmatpush1.msra.mxu1 %v1972_v49  ;;  %v1518_v46 = vld [vmem:[#allocation8 + $0xa0] sm:$0xff]  ;;  %v1895_v49 = vld [vmem:[#allocation8 + $0xc68] sm:$0xff] }
 0x222   :  { %2312 = vmatprep.mubr.f32.mxu1 %v4343_v8  ;;  %2320 = vmatpush1.msra.mxu0 %v1590_v61  ;;  %v1513_v61 = vld [vmem:[#allocation8 + $0x78] sm:$0xff] }
 0x223   :  { %2383 = vmatprep.mubr.f32.mxu0 %v4203_v15  ;;  %2250 = vmatprep.subr.mxu1 %v1967_v55  ;;  %v1894_v55 = vld [vmem:[#allocation8 + $0xc60] sm:$0xff] }
 0x224   :  { %2321 = vmatprep.subr.mxu0 %v1585_v60  ;;  %2251 = vmatpush1.msra.mxu1 %v1966_v57  ;;  %v1512_v60 = vld [vmem:[#allocation8 + $0x70] sm:$0xff]  ;;  %v1889_v57 = vld [vmem:[#allocation8 + $0xc38] sm:$0xff] }
 0x225   :  { %2322 = vmatpush1.msra.mxu0 %v1584_v21  ;;  %2252 = vmatprep.subr.mxu1 %v1961_v3  ;;  %v1507_v21 = vld [vmem:[#allocation8 + $0x48] sm:$0xff]  ;;  %v1888_v3 = vld [vmem:[#allocation8 + $0xc30] sm:$0xff] }
 0x226   :  { %2323 = vmatprep.subr.mxu0 %v1579_v48  ;;  %2253 = vmatpush1.msra.mxu1 %v1960_v36  ;;  %v1506_v48 = vld [vmem:[#allocation8 + $0x40] sm:$0xff]  ;;  %v1883_v36 = vld [vmem:[#allocation8 + $0xc08] sm:$0xff] }
 0x227   :  { %2324 = vmatpush1.msra.mxu0 %v1578_v53  ;;  %2254 = vmatprep.subr.mxu1 %v1955_v31  ;;  %v1501_v53 = vld [vmem:[#allocation8 + $0x18] sm:$0xff]  ;;  %v1882_v31 = vld [vmem:[#allocation8 + $0xc00] sm:$0xff] }
 0x228   :  { %2325 = vmatprep.subr.mxu0 %v1573_v52  ;;  %2255 = vmatpush1.msra.mxu1 %v1954_v62  ;;  %v1500_v52 = vld [vmem:[#allocation8 + $0x10] sm:$0xff]  ;;  %v2069_v62 = vld [vmem:[#allocation8 + $0x11d8] sm:$0xff] }
 0x229   :  { %2326 = vmatpush1.msra.mxu0 %v1572_v38  ;;  %2256 = vmatprep.subr.mxu1 %v1949_v7  ;;  %v1687_v38 = vld [vmem:[#allocation8 + $0x5e8] sm:$0xff]  ;;  %v2068_v7 = vld [vmem:[#allocation8 + $0x11d0] sm:$0xff] }
 0x22a   :  { %2327 = vmatprep.subr.mxu0 %v1567_v23  ;;  %2257 = vmatpush1.msra.mxu1 %v1948_v56  ;;  %v1686_v23 = vld [vmem:[#allocation8 + $0x5e0] sm:$0xff]  ;;  %v2063_v56 = vld [vmem:[#allocation8 + $0x11a8] sm:$0xff] }
 0x22b   :  { %2328 = vmatpush1.msra.mxu0 %v1566_v58  ;;  %2258 = vmatprep.subr.mxu1 %v1943_v5  ;;  %v1681_v58 = vld [vmem:[#allocation8 + $0x5b8] sm:$0xff]  ;;  %v2062_v5 = vld [vmem:[#allocation8 + $0x11a0] sm:$0xff] }
 0x22c   :  { %2329 = vmatprep.subr.mxu0 %v1561_v9  ;;  %2259 = vmatpush1.msra.mxu1 %v1942_v63  ;;  %v1680_v9 = vld [vmem:[#allocation8 + $0x5b0] sm:$0xff]  ;;  %v2057_v63 = vld [vmem:[#allocation8 + $0x1178] sm:$0xff] }
 0x22d   :  { %2330 = vmatpush1.msra.mxu0 %v1560_v0  ;;  %2260 = vmatprep.subr.mxu1 %v1937_v13  ;;  %v1675_v0 = vld [vmem:[#allocation8 + $0x588] sm:$0xff]  ;;  %v2056_v13 = vld [vmem:[#allocation8 + $0x1170] sm:$0xff] }
 0x22e   :  { %2331 = vmatprep.subr.mxu0 %v1555_v27  ;;  %2261 = vmatpush1.msra.mxu1 %v1936_v40  ;;  %v1674_v27 = vld [vmem:[#allocation8 + $0x580] sm:$0xff]  ;;  %v2051_v40 = vld [vmem:[#allocation8 + $0x1148] sm:$0xff] }
 0x22f   :  { %2332 = vmatpush1.msra.mxu0 %v1554_v26  ;;  %2262 = vmatprep.subr.mxu1 %v1931_v6  ;;  %v1669_v26 = vld [vmem:[#allocation8 + $0x558] sm:$0xff]  ;;  %v2050_v6 = vld [vmem:[#allocation8 + $0x1140] sm:$0xff] }
 0x230   :  { %2333 = vmatprep.subr.mxu0 %v1549_v1  ;;  %2263 = vmatpush1.msra.mxu1 %v1930_v32  ;;  %v1668_v1 = vld [vmem:[#allocation8 + $0x550] sm:$0xff]  ;;  %v2045_v32 = vld [vmem:[#allocation8 + $0x1118] sm:$0xff] }
 0x231   :  { %2334 = vmatpush1.msra.mxu0 %v1548_v25  ;;  %2264 = vmatprep.subr.mxu1 %v1925_v47  ;;  %v1663_v25 = vld [vmem:[#allocation8 + $0x528] sm:$0xff]  ;;  %v2044_v47 = vld [vmem:[#allocation8 + $0x1110] sm:$0xff] }
 0x232   :  { %2335 = vmatprep.subr.mxu0 %v1543_v33  ;;  %2265 = vmatpush1.msra.mxu1 %v1924_v22  ;;  %v1662_v33 = vld [vmem:[#allocation8 + $0x520] sm:$0xff]  ;;  %v2039_v22 = vld [vmem:[#allocation8 + $0x10e8] sm:$0xff] }
 0x233   :  { %2336 = vmatpush1.msra.mxu0 %v1542_v24  ;;  %2266 = vmatprep.subr.mxu1 %v1919_v35  ;;  %v1657_v24 = vld [vmem:[#allocation8 + $0x4f8] sm:$0xff]  ;;  %v2038_v35 = vld [vmem:[#allocation8 + $0x10e0] sm:$0xff] }
 0x234   :  { %2337 = vmatprep.subr.mxu0 %v1537_v16  ;;  %2267 = vmatpush1.msra.mxu1 %v1918_v42  ;;  %v1656_v16 = vld [vmem:[#allocation8 + $0x4f0] sm:$0xff]  ;;  %v2033_v42 = vld [vmem:[#allocation8 + $0x10b8] sm:$0xff] }
 0x235   :  { %2338 = vmatpush1.msra.mxu0 %v1536_v45  ;;  %2268 = vmatprep.subr.mxu1 %v1913_v41  ;;  %v1651_v45 = vld [vmem:[#allocation8 + $0x4c8] sm:$0xff]  ;;  %v2032_v41 = vld [vmem:[#allocation8 + $0x10b0] sm:$0xff] }
 0x236   :  { %2339 = vmatprep.subr.mxu0 %v1531_v59  ;;  %2269 = vmatpush1.msra.mxu1 %v1912_v28  ;;  %v1650_v59 = vld [vmem:[#allocation8 + $0x4c0] sm:$0xff]  ;;  %v2027_v28 = vld [vmem:[#allocation8 + $0x1088] sm:$0xff] }
 0x237   :  { %2340 = vmatpush1.msra.mxu0 %v1530_v44  ;;  %2270 = vmatprep.subr.mxu1 %v1907_v43  ;;  %v1645_v44 = vld [vmem:[#allocation8 + $0x498] sm:$0xff]  ;;  %v2026_v43 = vld [vmem:[#allocation8 + $0x1080] sm:$0xff] }
 0x238   :  { %2341 = vmatprep.subr.mxu0 %v1525_v54  ;;  %2271 = vmatpush1.msra.mxu1 %v1906_v51  ;;  %v1644_v54 = vld [vmem:[#allocation8 + $0x490] sm:$0xff]  ;;  %v2021_v51 = vld [vmem:[#allocation8 + $0x1058] sm:$0xff] }
 0x239   :  { %2342 = vmatpush1.msra.mxu0 %v1524_v37  ;;  %2272 = vmatprep.subr.mxu1 %v1901_v14  ;;  %v1639_v37 = vld [vmem:[#allocation8 + $0x468] sm:$0xff]  ;;  %v2020_v14 = vld [vmem:[#allocation8 + $0x1050] sm:$0xff] }
 0x23a   :  { %2343 = vmatprep.subr.mxu0 %v1519_v39  ;;  %2273 = vmatpush1.msra.mxu1 %v1900_v2  ;;  %v1638_v39 = vld [vmem:[#allocation8 + $0x460] sm:$0xff]  ;;  %v2015_v2 = vld [vmem:[#allocation8 + $0x1028] sm:$0xff] }
 0x23b   :  { %2344 = vmatpush1.msra.mxu0 %v1518_v46  ;;  %2274 = vmatprep.subr.mxu1 %v1895_v49  ;;  %v1633_v46 = vld [vmem:[#allocation8 + $0x438] sm:$0xff]  ;;  %v2014_v49 = vld [vmem:[#allocation8 + $0x1020] sm:$0xff] }
 0x23c   :  { %2345 = vmatprep.subr.mxu0 %v1513_v61  ;;  %2275 = vmatpush1.msra.mxu1 %v1894_v55  ;;  %v1632_v61 = vld [vmem:[#allocation8 + $0x430] sm:$0xff]  ;;  %v2009_v55 = vld [vmem:[#allocation8 + $0xff8] sm:$0xff] }
 0x23d   :  { %2346 = vmatpush1.msra.mxu0 %v1512_v60  ;;  %2276 = vmatprep.subr.mxu1 %v1889_v57  ;;  %v1627_v60 = vld [vmem:[#allocation8 + $0x408] sm:$0xff]  ;;  %v2008_v57 = vld [vmem:[#allocation8 + $0xff0] sm:$0xff] }
 0x23e   :  { %2347 = vmatprep.subr.mxu0 %v1507_v21  ;;  %2277 = vmatpush1.msra.mxu1 %v1888_v3  ;;  %v1626_v21 = vld [vmem:[#allocation8 + $0x400] sm:$0xff]  ;;  %v2003_v3 = vld [vmem:[#allocation8 + $0xfc8] sm:$0xff] }
 0x23f   :  { %2348 = vmatpush1.msra.mxu0 %v1506_v48  ;;  %2278 = vmatprep.subr.mxu1 %v1883_v36  ;;  %v1621_v48 = vld [vmem:[#allocation8 + $0x3d8] sm:$0xff]  ;;  %v2002_v36 = vld [vmem:[#allocation8 + $0xfc0] sm:$0xff] }
 0x240   :  { %2349 = vmatprep.subr.mxu0 %v1501_v53  ;;  %2279 = vmatpush1.msra.mxu1 %v1882_v31  ;;  %v1620_v53 = vld [vmem:[#allocation8 + $0x3d0] sm:$0xff]  ;;  %v1997_v31 = vld [vmem:[#allocation8 + $0xf98] sm:$0xff] }
 0x241   :  { %2350 = vmatpush1.msra.mxu0 %v1500_v52  ;;  %2280 = vmatprep.subr.mxu1 %v2069_v62  ;;  %v1615_v52 = vld [vmem:[#allocation8 + $0x3a8] sm:$0xff]  ;;  %v1996_v62 = vld [vmem:[#allocation8 + $0xf90] sm:$0xff] }
 0x242   :  { %2351 = vmatprep.subr.mxu0 %v1687_v38  ;;  %2281 = vmatpush2.msra.mxu1 %v2068_v7  ;;  %v1614_v38 = vld [vmem:[#allocation8 + $0x3a0] sm:$0xff]  ;;  %v1991_v7 = vld [vmem:[#allocation8 + $0xf68] sm:$0xff] }
 0x243   :  { %2352 = vmatpush2.msra.mxu0 %v1686_v23  ;;  %2282 = vmatprep.subr.mxu1 %v2063_v56  ;;  %v1609_v23 = vld [vmem:[#allocation8 + $0x378] sm:$0xff]  ;;  %v1990_v56 = vld [vmem:[#allocation8 + $0xf60] sm:$0xff] }
 0x244   :  { %2353 = vmatprep.subr.mxu0 %v1681_v58  ;;  %2283 = vmatpush2.msra.mxu1 %v2062_v5  ;;  %v1608_v58 = vld [vmem:[#allocation8 + $0x370] sm:$0xff]  ;;  %v1985_v5 = vld [vmem:[#allocation8 + $0xf38] sm:$0xff] }
 0x245   :  { %2354 = vmatpush2.msra.mxu0 %v1680_v9  ;;  %2284 = vmatprep.subr.mxu1 %v2057_v63  ;;  %v1603_v9 = vld [vmem:[#allocation8 + $0x348] sm:$0xff]  ;;  %v1984_v63 = vld [vmem:[#allocation8 + $0xf30] sm:$0xff] }
 0x246   :  { %2355 = vmatprep.subr.mxu0 %v1675_v0  ;;  %2285 = vmatpush2.msra.mxu1 %v2056_v13  ;;  %v1602_v0 = vld [vmem:[#allocation8 + $0x340] sm:$0xff]  ;;  %v1979_v13 = vld [vmem:[#allocation8 + $0xf08] sm:$0xff] }
 0x247   :  { %2356 = vmatpush2.msra.mxu0 %v1674_v27  ;;  %2286 = vmatprep.subr.mxu1 %v2051_v40  ;;  %v1597_v27 = vld [vmem:[#allocation8 + $0x318] sm:$0xff]  ;;  %v1978_v40 = vld [vmem:[#allocation8 + $0xf00] sm:$0xff] }
 0x248   :  { %2357 = vmatprep.subr.mxu0 %v1669_v26  ;;  %2287 = vmatpush2.msra.mxu1 %v2050_v6  ;;  %v1596_v26 = vld [vmem:[#allocation8 + $0x310] sm:$0xff]  ;;  %v1783_v6 = vld [vmem:[#allocation8 + $0x8e8] sm:$0xff] }
 0x249   :  { %2358 = vmatpush2.msra.mxu0 %v1668_v1  ;;  %2288 = vmatprep.subr.mxu1 %v2045_v32  ;;  %v1975_v1 = vld [vmem:[#allocation8 + $0xee8] sm:$0xff]  ;;  %v1782_v32 = vld [vmem:[#allocation8 + $0x8e0] sm:$0xff] }
 0x24a   :  { %2359 = vmatprep.subr.mxu0 %v1663_v25  ;;  %2289 = vmatpush2.msra.mxu1 %v2044_v47  ;;  %v1974_v25 = vld [vmem:[#allocation8 + $0xee0] sm:$0xff]  ;;  %v1777_v47 = vld [vmem:[#allocation8 + $0x8b8] sm:$0xff] }
 0x24b   :  { %2360 = vmatpush2.msra.mxu0 %v1662_v33  ;;  %2290 = vmatprep.subr.mxu1 %v2039_v22  ;;  %v1969_v33 = vld [vmem:[#allocation8 + $0xeb8] sm:$0xff]  ;;  %v1776_v22 = vld [vmem:[#allocation8 + $0x8b0] sm:$0xff] }
 0x24c   :  { %2361 = vmatprep.subr.mxu0 %v1657_v24  ;;  %2291 = vmatpush2.msra.mxu1 %v2038_v35  ;;  %v1968_v24 = vld [vmem:[#allocation8 + $0xeb0] sm:$0xff]  ;;  %v1771_v35 = vld [vmem:[#allocation8 + $0x888] sm:$0xff] }
 0x24d   :  { %2362 = vmatpush2.msra.mxu0 %v1656_v16  ;;  %2292 = vmatprep.subr.mxu1 %v2033_v42  ;;  %v1963_v16 = vld [vmem:[#allocation8 + $0xe88] sm:$0xff]  ;;  %v1770_v42 = vld [vmem:[#allocation8 + $0x880] sm:$0xff] }
 0x24e   :  { %2363 = vmatprep.subr.mxu0 %v1651_v45  ;;  %2293 = vmatpush2.msra.mxu1 %v2032_v41  ;;  %v1962_v45 = vld [vmem:[#allocation8 + $0xe80] sm:$0xff]  ;;  %v1765_v41 = vld [vmem:[#allocation8 + $0x858] sm:$0xff] }
 0x24f   :  { %2364 = vmatpush2.msra.mxu0 %v1650_v59  ;;  %2294 = vmatprep.subr.mxu1 %v2027_v28  ;;  %v1957_v59 = vld [vmem:[#allocation8 + $0xe58] sm:$0xff]  ;;  %v1764_v28 = vld [vmem:[#allocation8 + $0x850] sm:$0xff] }
 0x250   :  { %2365 = vmatprep.subr.mxu0 %v1645_v44  ;;  %2295 = vmatpush2.msra.mxu1 %v2026_v43  ;;  %v1956_v44 = vld [vmem:[#allocation8 + $0xe50] sm:$0xff]  ;;  %v1759_v43 = vld [vmem:[#allocation8 + $0x828] sm:$0xff] }
 0x251   :  { %2366 = vmatpush2.msra.mxu0 %v1644_v54  ;;  %2296 = vmatprep.subr.mxu1 %v2021_v51  ;;  %v1951_v54 = vld [vmem:[#allocation8 + $0xe28] sm:$0xff]  ;;  %v1758_v51 = vld [vmem:[#allocation8 + $0x820] sm:$0xff] }
 0x252   :  { %2367 = vmatprep.subr.mxu0 %v1639_v37  ;;  %2297 = vmatpush2.msra.mxu1 %v2020_v14  ;;  %v1950_v37 = vld [vmem:[#allocation8 + $0xe20] sm:$0xff]  ;;  %v1753_v14 = vld [vmem:[#allocation8 + $0x7f8] sm:$0xff] }
 0x253   :  { %2368 = vmatpush2.msra.mxu0 %v1638_v39  ;;  %2298 = vmatprep.subr.mxu1 %v2015_v2  ;;  %v1945_v39 = vld [vmem:[#allocation8 + $0xdf8] sm:$0xff]  ;;  %v1752_v2 = vld [vmem:[#allocation8 + $0x7f0] sm:$0xff] }
 0x254   :  { %2369 = vmatprep.subr.mxu0 %v1633_v46  ;;  %2299 = vmatpush2.msra.mxu1 %v2014_v49  ;;  %v1944_v46 = vld [vmem:[#allocation8 + $0xdf0] sm:$0xff]  ;;  %v1747_v49 = vld [vmem:[#allocation8 + $0x7c8] sm:$0xff] }
 0x255   :  { %2370 = vmatpush2.msra.mxu0 %v1632_v61  ;;  %2300 = vmatprep.subr.mxu1 %v2009_v55  ;;  %v1939_v61 = vld [vmem:[#allocation8 + $0xdc8] sm:$0xff]  ;;  %v1746_v55 = vld [vmem:[#allocation8 + $0x7c0] sm:$0xff] }
 0x256   :  { %2371 = vmatprep.subr.mxu0 %v1627_v60  ;;  %2301 = vmatpush2.msra.mxu1 %v2008_v57  ;;  %v1938_v60 = vld [vmem:[#allocation8 + $0xdc0] sm:$0xff]  ;;  %v1741_v57 = vld [vmem:[#allocation8 + $0x798] sm:$0xff] }
 0x257   :  { %2372 = vmatpush2.msra.mxu0 %v1626_v21  ;;  %2302 = vmatprep.subr.mxu1 %v2003_v3  ;;  %v1933_v21 = vld [vmem:[#allocation8 + $0xd98] sm:$0xff]  ;;  %v1740_v3 = vld [vmem:[#allocation8 + $0x790] sm:$0xff] }
 0x258   :  { %2373 = vmatprep.subr.mxu0 %v1621_v48  ;;  %2303 = vmatpush2.msra.mxu1 %v2002_v36  ;;  %v1932_v48 = vld [vmem:[#allocation8 + $0xd90] sm:$0xff]  ;;  %v1735_v36 = vld [vmem:[#allocation8 + $0x768] sm:$0xff] }
 0x259   :  { %2374 = vmatpush2.msra.mxu0 %v1620_v53  ;;  %2304 = vmatprep.subr.mxu1 %v1997_v31  ;;  %v1927_v53 = vld [vmem:[#allocation8 + $0xd68] sm:$0xff]  ;;  %v1734_v31 = vld [vmem:[#allocation8 + $0x760] sm:$0xff] }
 0x25a   :  { %2375 = vmatprep.subr.mxu0 %v1615_v52  ;;  %2305 = vmatpush2.msra.mxu1 %v1996_v62  ;;  %v1926_v52 = vld [vmem:[#allocation8 + $0xd60] sm:$0xff]  ;;  %v1729_v62 = vld [vmem:[#allocation8 + $0x738] sm:$0xff] }
 0x25b   :  { %2376 = vmatpush2.msra.mxu0 %v1614_v38  ;;  %2306 = vmatprep.subr.mxu1 %v1991_v7  ;;  %v1921_v38 = vld [vmem:[#allocation8 + $0xd38] sm:$0xff]  ;;  %v1728_v7 = vld [vmem:[#allocation8 + $0x730] sm:$0xff] }
 0x25c   :  { %2377 = vmatprep.subr.mxu0 %v1609_v23  ;;  %2307 = vmatpush2.msra.mxu1 %v1990_v56  ;;  %v1920_v23 = vld [vmem:[#allocation8 + $0xd30] sm:$0xff]  ;;  %v1723_v56 = vld [vmem:[#allocation8 + $0x708] sm:$0xff] }
 0x25d   :  { %2378 = vmatpush2.msra.mxu0 %v1608_v58  ;;  %2308 = vmatprep.subr.mxu1 %v1985_v5  ;;  %v1915_v58 = vld [vmem:[#allocation8 + $0xd08] sm:$0xff]  ;;  %v1722_v5 = vld [vmem:[#allocation8 + $0x700] sm:$0xff] }
 0x25e   :  { %2379 = vmatprep.subr.mxu0 %v1603_v9  ;;  %2309 = vmatpush2.msra.mxu1 %v1984_v63  ;;  %v1914_v9 = vld [vmem:[#allocation8 + $0xd00] sm:$0xff]  ;;  %v1717_v63 = vld [vmem:[#allocation8 + $0x6d8] sm:$0xff] }
 0x25f   :  { %2380 = vmatpush2.msra.mxu0 %v1602_v0  ;;  %2310 = vmatprep.subr.mxu1 %v1979_v13  ;;  %v1909_v0 = vld [vmem:[#allocation8 + $0xcd8] sm:$0xff]  ;;  %v1716_v13 = vld [vmem:[#allocation8 + $0x6d0] sm:$0xff] }
 0x260   :  { %2381 = vmatprep.subr.mxu0 %v1597_v27  ;;  %2311 = vmatpush2.msra.mxu1 %v1978_v40  ;;  %v1908_v27 = vld [vmem:[#allocation8 + $0xcd0] sm:$0xff]  ;;  %v1711_v40 = vld [vmem:[#allocation8 + $0x6a8] sm:$0xff] }
 0x261   :  { %2382 = vmatpush2.msra.mxu0 %v1596_v26  ;;  %2313 = vmatmul.mubr.f32.vlgmr.msra.gmra.mxu1 %v4349_v12  ;;  %v1903_v26 = vld [vmem:[#allocation8 + $0xca8] sm:$0xff] }
 0x262   :  { %2384 = vmatmul.mubr.f32.vlgmr.msra.gmra.mxu0 %v4213_v34  ;;  %2390 = vmatprep.subr.mxu1 %v1783_v6  ;;  %v1710_v6 = vld [vmem:[#allocation8 + $0x6a0] sm:$0xff] }
 0x263   :  { %2461 = vmatprep.subr.mxu0 %v1975_v1  ;;  %2391 = vmatpush1.msra.mxu1 %v1782_v32  ;;  %v1902_v1 = vld [vmem:[#allocation8 + $0xca0] sm:$0xff]  ;;  %v1705_v32 = vld [vmem:[#allocation8 + $0x678] sm:$0xff] }
 0x264   :  { %2454 = vmatprep.mubr.f32.mxu1 %v4228_v29  ;;  %2462 = vmatpush1.msra.mxu0 %v1974_v25  ;;  %v1897_v25 = vld [vmem:[#allocation8 + $0xc78] sm:$0xff] }
 0x265   :  { %2525 = vmatprep.mubr.f32.mxu0 %v4343_v8  ;;  %2392 = vmatprep.subr.mxu1 %v1777_v47  ;;  %v1704_v47 = vld [vmem:[#allocation8 + $0x670] sm:$0xff] }
 0x266   :  { %2463 = vmatprep.subr.mxu0 %v1969_v33  ;;  %2393 = vmatpush1.msra.mxu1 %v1776_v22  ;;  %v1896_v33 = vld [vmem:[#allocation8 + $0xc70] sm:$0xff]  ;;  %v1699_v22 = vld [vmem:[#allocation8 + $0x648] sm:$0xff] }
 0x267   :  { %2464 = vmatpush1.msra.mxu0 %v1968_v24  ;;  %2394 = vmatprep.subr.mxu1 %v1771_v35  ;;  %v1891_v24 = vld [vmem:[#allocation8 + $0xc48] sm:$0xff]  ;;  %v1698_v35 = vld [vmem:[#allocation8 + $0x640] sm:$0xff] }
 0x268   :  { %2465 = vmatprep.subr.mxu0 %v1963_v16  ;;  %2395 = vmatpush1.msra.mxu1 %v1770_v42  ;;  %v1890_v16 = vld [vmem:[#allocation8 + $0xc40] sm:$0xff]  ;;  %v1693_v42 = vld [vmem:[#allocation8 + $0x618] sm:$0xff] }
 0x269   :  { %2466 = vmatpush1.msra.mxu0 %v1962_v45  ;;  %2396 = vmatprep.subr.mxu1 %v1765_v41  ;;  %v1885_v45 = vld [vmem:[#allocation8 + $0xc18] sm:$0xff]  ;;  %v1692_v41 = vld [vmem:[#allocation8 + $0x610] sm:$0xff] }
 0x26a   :  { %2467 = vmatprep.subr.mxu0 %v1957_v59  ;;  %2397 = vmatpush1.msra.mxu1 %v1764_v28  ;;  %v1884_v59 = vld [vmem:[#allocation8 + $0xc10] sm:$0xff]  ;;  %v1879_v28 = vld [vmem:[#allocation8 + $0xbe8] sm:$0xff] }
 0x26b   :  { %2468 = vmatpush1.msra.mxu0 %v1956_v44  ;;  %2398 = vmatprep.subr.mxu1 %v1759_v43  ;;  %v2071_v44 = vld [vmem:[#allocation8 + $0x11e8] sm:$0xff]  ;;  %v1878_v43 = vld [vmem:[#allocation8 + $0xbe0] sm:$0xff] }
 0x26c   :  { %2469 = vmatprep.subr.mxu0 %v1951_v54  ;;  %2399 = vmatpush1.msra.mxu1 %v1758_v51  ;;  %v2070_v54 = vld [vmem:[#allocation8 + $0x11e0] sm:$0xff]  ;;  %v1873_v51 = vld [vmem:[#allocation8 + $0xbb8] sm:$0xff] }
 0x26d   :  { %2470 = vmatpush1.msra.mxu0 %v1950_v37  ;;  %2400 = vmatprep.subr.mxu1 %v1753_v14  ;;  %v2065_v37 = vld [vmem:[#allocation8 + $0x11b8] sm:$0xff]  ;;  %v1872_v14 = vld [vmem:[#allocation8 + $0xbb0] sm:$0xff] }
 0x26e   :  { %2471 = vmatprep.subr.mxu0 %v1945_v39  ;;  %2401 = vmatpush1.msra.mxu1 %v1752_v2  ;;  %v2064_v39 = vld [vmem:[#allocation8 + $0x11b0] sm:$0xff]  ;;  %v1867_v2 = vld [vmem:[#allocation8 + $0xb88] sm:$0xff] }
 0x26f   :  { %2472 = vmatpush1.msra.mxu0 %v1944_v46  ;;  %2402 = vmatprep.subr.mxu1 %v1747_v49  ;;  %v2059_v46 = vld [vmem:[#allocation8 + $0x1188] sm:$0xff]  ;;  %v1866_v49 = vld [vmem:[#allocation8 + $0xb80] sm:$0xff] }
 0x270   :  { %2473 = vmatprep.subr.mxu0 %v1939_v61  ;;  %2403 = vmatpush1.msra.mxu1 %v1746_v55  ;;  %v2058_v61 = vld [vmem:[#allocation8 + $0x1180] sm:$0xff]  ;;  %v1861_v55 = vld [vmem:[#allocation8 + $0xb58] sm:$0xff] }
 0x271   :  { %2474 = vmatpush1.msra.mxu0 %v1938_v60  ;;  %2404 = vmatprep.subr.mxu1 %v1741_v57  ;;  %v2053_v60 = vld [vmem:[#allocation8 + $0x1158] sm:$0xff]  ;;  %v1860_v57 = vld [vmem:[#allocation8 + $0xb50] sm:$0xff] }
 0x272   :  { %2475 = vmatprep.subr.mxu0 %v1933_v21  ;;  %2405 = vmatpush1.msra.mxu1 %v1740_v3  ;;  %v2052_v21 = vld [vmem:[#allocation8 + $0x1150] sm:$0xff]  ;;  %v1855_v3 = vld [vmem:[#allocation8 + $0xb28] sm:$0xff] }
 0x273   :  { %2476 = vmatpush1.msra.mxu0 %v1932_v48  ;;  %2406 = vmatprep.subr.mxu1 %v1735_v36  ;;  %v2047_v48 = vld [vmem:[#allocation8 + $0x1128] sm:$0xff]  ;;  %v1854_v36 = vld [vmem:[#allocation8 + $0xb20] sm:$0xff] }
 0x274   :  { %2477 = vmatprep.subr.mxu0 %v1927_v53  ;;  %2407 = vmatpush1.msra.mxu1 %v1734_v31  ;;  %v2046_v53 = vld [vmem:[#allocation8 + $0x1120] sm:$0xff]  ;;  %v1849_v31 = vld [vmem:[#allocation8 + $0xaf8] sm:$0xff] }
 0x275   :  { %2478 = vmatpush1.msra.mxu0 %v1926_v52  ;;  %2408 = vmatprep.subr.mxu1 %v1729_v62  ;;  %v2041_v52 = vld [vmem:[#allocation8 + $0x10f8] sm:$0xff]  ;;  %v1848_v62 = vld [vmem:[#allocation8 + $0xaf0] sm:$0xff] }
 0x276   :  { %2479 = vmatprep.subr.mxu0 %v1921_v38  ;;  %2409 = vmatpush1.msra.mxu1 %v1728_v7  ;;  %v2040_v38 = vld [vmem:[#allocation8 + $0x10f0] sm:$0xff]  ;;  %v1843_v7 = vld [vmem:[#allocation8 + $0xac8] sm:$0xff] }
 0x277   :  { %2480 = vmatpush1.msra.mxu0 %v1920_v23  ;;  %2410 = vmatprep.subr.mxu1 %v1723_v56  ;;  %v2035_v23 = vld [vmem:[#allocation8 + $0x10c8] sm:$0xff]  ;;  %v1842_v56 = vld [vmem:[#allocation8 + $0xac0] sm:$0xff] }
 0x278   :  { %2481 = vmatprep.subr.mxu0 %v1915_v58  ;;  %2411 = vmatpush1.msra.mxu1 %v1722_v5  ;;  %v2034_v58 = vld [vmem:[#allocation8 + $0x10c0] sm:$0xff]  ;;  %v1837_v5 = vld [vmem:[#allocation8 + $0xa98] sm:$0xff] }
 0x279   :  { %2482 = vmatpush1.msra.mxu0 %v1914_v9  ;;  %2412 = vmatprep.subr.mxu1 %v1717_v63  ;;  %v2029_v9 = vld [vmem:[#allocation8 + $0x1098] sm:$0xff]  ;;  %v1836_v63 = vld [vmem:[#allocation8 + $0xa90] sm:$0xff] }
 0x27a   :  { %2483 = vmatprep.subr.mxu0 %v1909_v0  ;;  %2413 = vmatpush1.msra.mxu1 %v1716_v13  ;;  %v2028_v0 = vld [vmem:[#allocation8 + $0x1090] sm:$0xff]  ;;  %v1831_v13 = vld [vmem:[#allocation8 + $0xa68] sm:$0xff] }
 0x27b   :  { %2484 = vmatpush1.msra.mxu0 %v1908_v27  ;;  %2414 = vmatprep.subr.mxu1 %v1711_v40  ;;  %v2023_v27 = vld [vmem:[#allocation8 + $0x1068] sm:$0xff]  ;;  %v1830_v40 = vld [vmem:[#allocation8 + $0xa60] sm:$0xff] }
 0x27c   :  { %2485 = vmatprep.subr.mxu0 %v1903_v26  ;;  %2415 = vmatpush1.msra.mxu1 %v1710_v6  ;;  %v2022_v26 = vld [vmem:[#allocation8 + $0x1060] sm:$0xff]  ;;  %v1825_v6 = vld [vmem:[#allocation8 + $0xa38] sm:$0xff] }
 0x27d   :  { %2486 = vmatpush1.msra.mxu0 %v1902_v1  ;;  %2416 = vmatprep.subr.mxu1 %v1705_v32  ;;  %v2017_v1 = vld [vmem:[#allocation8 + $0x1038] sm:$0xff]  ;;  %v1824_v32 = vld [vmem:[#allocation8 + $0xa30] sm:$0xff] }
 0x27e   :  { %2487 = vmatprep.subr.mxu0 %v1897_v25  ;;  %2417 = vmatpush1.msra.mxu1 %v1704_v47  ;;  %v2016_v25 = vld [vmem:[#allocation8 + $0x1030] sm:$0xff]  ;;  %v1819_v47 = vld [vmem:[#allocation8 + $0xa08] sm:$0xff] }
 0x27f   :  { %2488 = vmatpush1.msra.mxu0 %v1896_v33  ;;  %2418 = vmatprep.subr.mxu1 %v1699_v22  ;;  %v2011_v33 = vld [vmem:[#allocation8 + $0x1008] sm:$0xff]  ;;  %v1818_v22 = vld [vmem:[#allocation8 + $0xa00] sm:$0xff] }
 0x280   :  { %2489 = vmatprep.subr.mxu0 %v1891_v24  ;;  %2419 = vmatpush1.msra.mxu1 %v1698_v35  ;;  %v2010_v24 = vld [vmem:[#allocation8 + $0x1000] sm:$0xff]  ;;  %v1813_v35 = vld [vmem:[#allocation8 + $0x9d8] sm:$0xff] }
 0x281   :  { %2490 = vmatpush1.msra.mxu0 %v1890_v16  ;;  %2420 = vmatprep.subr.mxu1 %v1693_v42  ;;  %v3163_v16 = vpop.f32.mrf.mxu1  ;;  %v2005_v42 = vld [vmem:[#allocation8 + $0xfd8] sm:$0xff] }
 0x282   :  { %2491 = vmatprep.subr.mxu0 %v1885_v45  ;;  %2421 = vmatpush1.msra.mxu1 %v1692_v41  ;;  %v1812_v45 = vld [vmem:[#allocation8 + $0x9d0] sm:$0xff] }
 0x283   :  { %2492 = vmatpush1.msra.mxu0 %v1884_v59  ;;  %2422 = vmatprep.subr.mxu1 %v1879_v28  ;;  %v2004_v41 = vld [vmem:[#allocation8 + $0xfd0] sm:$0xff]  ;;  %v1807_v59 = vld [vmem:[#allocation8 + $0x9a8] sm:$0xff] }
 0x284   :  { %2493 = vmatprep.subr.mxu0 %v2071_v44  ;;  %2423 = vmatpush2.msra.mxu1 %v1878_v43  ;;  %v1999_v28 = vld [vmem:[#allocation8 + $0xfa8] sm:$0xff]  ;;  %v1806_v44 = vld [vmem:[#allocation8 + $0x9a0] sm:$0xff] }
 0x285   :  { %2494 = vmatpush2.msra.mxu0 %v2070_v54  ;;  %2424 = vmatprep.subr.mxu1 %v1873_v51  ;;  %v1998_v43 = vld [vmem:[#allocation8 + $0xfa0] sm:$0xff]  ;;  %v1801_v54 = vld [vmem:[#allocation8 + $0x978] sm:$0xff]  ;;  %v3164_v51 = vpop.f32.mrf.mxu1 }
 0x286   :  { %2495 = vmatprep.subr.mxu0 %v2065_v37  ;;  %2425 = vmatpush2.msra.mxu1 %v1872_v14  ;;  %v1993_v37 = vld [vmem:[#allocation8 + $0xf78] sm:$0xff]  ;;  %v1800_v14 = vld [vmem:[#allocation8 + $0x970] sm:$0xff] }
 0x287   :  { %2496 = vmatpush2.msra.mxu0 %v2064_v39  ;;  %2426 = vmatprep.subr.mxu1 %v1867_v2  ;;  %v1992_v39 = vld [vmem:[#allocation8 + $0xf70] sm:$0xff]  ;;  %v1795_v2 = vld [vmem:[#allocation8 + $0x948] sm:$0xff] }
 0x288   :  { %2497 = vmatprep.subr.mxu0 %v2059_v46  ;;  %2427 = vmatpush2.msra.mxu1 %v1866_v49  ;;  %v1987_v46 = vld [vmem:[#allocation8 + $0xf48] sm:$0xff]  ;;  %v1794_v49 = vld [vmem:[#allocation8 + $0x940] sm:$0xff] }
 0x289   :  { %2498 = vmatpush2.msra.mxu0 %v2058_v61  ;;  %2428 = vmatprep.subr.mxu1 %v1861_v55  ;;  %v3165_v55 = vadd.f32 %v3164_v51, %v3163_v16  ;;  %v1563_v16 = vld [vmem:[#allocation8 + $0x208] sm:$0xff] }
 0x28a   :  { %2499 = vmatprep.subr.mxu0 %v2053_v60  ;;  %2429 = vmatpush2.msra.mxu1 %v1860_v57  ;;  %v1986_v60 = vld [vmem:[#allocation8 + $0xf40] sm:$0xff]  ;;  %v1789_v57 = vld [vmem:[#allocation8 + $0x918] sm:$0xff]  ;;  %v1743_v51 = vld [vmem:[#allocation8 + $0x7a8] sm:$0xff] }
 0x28b   :  { %2500 = vmatpush2.msra.mxu0 %v2052_v21  ;;  %2430 = vmatprep.subr.mxu1 %v1855_v3  ;;  %v3130_v21 = vld [vmem:[#allocation7] ss:$0 sm:$0xff] }
 0x28c   :  { %2501 = vmatprep.subr.mxu0 %v2047_v48  ;;  %2431 = vmatpush2.msra.mxu1 %v1854_v36  ;;  %v1981_v3 = vld [vmem:[#allocation8 + $0xf18] sm:$0xff]  ;;  %v1788_v48 = vld [vmem:[#allocation8 + $0x910] sm:$0xff] }
 0x28d   :  { %2502 = vmatpush2.msra.mxu0 %v2046_v53  ;;  %2432 = vmatprep.subr.mxu1 %v1849_v31  ;;  %v1980_v31 = vld [vmem:[#allocation8 + $0xf10] sm:$0xff] }
 0x28e   :  { %2503 = vmatprep.subr.mxu0 %v2041_v52  ;;  %2433 = vmatpush2.msra.mxu1 %v1848_v62  ;;  %v1593_v52 = vld [vmem:[#allocation8 + $0x2f8] sm:$0xff] }
 0x28f   :  { %2504 = vmatpush2.msra.mxu0 %v2040_v38  ;;  %2434 = vmatprep.subr.mxu1 %v1843_v7  ;;  %v1355_v38 = vadd.f32 %v3165_v55, %v3130_v21  ;;  %v1785_v7 = vld [vmem:[#allocation8 + $0x8f8] sm:$0xff]  ;;  %v1731_v55 = vld [vmem:[#allocation8 + $0x748] sm:$0xff] }
 0x290   :  { %2505 = vmatprep.subr.mxu0 %v2035_v23  ;;  %2435 = vmatpush2.msra.mxu1 %v1842_v56  ;;  %v1592_v23 = vld [vmem:[#allocation8 + $0x2f0] sm:$0xff]  ;;  %v1533_v21 = vld [vmem:[#allocation8 + $0x118] sm:$0xff] }
 0x291   :  { %2506 = vmatpush2.msra.mxu0 %v2034_v58  ;;  %2436 = vmatprep.subr.mxu1 %v1837_v5  ;;  %v1784_v5 = vld [vmem:[#allocation8 + $0x8f0] sm:$0xff] }
 0x292   :  { %2507 = vmatprep.subr.mxu0 %v2029_v9  ;;  %2437 = vmatpush2.msra.mxu1 %v1836_v63  ;;  %v1587_v63 = vld [vmem:[#allocation8 + $0x2c8] sm:$0xff] }
 0x293   :  { %2508 = vmatpush2.msra.mxu0 %v2028_v0  ;;  %2438 = vmatprep.subr.mxu1 %v1831_v13  ;;  %v1779_v0 = vld [vmem:[#allocation8 + $0x8c8] sm:$0xff]  ;;  %v1586_v13 = vld [vmem:[#allocation8 + $0x2c0] sm:$0xff] }
 0x294   :  { %2509 = vmatprep.subr.mxu0 %v2023_v27  ;;  %2439 = vmatpush2.msra.mxu1 %v1830_v40  ;;  %v1778_v40 = vld [vmem:[#allocation8 + $0x8c0] sm:$0xff] }
 0x295   :  { %2510 = vmatpush2.msra.mxu0 %v2022_v26  ;;  %2440 = vmatprep.subr.mxu1 %v1825_v6  ;;  %v1581_v26 = vld [vmem:[#allocation8 + $0x298] sm:$0xff] }
 0x296   :  { %2511 = vmatprep.subr.mxu0 %v2017_v1  ;;  %2441 = vmatpush2.msra.mxu1 %v1824_v32  ;;  %v1773_v6 = vld [vmem:[#allocation8 + $0x898] sm:$0xff]  ;;  %v1580_v1 = vld [vmem:[#allocation8 + $0x290] sm:$0xff] }
 0x297   :  { %2512 = vmatpush2.msra.mxu0 %v2016_v25  ;;  %2442 = vmatprep.subr.mxu1 %v1819_v47  ;;  %v1772_v32 = vld [vmem:[#allocation8 + $0x890] sm:$0xff]  ;;  %v1575_v25 = vld [vmem:[#allocation8 + $0x268] sm:$0xff]  ;;  %v1574_v47 = vld [vmem:[#allocation8 + $0x260] sm:$0xff] }
 0x298   :  { %2513 = vmatprep.subr.mxu0 %v2011_v33  ;;  %2443 = vmatpush2.msra.mxu1 %v1818_v22  ;;  %v1569_v33 = vld [vmem:[#allocation8 + $0x238] sm:$0xff] }
 0x299   :  { %2514 = vmatpush2.msra.mxu0 %v2010_v24  ;;  %2444 = vmatprep.subr.mxu1 %v1813_v35  ;;  %v1761_v22 = vld [vmem:[#allocation8 + $0x838] sm:$0xff]  ;;  %v1568_v24 = vld [vmem:[#allocation8 + $0x230] sm:$0xff] }
 0x29a   :  { %2515 = vmatprep.subr.mxu0 %v2005_v42  ;;  %2445 = vmatpush2.msra.mxu1 %v1812_v45  ;;  %v1760_v35 = vld [vmem:[#allocation8 + $0x830] sm:$0xff]  ;;  %v1755_v42 = vld [vmem:[#allocation8 + $0x808] sm:$0xff]  ;;  %v1562_v45 = vld [vmem:[#allocation8 + $0x200] sm:$0xff] }
 0x29b   :  { %2516 = vmatpush2.msra.mxu0 %v2004_v41  ;;  %2446 = vmatprep.subr.mxu1 %v1807_v59  ;;  %v1754_v41 = vld [vmem:[#allocation8 + $0x800] sm:$0xff]  ;;  %v1557_v59 = vld [vmem:[#allocation8 + $0x1d8] sm:$0xff] }
 0x29c   :  { %2517 = vmatprep.subr.mxu0 %v1999_v28  ;;  %2447 = vmatpush2.msra.mxu1 %v1806_v44  ;;  %v1749_v28 = vld [vmem:[#allocation8 + $0x7d8] sm:$0xff]  ;;  %v1556_v44 = vld [vmem:[#allocation8 + $0x1d0] sm:$0xff] }
 0x29d   :  { %2518 = vmatpush2.msra.mxu0 %v1998_v43  ;;  %2448 = vmatprep.subr.mxu1 %v1801_v54  ;;  %v1748_v43 = vld [vmem:[#allocation8 + $0x7d0] sm:$0xff]  ;;  %v1551_v54 = vld [vmem:[#allocation8 + $0x1a8] sm:$0xff] }
 0x29e   :  { %v3233_v61 = vpop.f32.mrf.mxu0  ;;  %2519 = vmatprep.subr.mxu0 %v1993_v37  ;;  %2449 = vmatpush2.msra.mxu1 %v1800_v14  ;;  %v3198_v36 = vpop.f32.mrf.mxu1  ;;  %v1550_v37 = vld [vmem:[#allocation8 + $0x1a0] sm:$0xff] }
 0x29f   :  { %2520 = vmatpush2.msra.mxu0 %v1992_v39  ;;  %2450 = vmatprep.subr.mxu1 %v1795_v2  ;;  %v1742_v14 = vld [vmem:[#allocation8 + $0x7a0] sm:$0xff]  ;;  %v1545_v39 = vld [vmem:[#allocation8 + $0x178] sm:$0xff] }
 0x2a0   :  { %v3234_v53 = vpop.f32.mrf.mxu0  ;;  %2521 = vmatprep.subr.mxu0 %v1987_v46  ;;  %2451 = vmatpush2.msra.mxu1 %v1794_v49  ;;  %v3199_v62 = vpop.f32.mrf.mxu1  ;;  %v1737_v2 = vld [vmem:[#allocation8 + $0x778] sm:$0xff]  ;;  %v1544_v46 = vld [vmem:[#allocation8 + $0x170] sm:$0xff] }
 0x2a1   :  { %2522 = vmatpush2.msra.mxu0 %v1986_v60  ;;  %2452 = vmatprep.subr.mxu1 %v1789_v57  ;;  %v3200_v56 = vadd.f32 %v3199_v62, %v3198_v36  ;;  %v3235_v58 = vadd.f32 %v3234_v53, %v3233_v61  ;;  %v1736_v49 = vld [vmem:[#allocation8 + $0x770] sm:$0xff]  ;;  %v1539_v61 = vld [vmem:[#allocation8 + $0x148] sm:$0xff]  ;;  %v1538_v60 = vld [vmem:[#allocation8 + $0x140] sm:$0xff] }
 0x2a2   :  { %2523 = vmatprep.subr.mxu0 %v1981_v3  ;;  %2453 = vmatpush2.msra.mxu1 %v1788_v48  ;;  %v1730_v57 = vld [vmem:[#allocation8 + $0x740] sm:$0xff]  ;;  %v1725_v3 = vld [vmem:[#allocation8 + $0x718] sm:$0xff]  ;;  %v1532_v48 = vld [vmem:[#allocation8 + $0x110] sm:$0xff] }
 0x2a3   :  { %2524 = vmatpush2.msra.mxu0 %v1980_v31  ;;  %2455 = vmatmul.mubr.f32.vlgmr.msra.gmra.mxu1 %v4354_v30  ;;  %v1425_v9 = vadd.f32 %v3200_v56, %v1355_v38  ;;  %v1724_v36 = vld [vmem:[#allocation8 + $0x710] sm:$0xff]  ;;  %v1527_v53 = vld [vmem:[#allocation8 + $0xe8] sm:$0xff]  ;;  %v1718_v62 = vld [vmem:[#allocation8 + $0x6e0] sm:$0xff] }
 0x2a4   :  { %2526 = vmatmul.mubr.f32.vlgmr.msra.gmra.mxu0 %v4349_v12  ;;  %2532 = vmatprep.subr.mxu1 %v1593_v52  ;;  %v1719_v31 = vld [vmem:[#allocation8 + $0x6e8] sm:$0xff]  ;;  %v1526_v52 = vld [vmem:[#allocation8 + $0xe0] sm:$0xff]  ;;  %v1521_v38 = vld [vmem:[#allocation8 + $0xb8] sm:$0xff] }
 0x2a5   :  { %2603 = vmatprep.subr.mxu0 %v1785_v7  ;;  %2533 = vmatpush1.msra.mxu1 %v1592_v23  ;;  %v4370_v27 = vadd.f32 %v3235_v58, %v1425_v9  ;;  %v1713_v7 = vld [vmem:[#allocation8 + $0x6b8] sm:$0xff]  ;;  %v1520_v23 = vld [vmem:[#allocation8 + $0xb0] sm:$0xff]  ;;  %v1515_v58 = vld [vmem:[#allocation8 + $0x88] sm:$0xff] }
 0x2a6   :  { %2596 = vmatprep.mubr.f32.mxu1 %v4203_v15  ;;  %2604 = vmatpush1.msra.mxu0 %v1784_v5  ;;  %v1767_v15 = vld [vmem:[#allocation8 + $0x868] sm:$0xff]  ;;  %v1712_v56 = vld [vmem:[#allocation8 + $0x6b0] sm:$0xff]  ;;  %v1514_v9 = vld [vmem:[#allocation8 + $0x80] sm:$0xff] }
 0x2a7   :  { %2667 = vmatprep.mubr.f32.mxu0 %v4228_v29  ;;  %2534 = vmatprep.subr.mxu1 %v1587_v63  ;;  %3094 = vst.msk [vmem:[%s4708_s9] sm:$0xf] %vm3079_vm14, %v4370_v27  ;;  %v1766_v29 = vld [vmem:[#allocation8 + $0x860] sm:$0xff]  ;;  %v1707_v5 = vld [vmem:[#allocation8 + $0x688] sm:$0xff] }
 0x2a8   :  { %2605 = vmatprep.subr.mxu0 %v1779_v0  ;;  %2535 = vmatpush1.msra.mxu1 %v1586_v13  ;;  %v1706_v63 = vld [vmem:[#allocation8 + $0x680] sm:$0xff]  ;;  %v1509_v0 = vld [vmem:[#allocation8 + $0x58] sm:$0xff] }
 0x2a9   :  { %2606 = vmatpush1.msra.mxu0 %v1778_v40  ;;  %2536 = vmatprep.subr.mxu1 %v1581_v26  ;;  %v1701_v13 = vld [vmem:[#allocation8 + $0x658] sm:$0xff]  ;;  %v1508_v40 = vld [vmem:[#allocation8 + $0x50] sm:$0xff] }
 0x2aa   :  { %2607 = vmatprep.subr.mxu0 %v1773_v6  ;;  %2537 = vmatpush1.msra.mxu1 %v1580_v1  ;;  %v1700_v26 = vld [vmem:[#allocation8 + $0x650] sm:$0xff]  ;;  %v1503_v6 = vld [vmem:[#allocation8 + $0x28] sm:$0xff] }
 0x2ab   :  { %2608 = vmatpush1.msra.mxu0 %v1772_v32  ;;  %2538 = vmatprep.subr.mxu1 %v1575_v25  ;;  %v1695_v1 = vld [vmem:[#allocation8 + $0x628] sm:$0xff]  ;;  %v1502_v32 = vld [vmem:[#allocation8 + $0x20] sm:$0xff] }
 0x2ac   :  { %2609 = vmatprep.subr.mxu0 %v1767_v15  ;;  %2539 = vmatpush1.msra.mxu1 %v1574_v47  ;;  %v1694_v25 = vld [vmem:[#allocation8 + $0x620] sm:$0xff]  ;;  %v1689_v15 = vld [vmem:[#allocation8 + $0x5f8] sm:$0xff] }
 0x2ad   :  { %2610 = vmatpush1.msra.mxu0 %v1766_v29  ;;  %2540 = vmatprep.subr.mxu1 %v1569_v33  ;;  %v1881_v47 = vld [vmem:[#allocation8 + $0xbf8] sm:$0xff]  ;;  %v1688_v29 = vld [vmem:[#allocation8 + $0x5f0] sm:$0xff] }
 0x2ae   :  { %2611 = vmatprep.subr.mxu0 %v1761_v22  ;;  %2541 = vmatpush1.msra.mxu1 %v1568_v24  ;;  %v1880_v33 = vld [vmem:[#allocation8 + $0xbf0] sm:$0xff]  ;;  %v1683_v22 = vld [vmem:[#allocation8 + $0x5c8] sm:$0xff] }
 0x2af   :  { %2612 = vmatpush1.msra.mxu0 %v1760_v35  ;;  %2542 = vmatprep.subr.mxu1 %v1563_v16  ;;  %v1875_v24 = vld [vmem:[#allocation8 + $0xbc8] sm:$0xff]  ;;  %v1682_v35 = vld [vmem:[#allocation8 + $0x5c0] sm:$0xff] }
 0x2b0   :  { %2613 = vmatprep.subr.mxu0 %v1755_v42  ;;  %2543 = vmatpush1.msra.mxu1 %v1562_v45  ;;  %v1874_v16 = vld [vmem:[#allocation8 + $0xbc0] sm:$0xff]  ;;  %v1677_v42 = vld [vmem:[#allocation8 + $0x598] sm:$0xff] }
 0x2b1   :  { %2614 = vmatpush1.msra.mxu0 %v1754_v41  ;;  %2544 = vmatprep.subr.mxu1 %v1557_v59  ;;  %v1869_v45 = vld [vmem:[#allocation8 + $0xb98] sm:$0xff]  ;;  %v1676_v41 = vld [vmem:[#allocation8 + $0x590] sm:$0xff] }
 0x2b2   :  { %2615 = vmatprep.subr.mxu0 %v1749_v28  ;;  %2545 = vmatpush1.msra.mxu1 %v1556_v44  ;;  %v1868_v59 = vld [vmem:[#allocation8 + $0xb90] sm:$0xff]  ;;  %v1671_v28 = vld [vmem:[#allocation8 + $0x568] sm:$0xff] }
 0x2b3   :  { %2616 = vmatpush1.msra.mxu0 %v1748_v43  ;;  %2546 = vmatprep.subr.mxu1 %v1551_v54  ;;  %v1863_v44 = vld [vmem:[#allocation8 + $0xb68] sm:$0xff]  ;;  %v1670_v43 = vld [vmem:[#allocation8 + $0x560] sm:$0xff] }
 0x2b4   :  { %2617 = vmatprep.subr.mxu0 %v1743_v51  ;;  %2547 = vmatpush1.msra.mxu1 %v1550_v37  ;;  %v1862_v54 = vld [vmem:[#allocation8 + $0xb60] sm:$0xff]  ;;  %v1665_v51 = vld [vmem:[#allocation8 + $0x538] sm:$0xff] }
 0x2b5   :  { %2618 = vmatpush1.msra.mxu0 %v1742_v14  ;;  %2548 = vmatprep.subr.mxu1 %v1545_v39  ;;  %v1857_v37 = vld [vmem:[#allocation8 + $0xb38] sm:$0xff]  ;;  %v1664_v14 = vld [vmem:[#allocation8 + $0x530] sm:$0xff] }
 0x2b6   :  { %2619 = vmatprep.subr.mxu0 %v1737_v2  ;;  %2549 = vmatpush1.msra.mxu1 %v1544_v46  ;;  %v1856_v39 = vld [vmem:[#allocation8 + $0xb30] sm:$0xff]  ;;  %v1659_v2 = vld [vmem:[#allocation8 + $0x508] sm:$0xff] }
 0x2b7   :  { %2620 = vmatpush1.msra.mxu0 %v1736_v49  ;;  %2550 = vmatprep.subr.mxu1 %v1539_v61  ;;  %v1851_v46 = vld [vmem:[#allocation8 + $0xb08] sm:$0xff]  ;;  %v1658_v49 = vld [vmem:[#allocation8 + $0x500] sm:$0xff] }
 0x2b8   :  { %2621 = vmatprep.subr.mxu0 %v1731_v55  ;;  %2551 = vmatpush1.msra.mxu1 %v1538_v60  ;;  %v1850_v61 = vld [vmem:[#allocation8 + $0xb00] sm:$0xff]  ;;  %v1653_v55 = vld [vmem:[#allocation8 + $0x4d8] sm:$0xff] }
 0x2b9   :  { %2622 = vmatpush1.msra.mxu0 %v1730_v57  ;;  %2552 = vmatprep.subr.mxu1 %v1533_v21  ;;  %v1845_v60 = vld [vmem:[#allocation8 + $0xad8] sm:$0xff]  ;;  %v1652_v57 = vld [vmem:[#allocation8 + $0x4d0] sm:$0xff] }
 0x2ba   :  { %2623 = vmatprep.subr.mxu0 %v1725_v3  ;;  %2553 = vmatpush1.msra.mxu1 %v1532_v48  ;;  %v1844_v21 = vld [vmem:[#allocation8 + $0xad0] sm:$0xff]  ;;  %v1647_v3 = vld [vmem:[#allocation8 + $0x4a8] sm:$0xff] }
 0x2bb   :  { %2624 = vmatpush1.msra.mxu0 %v1724_v36  ;;  %2554 = vmatprep.subr.mxu1 %v1527_v53  ;;  %v1839_v48 = vld [vmem:[#allocation8 + $0xaa8] sm:$0xff]  ;;  %v1646_v36 = vld [vmem:[#allocation8 + $0x4a0] sm:$0xff] }
 0x2bc   :  { %2625 = vmatprep.subr.mxu0 %v1719_v31  ;;  %2555 = vmatpush1.msra.mxu1 %v1526_v52  ;;  %v1838_v53 = vld [vmem:[#allocation8 + $0xaa0] sm:$0xff]  ;;  %v1641_v31 = vld [vmem:[#allocation8 + $0x478] sm:$0xff] }
 0x2bd   :  { %2626 = vmatpush1.msra.mxu0 %v1718_v62  ;;  %2556 = vmatprep.subr.mxu1 %v1521_v38  ;;  %v1833_v52 = vld [vmem:[#allocation8 + $0xa78] sm:$0xff]  ;;  %v1640_v62 = vld [vmem:[#allocation8 + $0x470] sm:$0xff] }
 0x2be   :  { %2627 = vmatprep.subr.mxu0 %v1713_v7  ;;  %2557 = vmatpush1.msra.mxu1 %v1520_v23  ;;  %v1832_v38 = vld [vmem:[#allocation8 + $0xa70] sm:$0xff]  ;;  %v1635_v7 = vld [vmem:[#allocation8 + $0x448] sm:$0xff] }
 0x2bf   :  { %2628 = vmatpush1.msra.mxu0 %v1712_v56  ;;  %2558 = vmatprep.subr.mxu1 %v1515_v58  ;;  %v1827_v23 = vld [vmem:[#allocation8 + $0xa48] sm:$0xff]  ;;  %v1634_v56 = vld [vmem:[#allocation8 + $0x440] sm:$0xff] }
 0x2c0   :  { %2629 = vmatprep.subr.mxu0 %v1707_v5  ;;  %2559 = vmatpush1.msra.mxu1 %v1514_v9  ;;  %v1826_v58 = vld [vmem:[#allocation8 + $0xa40] sm:$0xff]  ;;  %v1629_v5 = vld [vmem:[#allocation8 + $0x418] sm:$0xff] }
 0x2c1   :  { %2630 = vmatpush1.msra.mxu0 %v1706_v63  ;;  %2560 = vmatprep.subr.mxu1 %v1509_v0  ;;  %v1821_v9 = vld [vmem:[#allocation8 + $0xa18] sm:$0xff]  ;;  %v1628_v63 = vld [vmem:[#allocation8 + $0x410] sm:$0xff] }
 0x2c2   :  { %2631 = vmatprep.subr.mxu0 %v1701_v13  ;;  %2561 = vmatpush1.msra.mxu1 %v1508_v40  ;;  %v1820_v0 = vld [vmem:[#allocation8 + $0xa10] sm:$0xff]  ;;  %v1623_v13 = vld [vmem:[#allocation8 + $0x3e8] sm:$0xff] }
 0x2c3   :  { %2632 = vmatpush1.msra.mxu0 %v1700_v26  ;;  %2562 = vmatprep.subr.mxu1 %v1503_v6  ;;  %v1815_v40 = vld [vmem:[#allocation8 + $0x9e8] sm:$0xff]  ;;  %v1622_v26 = vld [vmem:[#allocation8 + $0x3e0] sm:$0xff] }
 0x2c4   :  { %2633 = vmatprep.subr.mxu0 %v1695_v1  ;;  %2563 = vmatpush1.msra.mxu1 %v1502_v32  ;;  %v1814_v6 = vld [vmem:[#allocation8 + $0x9e0] sm:$0xff]  ;;  %v1617_v1 = vld [vmem:[#allocation8 + $0x3b8] sm:$0xff] }
 0x2c5   :  { %2634 = vmatpush1.msra.mxu0 %v1694_v25  ;;  %2564 = vmatprep.subr.mxu1 %v1689_v15  ;;  %v1809_v32 = vld [vmem:[#allocation8 + $0x9b8] sm:$0xff]  ;;  %v1616_v25 = vld [vmem:[#allocation8 + $0x3b0] sm:$0xff] }
 0x2c6   :  { %2635 = vmatprep.subr.mxu0 %v1881_v47  ;;  %2565 = vmatpush2.msra.mxu1 %v1688_v29  ;;  %v1808_v15 = vld [vmem:[#allocation8 + $0x9b0] sm:$0xff]  ;;  %v1611_v47 = vld [vmem:[#allocation8 + $0x388] sm:$0xff] }
 0x2c7   :  { %2636 = vmatpush2.msra.mxu0 %v1880_v33  ;;  %2566 = vmatprep.subr.mxu1 %v1683_v22  ;;  %v1803_v29 = vld [vmem:[#allocation8 + $0x988] sm:$0xff]  ;;  %v1610_v33 = vld [vmem:[#allocation8 + $0x380] sm:$0xff] }
 0x2c8   :  { %2637 = vmatprep.subr.mxu0 %v1875_v24  ;;  %2567 = vmatpush2.msra.mxu1 %v1682_v35  ;;  %v1802_v22 = vld [vmem:[#allocation8 + $0x980] sm:$0xff]  ;;  %v1605_v24 = vld [vmem:[#allocation8 + $0x358] sm:$0xff] }
 0x2c9   :  { %2638 = vmatpush2.msra.mxu0 %v1874_v16  ;;  %2568 = vmatprep.subr.mxu1 %v1677_v42  ;;  %v1797_v35 = vld [vmem:[#allocation8 + $0x958] sm:$0xff]  ;;  %v1604_v16 = vld [vmem:[#allocation8 + $0x350] sm:$0xff] }
 0x2ca   :  { %2639 = vmatprep.subr.mxu0 %v1869_v45  ;;  %2569 = vmatpush2.msra.mxu1 %v1676_v41  ;;  %v1796_v42 = vld [vmem:[#allocation8 + $0x950] sm:$0xff]  ;;  %v1599_v45 = vld [vmem:[#allocation8 + $0x328] sm:$0xff] }
 0x2cb   :  { %2640 = vmatpush2.msra.mxu0 %v1868_v59  ;;  %2570 = vmatprep.subr.mxu1 %v1671_v28  ;;  %v1791_v41 = vld [vmem:[#allocation8 + $0x928] sm:$0xff]  ;;  %v1598_v59 = vld [vmem:[#allocation8 + $0x320] sm:$0xff] }
 0x2cc   :  { %2641 = vmatprep.subr.mxu0 %v1863_v44  ;;  %2571 = vmatpush2.msra.mxu1 %v1670_v43  ;;  %v1790_v28 = vld [vmem:[#allocation8 + $0x920] sm:$0xff]  ;;  %v1977_v44 = vld [vmem:[#allocation8 + $0xef8] sm:$0xff]  ;;  %v1976_v43 = vld [vmem:[#allocation8 + $0xef0] sm:$0xff] }
 0x2cd   :  { %2642 = vmatpush2.msra.mxu0 %v1862_v54  ;;  %2572 = vmatprep.subr.mxu1 %v1665_v51  ;;  %v1971_v54 = vld [vmem:[#allocation8 + $0xec8] sm:$0xff]  ;;  %v2782_v51 = vld [vmem:[%s4706_s7 + $0xf8] sm:$0xff] }
 0x2ce   :  { %2643 = vmatprep.subr.mxu0 %v1857_v37  ;;  %2573 = vmatpush2.msra.mxu1 %v1664_v14  ;;  %v1970_v37 = vld [vmem:[#allocation8 + $0xec0] sm:$0xff]  ;;  %v2766_v14 = vld [vmem:[%s4706_s7 + $0x78] sm:$0xff] }
 0x2cf   :  { %2644 = vmatpush2.msra.mxu0 %v1856_v39  ;;  %2574 = vmatprep.subr.mxu1 %v1659_v2  ;;  %v1965_v39 = vld [vmem:[#allocation8 + $0xe98] sm:$0xff]  ;;  %v1964_v2 = vld [vmem:[#allocation8 + $0xe90] sm:$0xff] }
 0x2d0   :  { %2645 = vmatprep.subr.mxu0 %v1851_v46  ;;  %2575 = vmatpush2.msra.mxu1 %v1658_v49  ;;  %v1959_v46 = vld [vmem:[#allocation8 + $0xe68] sm:$0xff]  ;;  %v2780_v49 = vld [vmem:[%s4706_s7 + $0xe8] sm:$0xff] }
 0x2d1   :  { %2646 = vmatpush2.msra.mxu0 %v1850_v61  ;;  %2576 = vmatprep.subr.mxu1 %v1653_v55  ;;  %v2764_v61 = vld [vmem:[%s4706_s7 + $0x68] sm:$0xff]  ;;  %v1953_v55 = vld [vmem:[#allocation8 + $0xe38] sm:$0xff] }
 0x2d2   :  { %2647 = vmatprep.subr.mxu0 %v1845_v60  ;;  %2577 = vmatpush2.msra.mxu1 %v1652_v57  ;;  %v2779_v60 = vld [vmem:[%s4706_s7 + $0xe0] sm:$0xff]  ;;  %v1952_v57 = vld [vmem:[#allocation8 + $0xe30] sm:$0xff] }
 0x2d3   :  { %2648 = vmatpush2.msra.mxu0 %v1844_v21  ;;  %2578 = vmatprep.subr.mxu1 %v1647_v3  ;;  %v2763_v21 = vld [vmem:[%s4706_s7 + $0x60] sm:$0xff]  ;;  %v1947_v3 = vld [vmem:[#allocation8 + $0xe08] sm:$0xff] }
 0x2d4   :  { %2649 = vmatprep.subr.mxu0 %v1839_v48  ;;  %2579 = vmatpush2.msra.mxu1 %v1646_v36  ;;  %v2778_v48 = vld [vmem:[%s4706_s7 + $0xd8] sm:$0xff]  ;;  %v1946_v36 = vld [vmem:[#allocation8 + $0xe00] sm:$0xff] }
 0x2d5   :  { %2650 = vmatpush2.msra.mxu0 %v1838_v53  ;;  %2580 = vmatprep.subr.mxu1 %v1641_v31  ;;  %v2762_v53 = vld [vmem:[%s4706_s7 + $0x58] sm:$0xff]  ;;  %v1941_v31 = vld [vmem:[#allocation8 + $0xdd8] sm:$0xff] }
 0x2d6   :  { %2651 = vmatprep.subr.mxu0 %v1833_v52  ;;  %2581 = vmatpush2.msra.mxu1 %v1640_v62  ;;  %v2777_v52 = vld [vmem:[%s4706_s7 + $0xd0] sm:$0xff]  ;;  %v1940_v62 = vld [vmem:[#allocation8 + $0xdd0] sm:$0xff] }
 0x2d7   :  { %2652 = vmatpush2.msra.mxu0 %v1832_v38  ;;  %2582 = vmatprep.subr.mxu1 %v1635_v7  ;;  %v2761_v38 = vld [vmem:[%s4706_s7 + $0x50] sm:$0xff] }
 0x2d8   :  { %2653 = vmatprep.subr.mxu0 %v1827_v23  ;;  %2583 = vmatpush2.msra.mxu1 %v1634_v56  ;;  %v1935_v7 = vld [vmem:[#allocation8 + $0xda8] sm:$0xff]  ;;  %v2776_v23 = vld [vmem:[%s4706_s7 + $0xc8] sm:$0xff] }
 0x2d9   :  { %2654 = vmatpush2.msra.mxu0 %v1826_v58  ;;  %2584 = vmatprep.subr.mxu1 %v1629_v5  ;;  %v1934_v56 = vld [vmem:[#allocation8 + $0xda0] sm:$0xff]  ;;  %v1929_v5 = vld [vmem:[#allocation8 + $0xd78] sm:$0xff] }
 0x2da   :  { %2655 = vmatprep.subr.mxu0 %v1821_v9  ;;  %2585 = vmatpush2.msra.mxu1 %v1628_v63  ;;  %v2760_v58 = vld [vmem:[%s4706_s7 + $0x48] sm:$0xff]  ;;  %v2775_v9 = vld [vmem:[%s4706_s7 + $0xc0] sm:$0xff]  ;;  %v1928_v63 = vld [vmem:[#allocation8 + $0xd70] sm:$0xff] }
 0x2db   :  { %2656 = vmatpush2.msra.mxu0 %v1820_v0  ;;  %2586 = vmatprep.subr.mxu1 %v1623_v13  ;;  %v2759_v0 = vld [vmem:[%s4706_s7 + $0x40] sm:$0xff]  ;;  %v1923_v13 = vld [vmem:[#allocation8 + $0xd48] sm:$0xff] }
 0x2dc   :  { %2657 = vmatprep.subr.mxu0 %v1815_v40  ;;  %2587 = vmatpush2.msra.mxu1 %v1622_v26  ;;  %v2774_v40 = vld [vmem:[%s4706_s7 + $0xb8] sm:$0xff]  ;;  %v1922_v26 = vld [vmem:[#allocation8 + $0xd40] sm:$0xff] }
 0x2dd   :  { %2658 = vmatpush2.msra.mxu0 %v1814_v6  ;;  %2588 = vmatprep.subr.mxu1 %v1617_v1  ;;  %v2758_v6 = vld [vmem:[%s4706_s7 + $0x38] sm:$0xff]  ;;  %v1917_v1 = vld [vmem:[#allocation8 + $0xd18] sm:$0xff] }
 0x2de   :  { %2659 = vmatprep.subr.mxu0 %v1809_v32  ;;  %2589 = vmatpush2.msra.mxu1 %v1616_v25  ;;  %v2773_v32 = vld [vmem:[%s4706_s7 + $0xb0] sm:$0xff]  ;;  %v1916_v25 = vld [vmem:[#allocation8 + $0xd10] sm:$0xff] }
 0x2df   :  { %2660 = vmatpush2.msra.mxu0 %v1808_v15  ;;  %2590 = vmatprep.subr.mxu1 %v1611_v47  ;;  %v2757_v15 = vld [vmem:[%s4706_s7 + $0x30] sm:$0xff] }
 0x2e0   :  { %2661 = vmatprep.subr.mxu0 %v1803_v29  ;;  %2591 = vmatpush2.msra.mxu1 %v1610_v33  ;;  %v1911_v47 = vld [vmem:[#allocation8 + $0xce8] sm:$0xff]  ;;  %v2772_v29 = vld [vmem:[%s4706_s7 + $0xa8] sm:$0xff] }
 0x2e1   :  { %2662 = vmatpush2.msra.mxu0 %v1802_v22  ;;  %2592 = vmatprep.subr.mxu1 %v1605_v24  ;;  %v1910_v33 = vld [vmem:[#allocation8 + $0xce0] sm:$0xff]  ;;  %v1905_v24 = vld [vmem:[#allocation8 + $0xcb8] sm:$0xff] }
 0x2e2   :  { %2663 = vmatprep.subr.mxu0 %v1797_v35  ;;  %2593 = vmatpush2.msra.mxu1 %v1604_v16  ;;  %v2756_v22 = vld [vmem:[%s4706_s7 + $0x28] sm:$0xff]  ;;  %v2771_v35 = vld [vmem:[%s4706_s7 + $0xa0] sm:$0xff]  ;;  %v1904_v16 = vld [vmem:[#allocation8 + $0xcb0] sm:$0xff] }
 0x2e3   :  { %2664 = vmatpush2.msra.mxu0 %v1796_v42  ;;  %2594 = vmatprep.subr.mxu1 %v1599_v45  ;;  %v2755_v42 = vld [vmem:[%s4706_s7 + $0x20] sm:$0xff]  ;;  %v1899_v45 = vld [vmem:[#allocation8 + $0xc88] sm:$0xff] }
 0x2e4   :  { %2665 = vmatprep.subr.mxu0 %v1791_v41  ;;  %2595 = vmatpush2.msra.mxu1 %v1598_v59  ;;  %v2770_v41 = vld [vmem:[%s4706_s7 + $0x98] sm:$0xff]  ;;  %v1898_v59 = vld [vmem:[#allocation8 + $0xc80] sm:$0xff] }
 0x2e5   :  { %2666 = vmatpush2.msra.mxu0 %v1790_v28  ;;  %2597 = vmatmul.mubr.f32.vlgmr.msra.gmra.mxu1 %v4213_v34  ;;  %v2781_v34 = vld [vmem:[%s4706_s7 + $0xf0] sm:$0xff]  ;;  %v2754_v28 = vld [vmem:[%s4706_s7 + $0x18] sm:$0xff] }
 0x2e6   :  { %2668 = vmatmul.mubr.f32.vlgmr.msra.gmra.mxu0 %v4354_v30  ;;  %2674 = vmatprep.subr.mxu1 %v1977_v44  ;;  %v2765_v30 = vld [vmem:[%s4706_s7 + $0x70] sm:$0xff]  ;;  %v1893_v44 = vld [vmem:[#allocation8 + $0xc58] sm:$0xff] }
 0x2e7   :  { %2675 = vmatpush1.msra.mxu1 %v1976_v43  ;;  %2738 = vmatprep.mubr.f32.mxu1 %v4343_v8  ;;  %v1958_v8 = vld [vmem:[#allocation8 + $0xe60] sm:$0xff]  ;;  %v2769_v43 = vld [vmem:[%s4706_s7 + $0x90] sm:$0xff] }
 0x2e8   :  { %2676 = vmatprep.subr.mxu1 %v1971_v54  ;;  %3236 = vmatprep.subr.mxu0 %v2782_v51  ;;  %v1892_v54 = vld [vmem:[#allocation8 + $0xc50] sm:$0xff]  ;;  %v2753_v51 = vld [vmem:[%s4706_s7 + $0x10] sm:$0xff] }
 0x2e9   :  { %2677 = vmatpush1.msra.mxu1 %v1970_v37  ;;  %3237 = vmatpush3.msra.mxu0 %v2766_v14  ;;  %v1887_v37 = vld [vmem:[#allocation8 + $0xc28] sm:$0xff]  ;;  %v2768_v14 = vld [vmem:[%s4706_s7 + $0x88] sm:$0xff] }
 0x2ea   :  { %2678 = vmatprep.subr.mxu1 %v1965_v39  ;;  %3238 = vmatprep.subr.mxu0 %v2781_v34  ;;  %v1886_v39 = vld [vmem:[#allocation8 + $0xc20] sm:$0xff] }
 0x2eb   :  { %2679 = vmatpush1.msra.mxu1 %v1964_v2  ;;  %3239 = vmatpush3.msra.mxu0 %v2765_v30  ;;  %v2752_v34 = vld [vmem:[%s4706_s7 + $0x8] sm:$0xff]  ;;  %v2073_v2 = vld [vmem:[#allocation8 + $0x11f8] sm:$0xff] }
 0x2ec   :  { %2680 = vmatprep.subr.mxu1 %v1959_v46  ;;  %3240 = vmatprep.subr.mxu0 %v2780_v49  ;;  %v2767_v30 = vld [vmem:[%s4706_s7 + $0x80] sm:$0xff]  ;;  %v2072_v46 = vld [vmem:[#allocation8 + $0x11f0] sm:$0xff] }
 0x2ed   :  { %2681 = vmatpush1.msra.mxu1 %v1958_v8  ;;  %3241 = vmatpush3.msra.mxu0 %v2764_v61  ;;  %v2751_v49 = vld [vmem:[%s4706_s7] sm:$0xff]  ;;  %v2067_v8 = vld [vmem:[#allocation8 + $0x11c8] sm:$0xff]  ;;  %v2814_v61 = vld [vmem:[%s4706_s7 + $0x1f8] sm:$0xff] }
 0x2ee   :  { %2682 = vmatprep.subr.mxu1 %v1953_v55  ;;  %3242 = vmatprep.subr.mxu0 %v2779_v60  ;;  %v2066_v55 = vld [vmem:[#allocation8 + $0x11c0] sm:$0xff]  ;;  %v2061_v60 = vld [vmem:[#allocation8 + $0x1198] sm:$0xff] }
 0x2ef   :  { %2683 = vmatpush1.msra.mxu1 %v1952_v57  ;;  %3243 = vmatpush3.msra.mxu0 %v2763_v21  ;;  %v2060_v57 = vld [vmem:[#allocation8 + $0x1190] sm:$0xff]  ;;  %v2055_v21 = vld [vmem:[#allocation8 + $0x1168] sm:$0xff] }
 0x2f0   :  { %2684 = vmatprep.subr.mxu1 %v1947_v3  ;;  %3244 = vmatprep.subr.mxu0 %v2778_v48  ;;  %v2054_v3 = vld [vmem:[#allocation8 + $0x1160] sm:$0xff]  ;;  %v2049_v48 = vld [vmem:[#allocation8 + $0x1138] sm:$0xff] }
 0x2f1   :  { %2685 = vmatpush1.msra.mxu1 %v1946_v36  ;;  %3245 = vmatpush3.msra.mxu0 %v2762_v53  ;;  %v2048_v36 = vld [vmem:[#allocation8 + $0x1130] sm:$0xff]  ;;  %v2043_v53 = vld [vmem:[#allocation8 + $0x1108] sm:$0xff] }
 0x2f2   :  { %2686 = vmatprep.subr.mxu1 %v1941_v31  ;;  %3246 = vmatprep.subr.mxu0 %v2777_v52  ;;  %v2042_v31 = vld [vmem:[#allocation8 + $0x1100] sm:$0xff]  ;;  %v2037_v52 = vld [vmem:[#allocation8 + $0x10d8] sm:$0xff] }
 0x2f3   :  { %2687 = vmatpush1.msra.mxu1 %v1940_v62  ;;  %3247 = vmatpush3.msra.mxu0 %v2761_v38  ;;  %v2036_v62 = vld [vmem:[#allocation8 + $0x10d0] sm:$0xff]  ;;  %v2031_v38 = vld [vmem:[#allocation8 + $0x10a8] sm:$0xff] }
 0x2f4   :  { %2688 = vmatprep.subr.mxu1 %v1935_v7  ;;  %3248 = vmatprep.subr.mxu0 %v2776_v23  ;;  %v2030_v7 = vld [vmem:[#allocation8 + $0x10a0] sm:$0xff]  ;;  %v2025_v23 = vld [vmem:[#allocation8 + $0x1078] sm:$0xff] }
 0x2f5   :  { %2689 = vmatpush1.msra.mxu1 %v1934_v56  ;;  %3249 = vmatpush3.msra.mxu0 %v2760_v58  ;;  %v2024_v56 = vld [vmem:[#allocation8 + $0x1070] sm:$0xff]  ;;  %v2019_v58 = vld [vmem:[#allocation8 + $0x1048] sm:$0xff] }
 0x2f6   :  { %2690 = vmatprep.subr.mxu1 %v1929_v5  ;;  %3250 = vmatprep.subr.mxu0 %v2775_v9  ;;  %v4480_v5 = vld [vmem:[#allocation10] sm:$0x3f] }
 0x2f7   :  { %2691 = vmatpush1.msra.mxu1 %v1928_v63  ;;  %3251 = vmatpush3.msra.mxu0 %v2759_v0  ;;  %v2018_v9 = vld [vmem:[#allocation8 + $0x1040] sm:$0xff]  ;;  %v2172_v63 = vpop.f32.mrf.mxu1  ;;  %v2013_v0 = vld [vmem:[#allocation8 + $0x1018] sm:$0xff] }
 0x2f8   :  { %2692 = vmatprep.subr.mxu1 %v1923_v13  ;;  %3252 = vmatprep.subr.mxu0 %v2774_v40  ;;  %v2012_v13 = vld [vmem:[#allocation8 + $0x1010] sm:$0xff]  ;;  %v2079_v40 = vrot.slane %v4480_v5, %v433_v11  ;;  %v1994_v11 = vld [vmem:[#allocation8 + $0xf80] sm:$0xff] }
 0x2f9   :  { %2693 = vmatpush1.msra.mxu1 %v1922_v26  ;;  %3253 = vmatpush3.msra.mxu0 %v2758_v6  ;;  %v2007_v26 = vld [vmem:[#allocation8 + $0xfe8] sm:$0xff]  ;;  %v2083_v6 = vrot.slane %v4480_v5, %v437_v17 }
 0x2fa   :  { %2694 = vmatprep.subr.mxu1 %v1917_v1  ;;  %3254 = vmatprep.subr.mxu0 %v2773_v32  ;;  %v2006_v1 = vld [vmem:[#allocation8 + $0xfe0] sm:$0xff]  ;;  %v2174_v32 = vpop.f32.mrf.mxu1 }
 0x2fb   :  { %2695 = vmatpush1.msra.mxu1 %v1916_v25  ;;  %3255 = vmatpush3.msra.mxu0 %v2757_v15  ;;  %v2001_v25 = vld [vmem:[#allocation8 + $0xfb8] sm:$0xff]  ;;  %v2000_v15 = vld [vmem:[#allocation8 + $0xfb0] sm:$0xff] }
 0x2fc   :  { %2696 = vmatprep.subr.mxu1 %v1911_v47  ;;  %3256 = vmatprep.subr.mxu0 %v2772_v29  ;;  %v2173_v47 = vadd.f32 %v2172_v63, %v2079_v40  ;;  %v2243_v29 = vpop.f32.mrf.mxu0  ;;  %v2790_v63 = vld [vmem:[%s4706_s7 + $0x138] sm:$0xff]  ;;  %v2804_v40 = vld [vmem:[%s4706_s7 + $0x1a8] sm:$0xff] }
 0x2fd   :  { %2697 = vmatpush1.msra.mxu1 %v1910_v33  ;;  %3257 = vmatpush3.msra.mxu0 %v2756_v22  ;;  %v1995_v33 = vld [vmem:[#allocation8 + $0xf88] sm:$0xff]  ;;  %v2175_v22 = vadd.f32 %v2174_v32, %v2083_v6  ;;  %v2803_v6 = vld [vmem:[%s4706_s7 + $0x1a0] sm:$0xff]  ;;  %v2802_v32 = vld [vmem:[%s4706_s7 + $0x198] sm:$0xff] }
 0x2fe   :  { %2698 = vmatprep.subr.mxu1 %v1905_v24  ;;  %3258 = vmatprep.subr.mxu0 %v2771_v35  ;;  %v1989_v24 = vld [vmem:[#allocation8 + $0xf58] sm:$0xff]  ;;  %v1988_v35 = vld [vmem:[#allocation8 + $0xf50] sm:$0xff]  ;;  %v2245_v17 = vpop.f32.mrf.mxu0 }
 0x2ff   :  { %2699 = vmatpush1.msra.mxu1 %v1904_v16  ;;  %3259 = vmatpush3.msra.mxu0 %v2755_v42  ;;  %v2244_v16 = vadd.f32 %v2243_v29, %v2173_v47  ;;  %v1983_v42 = vld [vmem:[#allocation8 + $0xf28] sm:$0xff]  ;;  %v2800_v29 = vld [vmem:[%s4706_s7 + $0x188] sm:$0xff] }
 0x300   :  { %2700 = vmatprep.subr.mxu1 %v1899_v45  ;;  %3260 = vmatprep.subr.mxu0 %v2770_v41  ;;  %v2246_v41 = vadd.f32 %v2245_v17, %v2175_v22  ;;  %v2785_v47 = vld [vmem:[%s4706_s7 + $0x110] sm:$0xff]  ;;  %v2799_v22 = vld [vmem:[%s4706_s7 + $0x180] sm:$0xff] }
 0x301   :  { %2701 = vmatpush1.msra.mxu1 %v1898_v59  ;;  %3261 = vmatpush3.msra.mxu0 %v2754_v28  ;;  %v1982_v59 = vld [vmem:[#allocation8 + $0xf20] sm:$0xff] }
 0x302   :  { %2702 = vmatprep.subr.mxu1 %v1893_v44  ;;  %3262 = vmatprep.subr.mxu0 %v2769_v43 }
 0x303   :  { %2703 = vmatpush1.msra.mxu1 %v1892_v54  ;;  %3263 = vmatpush3.msra.mxu0 %v2753_v51  ;;  %v2846_v54 = vld [vmem:[%s4706_s7 + $0x2f8] sm:$0xff] }
 0x304   :  { %2704 = vmatprep.subr.mxu1 %v1887_v37  ;;  %3264 = vmatprep.subr.mxu0 %v2768_v14  ;;  %v2830_v51 = vld [vmem:[%s4706_s7 + $0x278] sm:$0xff]  ;;  %v2845_v37 = vld [vmem:[%s4706_s7 + $0x2f0] sm:$0xff] }
 0x305   :  { %2705 = vmatpush1.msra.mxu1 %v1886_v39  ;;  %3265 = vmatpush3.msra.mxu0 %v2752_v34  ;;  %v2829_v14 = vld [vmem:[%s4706_s7 + $0x270] sm:$0xff]  ;;  %v2828_v39 = vld [vmem:[%s4706_s7 + $0x268] sm:$0xff]  ;;  %v2843_v34 = vld [vmem:[%s4706_s7 + $0x2e0] sm:$0xff] }
 0x306   :  { %2706 = vmatprep.subr.mxu1 %v2073_v2  ;;  %3266 = vmatprep.subr.mxu0 %v2767_v30  ;;  %v2827_v2 = vld [vmem:[%s4706_s7 + $0x260] sm:$0xff]  ;;  %v2842_v30 = vld [vmem:[%s4706_s7 + $0x2d8] sm:$0xff] }
 0x307   :  { %2707 = vmatpush2.msra.mxu1 %v2072_v46  ;;  %3267 = vmatpush3.msra.mxu0 %v2751_v49  ;;  %v2826_v46 = vld [vmem:[%s4706_s7 + $0x258] sm:$0xff]  ;;  %v2841_v49 = vld [vmem:[%s4706_s7 + $0x2d0] sm:$0xff] }
 0x308   :  { %2708 = vmatprep.subr.mxu1 %v2067_v8  ;;  %3271 = vmatprep.subr.mxu0 %v2814_v61  ;;  %v2798_v61 = vld [vmem:[%s4706_s7 + $0x178] sm:$0xff] }
 0x309   :  { %2709 = vmatpush2.msra.mxu1 %v2066_v55  ;;  %v2825_v55 = vld [vmem:[%s4706_s7 + $0x250] sm:$0xff] }
 0x30a   :  { %2710 = vmatprep.subr.mxu1 %v2061_v60 }
 0x30b   :  { %2711 = vmatpush2.msra.mxu1 %v2060_v57  ;;  %v2813_v57 = vld [vmem:[%s4706_s7 + $0x1f0] sm:$0xff] }
 0x30c   :  { %2712 = vmatprep.subr.mxu1 %v2055_v21  ;;  %v2797_v21 = vld [vmem:[%s4706_s7 + $0x170] sm:$0xff] }
 0x30d   :  { %2713 = vmatpush2.msra.mxu1 %v2054_v3  ;;  %v2812_v3 = vld [vmem:[%s4706_s7 + $0x1e8] sm:$0xff] }
 0x30e   :  { %2714 = vmatprep.subr.mxu1 %v2049_v48  ;;  %v2796_v48 = vld [vmem:[%s4706_s7 + $0x168] sm:$0xff] }
 0x30f   :  { %2715 = vmatpush2.msra.mxu1 %v2048_v36  ;;  %v2811_v36 = vld [vmem:[%s4706_s7 + $0x1e0] sm:$0xff] }
 0x310   :  { %2716 = vmatprep.subr.mxu1 %v2043_v53  ;;  %v2795_v53 = vld [vmem:[%s4706_s7 + $0x160] sm:$0xff] }
 0x311   :  { %2717 = vmatpush2.msra.mxu1 %v2042_v31  ;;  %v2810_v31 = vld [vmem:[%s4706_s7 + $0x1d8] sm:$0xff] }
 0x312   :  { %2718 = vmatprep.subr.mxu1 %v2037_v52  ;;  %v2794_v52 = vld [vmem:[%s4706_s7 + $0x158] sm:$0xff] }
 0x313   :  { %2719 = vmatpush2.msra.mxu1 %v2036_v62  ;;  %v2809_v62 = vld [vmem:[%s4706_s7 + $0x1d0] sm:$0xff] }
 0x314   :  { %2720 = vmatprep.subr.mxu1 %v2031_v38  ;;  %v2793_v38 = vld [vmem:[%s4706_s7 + $0x150] sm:$0xff] }
 0x315   :  { %2721 = vmatpush2.msra.mxu1 %v2030_v7  ;;  %v2808_v7 = vld [vmem:[%s4706_s7 + $0x1c8] sm:$0xff] }
 0x316   :  { %2722 = vmatprep.subr.mxu1 %v2025_v23  ;;  %v2792_v23 = vld [vmem:[%s4706_s7 + $0x148] sm:$0xff] }
 0x317   :  { %2723 = vmatpush2.msra.mxu1 %v2024_v56  ;;  %v2807_v56 = vld [vmem:[%s4706_s7 + $0x1c0] sm:$0xff] }
 0x318   :  { %2724 = vmatprep.subr.mxu1 %v2019_v58  ;;  %v2791_v58 = vld [vmem:[%s4706_s7 + $0x140] sm:$0xff] }
 0x319   :  { %2725 = vmatpush2.msra.mxu1 %v2018_v9  ;;  %v2806_v9 = vld [vmem:[%s4706_s7 + $0x1b8] sm:$0xff] }
 0x31a   :  { %2726 = vmatprep.subr.mxu1 %v2013_v0  ;;  %v2805_v0 = vld [vmem:[%s4706_s7 + $0x1b0] sm:$0xff] }
 0x31b   :  { %2727 = vmatpush2.msra.mxu1 %v2012_v13  ;;  %v2789_v13 = vld [vmem:[%s4706_s7 + $0x130] sm:$0xff] }
 0x31c   :  { %2728 = vmatprep.subr.mxu1 %v2007_v26  ;;  %v2788_v26 = vld [vmem:[%s4706_s7 + $0x128] sm:$0xff] }
 0x31d   :  { %2729 = vmatpush2.msra.mxu1 %v2006_v1  ;;  %v2787_v1 = vld [vmem:[%s4706_s7 + $0x120] sm:$0xff] }
 0x31e   :  { %2730 = vmatprep.subr.mxu1 %v2001_v25  ;;  %v2786_v25 = vld [vmem:[%s4706_s7 + $0x118] sm:$0xff] }
 0x31f   :  { %2731 = vmatpush2.msra.mxu1 %v2000_v15  ;;  %v2801_v15 = vld [vmem:[%s4706_s7 + $0x190] sm:$0xff] }
 0x320   :  { %2732 = vmatprep.subr.mxu1 %v1995_v33  ;;  %v2784_v33 = vld [vmem:[%s4706_s7 + $0x108] sm:$0xff] }
 0x321   :  { %2733 = vmatpush2.msra.mxu1 %v1994_v11  ;;  %v2314_v45 = vpop.f32.mrf.mxu1  ;;  %v2783_v11 = vld [vmem:[%s4706_s7 + $0x100] sm:$0xff] }
 0x322   :  { %2734 = vmatprep.subr.mxu1 %v1989_v24  ;;  %v2315_v28 = vadd.f32 %v2314_v45, %v2244_v16  ;;  %v2385_v24 = vpop.f32.mrf.mxu0  ;;  %v2091_v16 = vrot.slane %v4480_v5, %v445_v18  ;;  %v2839_v18 = vld [vmem:[%s4706_s7 + $0x2c0] sm:$0xff] }
 0x323   :  { %2735 = vmatpush2.msra.mxu1 %v1988_v35  ;;  %v2316_v44 = vpop.f32.mrf.mxu1  ;;  %v2087_v35 = vrot.slane %v4480_v5, %v441_v50  ;;  %v2824_v50 = vld [vmem:[%s4706_s7 + $0x248] sm:$0xff] }
 0x324   :  { %2736 = vmatprep.subr.mxu1 %v1983_v42  ;;  %v2317_v43 = vadd.f32 %v2316_v44, %v2246_v41  ;;  %v2387_v17 = vpop.f32.mrf.mxu0 }
 0x325   :  { %2737 = vmatpush2.msra.mxu1 %v1982_v59  ;;  %v2386_v42 = vadd.f32 %v2385_v24, %v2087_v35  ;;  %v2388_v41 = vadd.f32 %v2387_v17, %v2091_v16  ;;  %v3494_v16 = vmov 2   ;;  %v3495_v17 = vmov 0  }
 0x326   :  { %2739 = vmatmul.mubr.f32.vlgmr.msra.gmra.mxu1 %v4349_v12  ;;  %3359 = vtanh.f32 %v2317_v43  ;;  %3306 = vmatprep.subr.mxu1 %v2846_v54  ;;  %v2844_v12 = vld [vmem:[%s4706_s7 + $0x2e8] sm:$0xff] }
 0x327   :  { %3361 = vtanh.f32 %v2315_v28  ;;  %3307 = vmatpush3.msra.mxu1 %v2830_v51  ;;  %3356 = vset.pattern.permute.xlu1 %v3494_v16 }
 0x328   :  { %3308 = vmatprep.subr.mxu1 %v2845_v37  ;;  %3357 = vset.pattern.permute.xlu0 %v3495_v17 }
 0x329   :  { %3309 = vmatpush3.msra.mxu1 %v2829_v14  ;;  %v2840_v14 = vld [vmem:[%s4706_s7 + $0x2c8] sm:$0xff] }
 0x32a   :  { %3310 = vmatprep.subr.mxu1 %v2844_v12  ;;  %v2823_v12 = vld [vmem:[%s4706_s7 + $0x240] sm:$0xff] }
 0x32b   :  { %3311 = vmatpush3.msra.mxu1 %v2828_v39  ;;  %v2838_v39 = vld [vmem:[%s4706_s7 + $0x2b8] sm:$0xff] }
 0x32c   :  { %3312 = vmatprep.subr.mxu1 %v2843_v34  ;;  %v2822_v34 = vld [vmem:[%s4706_s7 + $0x238] sm:$0xff] }
 0x32d   :  { %3313 = vmatpush3.msra.mxu1 %v2827_v2  ;;  %v2837_v2 = vld [vmem:[%s4706_s7 + $0x2b0] sm:$0xff] }
 0x32e   :  { %3314 = vmatprep.subr.mxu1 %v2842_v30  ;;  %v2821_v30 = vld [vmem:[%s4706_s7 + $0x230] sm:$0xff] }
 0x32f   :  { %3315 = vmatpush3.msra.mxu1 %v2826_v46  ;;  %v2836_v46 = vld [vmem:[%s4706_s7 + $0x2a8] sm:$0xff] }
 0x330   :  { %3316 = vmatprep.subr.mxu1 %v2841_v49  ;;  %v2820_v49 = vld [vmem:[%s4706_s7 + $0x228] sm:$0xff] }
 0x331   :  { %3317 = vmatpush3.msra.mxu1 %v2825_v55  ;;  %v2834_v55 = vld [vmem:[%s4706_s7 + $0x298] sm:$0xff] }
 0x332   :  { %3318 = vmatprep.subr.mxu1 %v2840_v14 }
 0x333   :  { %v3360_v8 = vpop.eup %3359  ;;  %3319 = vmatpush3.msra.mxu1 %v2824_v50 }
 0x334   :  { %v3362_v60 = vpop.eup %3361  ;;  %2911 = vmatprep.mubr.f32.mxu0 %v3360_v8  ;;  %3320 = vmatprep.subr.mxu1 %v2839_v18  ;;  %v2835_v8 = vld [vmem:[%s4706_s7 + $0x2a0] sm:$0xff] }
 0x335   :  { %2912 = vmatmul.mubr.f32.vlgmr.msra.gmra.mxu0 %v3362_v60  ;;  %3321 = vmatpush3.msra.mxu1 %v2823_v12  ;;  %v2818_v60 = vld [vmem:[%s4706_s7 + $0x218] sm:$0xff] }
 0x336   :  { %3272 = vmatpush3.msra.mxu0 %v2798_v61  ;;  %3322 = vmatprep.subr.mxu1 %v2838_v39  ;;  %v2819_v61 = vld [vmem:[%s4706_s7 + $0x220] sm:$0xff] }
 0x337   :  { %3273 = vmatprep.subr.mxu0 %v2813_v57  ;;  %3323 = vmatpush3.msra.mxu1 %v2822_v34  ;;  %v2833_v57 = vld [vmem:[%s4706_s7 + $0x290] sm:$0xff]  ;;  %v876_v34 = vand.u32 127, %v431_v4 }
 0x338   :  { %3274 = vmatpush3.msra.mxu0 %v2797_v21  ;;  %3324 = vmatprep.subr.mxu1 %v2837_v2  ;;  %v2817_v21 = vld [vmem:[%s4706_s7 + $0x210] sm:$0xff] }
 0x339   :  { %3275 = vmatprep.subr.mxu0 %v2812_v3  ;;  %3325 = vmatpush3.msra.mxu1 %v2821_v30  ;;  %vm3091_vm15 = vcmp.eq.s32.totalorder %v876_v34, 0 }
 0x33a   :  { %3276 = vmatpush3.msra.mxu0 %v2796_v48  ;;  %3326 = vmatprep.subr.mxu1 %v2836_v46  ;;  %v2832_v48 = vld [vmem:[%s4706_s7 + $0x288] sm:$0xff] }
 0x33b   :  { %3277 = vmatprep.subr.mxu0 %v2811_v36  ;;  %3327 = vmatpush3.msra.mxu1 %v2820_v49 }
 0x33c   :  { %3278 = vmatpush3.msra.mxu0 %v2795_v53  ;;  %3328 = vmatprep.subr.mxu1 %v2835_v8  ;;  %v2816_v53 = vld [vmem:[%s4706_s7 + $0x208] sm:$0xff] }
 0x33d   :  { %3279 = vmatprep.subr.mxu0 %v2810_v31  ;;  %3329 = vmatpush3.msra.mxu1 %v2819_v61  ;;  %v2831_v31 = vld [vmem:[%s4706_s7 + $0x280] sm:$0xff] }
 0x33e   :  { %3280 = vmatpush3.msra.mxu0 %v2794_v52  ;;  %3330 = vmatprep.subr.mxu1 %v2834_v55  ;;  %v2815_v52 = vld [vmem:[%s4706_s7 + $0x200] sm:$0xff]  ;;  %s3496_s7 = smov 127  }
 0x33f   :  { %3281 = vmatprep.subr.mxu0 %v2809_v62  ;;  %3331 = vmatpush3.msra.mxu1 %v2818_v60 }
 0x340   :  { %3282 = vmatpush3.msra.mxu0 %v2793_v38  ;;  %3332 = vmatprep.subr.mxu1 %v2833_v57  ;;  %v2095_v38 = vrot.slane %v4480_v5, %v449_v19 }
 0x341   :  { %3283 = vmatprep.subr.mxu0 %v2808_v7  ;;  %3333 = vmatpush3.msra.mxu1 %v2817_v21  ;;  %v2099_v7 = vrot.slane %v4480_v5, %v453_v20 }
 0x342   :  { %3284 = vmatpush3.msra.mxu0 %v2792_v23  ;;  %3334 = vmatprep.subr.mxu1 %v2832_v48 }
 0x343   :  { %3285 = vmatprep.subr.mxu0 %v2807_v56  ;;  %3335 = vmatpush3.msra.mxu1 %v2816_v53 }
 0x344   :  { %3286 = vmatpush3.msra.mxu0 %v2791_v58  ;;  %3336 = vmatprep.subr.mxu1 %v2831_v31 }
 0x345   :  { %3287 = vmatprep.subr.mxu0 %v2806_v9  ;;  %3337 = vmatpush3.msra.mxu1 %v2815_v52 }
 0x346   :  { %3288 = vmatpush3.msra.mxu0 %v2790_v63 }
 0x347   :  { %3289 = vmatprep.subr.mxu0 %v2805_v0 }
 0x348   :  { %3290 = vmatpush3.msra.mxu0 %v2789_v13 }
 0x349   :  { %3291 = vmatprep.subr.mxu0 %v2804_v40 }
 0x34a   :  { %3292 = vmatpush3.msra.mxu0 %v2788_v26 }
 0x34b   :  { %3293 = vmatprep.subr.mxu0 %v2803_v6 }
 0x34c   :  { %3294 = vmatpush3.msra.mxu0 %v2787_v1 }
 0x34d   :  { %3295 = vmatprep.subr.mxu0 %v2802_v32 }
 0x34e   :  { %3296 = vmatpush3.msra.mxu0 %v2786_v25 }
 0x34f   :  { %3297 = vmatprep.subr.mxu0 %v2801_v15 }
 0x350   :  { %3298 = vmatpush3.msra.mxu0 %v2785_v47 }
 0x351   :  { %3299 = vmatprep.subr.mxu0 %v2800_v29 }
 0x352   :  { %3300 = vmatpush3.msra.mxu0 %v2784_v33 }
 0x353   :  { %3301 = vmatprep.subr.mxu0 %v2799_v22 }
 0x354   :  { %3302 = vmatpush3.msra.mxu0 %v2783_v11 }
 0x363   :  { %v2456_v45 = vpop.f32.mrf.mxu1 }
 0x364   :  { %v2457_v59 = vadd.f32 %v2456_v45, %v2386_v42  ;;  %v2527_v28 = vpop.f32.mrf.mxu0 }
 0x365   :  { %v2458_v44 = vpop.f32.mrf.mxu1 }
 0x366   :  { %v2459_v43 = vadd.f32 %v2458_v44, %v2388_v41  ;;  %v2528_v54 = vadd.f32 %v2527_v28, %v2457_v59  ;;  %v2529_v51 = vpop.f32.mrf.mxu0 }
 0x368   :  { %v2530_v37 = vadd.f32 %v2529_v51, %v2459_v43 }
 0x36a   :  { %3363 = vtanh.f32 %v2530_v37 }
 0x36b   :  { %3365 = vtanh.f32 %v2528_v54 }
 0x377   :  { %v3364_v3 = vpop.eup %3363 }
 0x378   :  { %v3366_v36 = vpop.eup %3365  ;;  %2981 = vmatprep.mubr.f32.mxu0 %v3364_v3 }
 0x379   :  { %2982 = vmatmul.mubr.f32.vlgmr.msra.gmra.mxu0 %v3366_v36 }
 0x3a5   :  { %v2598_v62 = vpop.f32.mrf.mxu1 }
 0x3a6   :  { %v2599_v56 = vadd.f32 %v2598_v62, %v2095_v38  ;;  %v2669_v58 = vpop.f32.mrf.mxu0 }
 0x3a7   :  { %v2600_v23 = vpop.f32.mrf.mxu1 }
 0x3a8   :  { %v2601_v9 = vadd.f32 %v2600_v23, %v2099_v7  ;;  %v2670_v63 = vadd.f32 %v2669_v58, %v2599_v56  ;;  %v2671_v0 = vpop.f32.mrf.mxu0 }
 0x3aa   :  { %v2672_v40 = vadd.f32 %v2671_v0, %v2601_v9 }
 0x3e6   :  { %v2740_v13 = vpop.f32.mrf.mxu1 }
 0x3e7   :  { %v2741_v26 = vadd.f32 %v2740_v13, %v2670_v63 }
 0x3e8   :  { %v2742_v6 = vpop.f32.mrf.mxu1 }
 0x3e9   :  { %v2743_v1 = vadd.f32 %v2742_v6, %v2672_v40 }
 0x3eb   :  { %3367 = vtanh.f32 %v2743_v1 }
 0x3ec   :  { %3369 = vtanh.f32 %v2741_v26 }
 0x3f5   :  { %v3268_v10 = vpop.f32.mrf.mxu0 }
 0x3f7   :  { %v3269_v19 = vpop.f32.mrf.mxu0 }
 0x3f8   :  { %v3368_v32 = vpop.eup %3367  ;;  %v3270_v29 = vadd.f32 %v3269_v19, %v3268_v10 }
 0x3f9   :  { %v3370_v25 = vpop.eup %3369  ;;  %3051 = vmatprep.mubr.f32.mxu1 %v3368_v32 }
 0x3fa   :  { %3052 = vmatmul.mubr.f32.vlgmr.msra.gmra.mxu1 %v3370_v25 }
 0x439   :  { %v3303_v20 = vpop.f32.mrf.mxu0 }
 0x43b   :  { %v3304_v5 = vpop.f32.mrf.mxu0 }
 0x43c   :  { %v3305_v15 = vadd.f32 %v3304_v5, %v3303_v20 }
 0x43e   :  { %v2984_v22 = vadd.f32 %v3305_v15, %v3270_v29 }
 0x4ba   :  { %v3338_v47 = vpop.f32.mrf.mxu1 }
 0x4bc   :  { %v3339_v33 = vpop.f32.mrf.mxu1 }
 0x4bd   :  { %v3340_v11 = vadd.f32 %v3339_v33, %v3338_v47 }
 0x4bf   :  { %v3054_v24 = vadd.f32 %v3340_v11, %v2984_v22 }
 0x4c1   :  { %v3057_v35 = vmul.f32 1.442695, %v3054_v24 }
 0x4c3   :  { %3371 = vpow2.f32 %v3057_v35 }
 0x4d0   :  { %v3372_v42 = vpop.eup %3371 }
 0x4d1   :  { %3060 = vrot.lane.b32.xlu0 %v3372_v42, %s3496_s7 }
 0x543   :  { %v3061_v45 = vpop.permute.xlu0 %3060 }
 0x544   :  { %v3063_v41 = vadd.f32 %v3372_v42, %v3061_v45 }
 0x546   :  { %v3064_v59 = vadd.f32 1e-09, %v3063_v41 }
 0x548   :  { %3067 = vperm.xlu0 %3357, %v3064_v59   ;;  %3073 = vperm.xlu1 %3356, %v3064_v59  }
 0x54c   :  { %3358 = vset.pattern.permute.xlu0 %v3494_v16 }
 0x5c3   :  { %v3074_v28 = vpop.permute.xlu1 %3073  ;;  %v3068_v54 = vpop.permute.xlu0 %3067 }
 0x5c4   :  { %3373 = vrcp.f32 %v3074_v28 }
 0x5c5   :  { %3375 = vrcp.f32 %v3068_v54 }
 0x5d1   :  { %v3374_v44 = vpop.eup %3373 }
 0x5d2   :  { %v3077_v43 = vmul.f32 %v3374_v44, %v3372_v42  ;;  %v3376_v51 = vpop.eup %3375 }
 0x5d3   :  { %v3071_v37 = vmul.f32 %v3376_v51, %v3372_v42 }
 0x5d4   :  { %3084 = vrot.lane.b32.xlu1 %v3077_v43, %s3497_s13 }
 0x5d5   :  { %v3078_v14 = vmul.f32 %v3071_v37, %v4370_v27 }
 0x5d7   :  { %v3080_v50 = vsel %vm3079_vm14, %v3078_v14, 0.0 }
 0x5f8   :  { %3081 = vadd.xlane.f32.xlu1 %v3080_v50 }
 0x646   :  { %v3085_v18 = vpop.permute.xlu1 %3084 }
 0x647   :  { %v3087_v12 = vmul.f32 %v3085_v18, %v4370_v27 }
 0x649   :  { %v3088_v39 = vsel %vm3079_vm14, %v3087_v12, 0.0 }
 0x64a   :  { %3089 = vadd.xlane.f32.xlu0 %v3088_v39 }
 0x681   :  { %v3082_v2 = vpop.xlane.xlu1 %3081 }
 0x6d3   :  { %v3090_v30 = vpop.xlane.xlu0 %3089 }
 0x6d4   :  { %v3092_v46 = vsel %vm3091_vm15, %v3082_v2, %v3090_v30 }
 0x6d5   :  { %3093 = vst.msk [vmem:[%s4707_s8] sm:$0xf] %vm3079_vm14, %v3092_v46 }
 0x6d6   :  { %3103 = vsyncpa [#allocation4], 1 }
 0x6d7   :  { %3104 = vsyncpa [#allocation6], 1 }
 0x6d8   :  { %3105 = vsyncpa [#allocation9], 1 }

</bundles_post_ra>
